<compile_context>
chip_gen: v6e
topology: v6e:2x2x1
jax: 0.10.0
libtpu: 0.0.40
codegen_flags: <defaults>
</compile_context>

<pallas_src>
import functools

import jax
import jax.numpy as jnp
from jax.experimental import pallas as pl
from jax.experimental.pallas import tpu as pltpu

KH = KW = 5
PAD = 2
EPS = 1e-3


def _fused_kernel(x_ref, mask_ref, w_ref, gamma_ref, beta_ref, o_ref,
                  *, wp, nrows, inv_cnt):
    """relu -> 5x5 conv (single im2col MXU matmul) -> batchnorm -> relu.

    x_ref:     (Cin, FLAT)       f32  channel-major, spatially padded, flattened
                                      (row stride of the padded image = wp)
    mask_ref:  (1, nrows)        f32  1.0 for valid output columns, 0.0 for the
                                      wrap-around garbage columns
    w_ref:     (Cout, KH*KW*Cin) bf16 weight, k = (kh*KW + kw)*Cin + c
    gamma_ref: (Cout, 1)         f32  BN scale
    beta_ref:  (Cout, 1)         f32  BN shift
    o_ref:     (Cout, nrows)          output, channel-major, lane-dense
    """
    # relu once on the small padded slab, then cast to bf16 for the MXU.
    # (relu(0) == 0, so relu of the zero-padded tensor == pad of relu(x).)
    xr = jnp.maximum(x_ref[...], 0.0).astype(jnp.bfloat16)

    # Implicit im2col (transposed): P[(kh*KW+kw)*Cin + c, r] = xr[c, r + kh*wp + kw].
    # Each tap is a contiguous lane-slice; stacking along sublanes (Cin-row
    # pieces, tile aligned) builds the (K, H*wp) patch matrix once.
    taps = [xr[:, (kh * wp + kw):(kh * wp + kw) + nrows]
            for kh in range(KH) for kw in range(KW)]
    patches = jnp.concatenate(taps, axis=0)                    # (K, nrows) bf16

    # Single MXU matmul, f32 accumulation: (Cout, K) x (K, nrows) -> (Cout, nrows).
    acc = jnp.dot(w_ref[...], patches, preferred_element_type=jnp.float32)

    # BatchNorm2d, training mode: per-channel batch stats over the H*W valid
    # positions (N == 1), biased variance, folded into one scale/shift.
    vm = mask_ref[...]                                          # (1, nrows)
    mean = jnp.sum(acc * vm, axis=1, keepdims=True) * inv_cnt   # (Cout, 1)
    cen = (acc - mean) * vm
    var = jnp.sum(cen * cen, axis=1, keepdims=True) * inv_cnt   # biased variance
    scale = gamma_ref[...] * jax.lax.rsqrt(var + EPS)           # (Cout, 1)
    shift = beta_ref[...] - mean * scale

    # Final relu, lane-dense store.
    o_ref[...] = jnp.maximum(acc * scale + shift, 0.0).astype(o_ref.dtype)


@jax.jit
def relu_conv_bn_relu(x_nchw, w_oihw, gamma, beta):
    """Wrapper with the PyTorch module's NCHW convention."""
    N, Cin, H, W = x_nchw.shape
    assert N == 1, "BatchNorm batch statistics are computed for N == 1 here"
    Cout = w_oihw.shape[0]

    Wp = W + 2 * PAD                 # padded width == flattened row stride
    nrows = H * Wp                   # output columns incl. wrap-around garbage
    flat = (H + 2 * PAD + 1) * Wp    # one extra zero row so the deepest tap slice
                                     # (offset (KH-1)*Wp + (KW-1)) stays in range

    # --- glue (each side fuses into one XLA op under jit) -------------------
    x_cm = jnp.pad(x_nchw[0], ((0, 0), (PAD, PAD + 1), (PAD, PAD)))
    x_cm = x_cm.reshape(Cin, flat)                                   # (Cin, FLAT)
    w_cm = jnp.transpose(w_oihw, (0, 2, 3, 1)).reshape(
        Cout, KH * KW * Cin).astype(jnp.bfloat16)                    # (Cout, K)
    gamma2 = gamma.reshape(Cout, 1).astype(jnp.float32)
    beta2 = beta.reshape(Cout, 1).astype(jnp.float32)
    mask = (jnp.arange(nrows) % Wp < W).astype(jnp.float32)[None, :]  # (1, nrows)

    kernel = functools.partial(_fused_kernel, wp=Wp, nrows=nrows,
                               inv_cnt=1.0 / float(H * W))

    out_cm = pl.pallas_call(
        kernel,
        out_shape=jax.ShapeDtypeStruct((Cout, nrows), x_nchw.dtype),
        in_specs=[pl.BlockSpec(memory_space=pltpu.MemorySpace.VMEM)] * 5,
        out_specs=pl.BlockSpec(memory_space=pltpu.MemorySpace.VMEM),
        compiler_params=pltpu.CompilerParams(
            vmem_limit_bytes=32 * 1024 * 1024),
    )(x_cm, mask, w_cm, gamma2, beta2)

    # (Cout, H*Wp) -> drop garbage columns -> NCHW.  Pure layout glue.
    return out_cm.reshape(Cout, H, Wp)[:, :, :W][None]


def _reference(x_nchw, w_oihw, gamma, beta):
    """Pure-JAX f32 reference for correctness checking."""
    x = jnp.maximum(x_nchw, 0.0)
    y = jax.lax.conv_general_dilated(
        x, w_oihw, window_strides=(1, 1), padding=((PAD, PAD), (PAD, PAD)),
        dimension_numbers=("NCHW", "OIHW", "NCHW"))
    mean = jnp.mean(y, axis=(0, 2, 3), keepdims=True)
    var = jnp.mean(jnp.square(y - mean), axis=(0, 2, 3), keepdims=True)
    y = (y - mean) * jax.lax.rsqrt(var + EPS)
    y = y * gamma.reshape(1, -1, 1, 1) + beta.reshape(1, -1, 1, 1)
    return jnp.maximum(y, 0.0)


if __name__ == "__main__":
    key = jax.random.PRNGKey(0)
    kx, kwt, kg, kb = jax.random.split(key, 4)

    N, Cin, H, W = 1, 48, 25, 25
    Cout = 64

    x = jax.random.normal(kx, (N, Cin, H, W), dtype=jnp.float32)
    w = jax.random.normal(kwt, (Cout, Cin, KH, KW), dtype=jnp.float32) * 0.05
    gamma = 1.0 + 0.1 * jax.random.normal(kg, (Cout,), dtype=jnp.float32)
    beta = 0.1 * jax.random.normal(kb, (Cout,), dtype=jnp.float32)

    out = jax.block_until_ready(relu_conv_bn_relu(x, w, gamma, beta))
    ref = jax.block_until_ready(_reference(x, w, gamma, beta))

    assert out.shape == (N, Cout, H, W), out.shape
    err = float(jnp.max(jnp.abs(out - ref)))
    # Tolerance reflects bf16 MXU operands with f32 accumulation over K=1200.
    assert err < 3e-2, f"max abs err vs f32 reference: {err}"

    print("KERNEL_OK")
</pallas_src>

<mosaic_0001>
module attributes {stable_mosaic.version = 11 : i64} {
  func.func @_fused_kernel(%arg0: memref<48x870xf32, #tpu.memory_space<vmem>>, %arg1: memref<1x725xf32, #tpu.memory_space<vmem>>, %arg2: memref<64x1200xbf16, #tpu.memory_space<vmem>>, %arg3: memref<64x1xf32, #tpu.memory_space<vmem>>, %arg4: memref<64x1xf32, #tpu.memory_space<vmem>>, %arg5: memref<64x725xf32, #tpu.memory_space<vmem>>) attributes {dimension_semantics = [], scalar_prefetch = 0 : i64, scratch_operands = 0 : i64, tpu.core_type = #tpu.core_type<tc>} {
    %c0 = arith.constant 0 : index
    %c0_0 = arith.constant 0 : index
    %0 = vector.load %arg0[%c0, %c0_0] : memref<48x870xf32, #tpu.memory_space<vmem>>, vector<48x870xf32>
    %cst = arith.constant 0.000000e+00 : f32
    %1 = vector.broadcast %cst : f32 to vector<48x870xf32>
    %2 = arith.maximumf %0, %1 : vector<48x870xf32>
    %3 = arith.truncf %2 : vector<48x870xf32> to vector<48x870xbf16>
    %4 = vector.extract_strided_slice %3 {offsets = [0, 0], sizes = [48, 725], strides = [1, 1]} : vector<48x870xbf16> to vector<48x725xbf16>
    %5 = vector.extract_strided_slice %3 {offsets = [0, 1], sizes = [48, 725], strides = [1, 1]} : vector<48x870xbf16> to vector<48x725xbf16>
    %6 = vector.extract_strided_slice %3 {offsets = [0, 2], sizes = [48, 725], strides = [1, 1]} : vector<48x870xbf16> to vector<48x725xbf16>
    %7 = vector.extract_strided_slice %3 {offsets = [0, 3], sizes = [48, 725], strides = [1, 1]} : vector<48x870xbf16> to vector<48x725xbf16>
    %8 = vector.extract_strided_slice %3 {offsets = [0, 4], sizes = [48, 725], strides = [1, 1]} : vector<48x870xbf16> to vector<48x725xbf16>
    %9 = vector.extract_strided_slice %3 {offsets = [0, 29], sizes = [48, 725], strides = [1, 1]} : vector<48x870xbf16> to vector<48x725xbf16>
    %10 = vector.extract_strided_slice %3 {offsets = [0, 30], sizes = [48, 725], strides = [1, 1]} : vector<48x870xbf16> to vector<48x725xbf16>
    %11 = vector.extract_strided_slice %3 {offsets = [0, 31], sizes = [48, 725], strides = [1, 1]} : vector<48x870xbf16> to vector<48x725xbf16>
    %12 = vector.extract_strided_slice %3 {offsets = [0, 32], sizes = [48, 725], strides = [1, 1]} : vector<48x870xbf16> to vector<48x725xbf16>
    %13 = vector.extract_strided_slice %3 {offsets = [0, 33], sizes = [48, 725], strides = [1, 1]} : vector<48x870xbf16> to vector<48x725xbf16>
    %14 = vector.extract_strided_slice %3 {offsets = [0, 58], sizes = [48, 725], strides = [1, 1]} : vector<48x870xbf16> to vector<48x725xbf16>
    %15 = vector.extract_strided_slice %3 {offsets = [0, 59], sizes = [48, 725], strides = [1, 1]} : vector<48x870xbf16> to vector<48x725xbf16>
    %16 = vector.extract_strided_slice %3 {offsets = [0, 60], sizes = [48, 725], strides = [1, 1]} : vector<48x870xbf16> to vector<48x725xbf16>
    %17 = vector.extract_strided_slice %3 {offsets = [0, 61], sizes = [48, 725], strides = [1, 1]} : vector<48x870xbf16> to vector<48x725xbf16>
    %18 = vector.extract_strided_slice %3 {offsets = [0, 62], sizes = [48, 725], strides = [1, 1]} : vector<48x870xbf16> to vector<48x725xbf16>
    %19 = vector.extract_strided_slice %3 {offsets = [0, 87], sizes = [48, 725], strides = [1, 1]} : vector<48x870xbf16> to vector<48x725xbf16>
    %20 = vector.extract_strided_slice %3 {offsets = [0, 88], sizes = [48, 725], strides = [1, 1]} : vector<48x870xbf16> to vector<48x725xbf16>
    %21 = vector.extract_strided_slice %3 {offsets = [0, 89], sizes = [48, 725], strides = [1, 1]} : vector<48x870xbf16> to vector<48x725xbf16>
    %22 = vector.extract_strided_slice %3 {offsets = [0, 90], sizes = [48, 725], strides = [1, 1]} : vector<48x870xbf16> to vector<48x725xbf16>
    %23 = vector.extract_strided_slice %3 {offsets = [0, 91], sizes = [48, 725], strides = [1, 1]} : vector<48x870xbf16> to vector<48x725xbf16>
    %24 = vector.extract_strided_slice %3 {offsets = [0, 116], sizes = [48, 725], strides = [1, 1]} : vector<48x870xbf16> to vector<48x725xbf16>
    %25 = vector.extract_strided_slice %3 {offsets = [0, 117], sizes = [48, 725], strides = [1, 1]} : vector<48x870xbf16> to vector<48x725xbf16>
    %26 = vector.extract_strided_slice %3 {offsets = [0, 118], sizes = [48, 725], strides = [1, 1]} : vector<48x870xbf16> to vector<48x725xbf16>
    %27 = vector.extract_strided_slice %3 {offsets = [0, 119], sizes = [48, 725], strides = [1, 1]} : vector<48x870xbf16> to vector<48x725xbf16>
    %28 = vector.extract_strided_slice %3 {offsets = [0, 120], sizes = [48, 725], strides = [1, 1]} : vector<48x870xbf16> to vector<48x725xbf16>
    %29 = tpu.concatenate %4, %5, %6, %7, %8, %9, %10, %11, %12, %13, %14, %15, %16, %17, %18, %19 in 0 : vector<48x725xbf16>, vector<48x725xbf16>, vector<48x725xbf16>, vector<48x725xbf16>, vector<48x725xbf16>, vector<48x725xbf16>, vector<48x725xbf16>, vector<48x725xbf16>, vector<48x725xbf16>, vector<48x725xbf16>, vector<48x725xbf16>, vector<48x725xbf16>, vector<48x725xbf16>, vector<48x725xbf16>, vector<48x725xbf16>, vector<48x725xbf16> -> vector<768x725xbf16>
    %30 = tpu.concatenate %20, %21, %22, %23, %24, %25, %26, %27, %28 in 0 : vector<48x725xbf16>, vector<48x725xbf16>, vector<48x725xbf16>, vector<48x725xbf16>, vector<48x725xbf16>, vector<48x725xbf16>, vector<48x725xbf16>, vector<48x725xbf16>, vector<48x725xbf16> -> vector<432x725xbf16>
    %31 = tpu.concatenate %29, %30 in 0 : vector<768x725xbf16>, vector<432x725xbf16> -> vector<1200x725xbf16>
    %c0_1 = arith.constant 0 : index
    %c0_2 = arith.constant 0 : index
    %32 = vector.load %arg2[%c0_1, %c0_2] : memref<64x1200xbf16, #tpu.memory_space<vmem>>, vector<64x1200xbf16>
    %cst_3 = arith.constant dense<0.000000e+00> : vector<64x725xf32>
    %33 = tpu.matmul %32, %31, %cst_3 {dimension_numbers = #tpu.dot_dimension_numbers<[1], [0], [0], [1], [0, 0, 1, 1], [], []>} : vector<64x1200xbf16>, vector<1200x725xbf16>, vector<64x725xf32> -> vector<64x725xf32>
    %c0_4 = arith.constant 0 : index
    %c0_5 = arith.constant 0 : index
    %34 = vector.load %arg1[%c0_4, %c0_5] : memref<1x725xf32, #tpu.memory_space<vmem>>, vector<1x725xf32>
    %35 = vector.broadcast %34 : vector<1x725xf32> to vector<64x725xf32>
    %36 = arith.mulf %33, %35 : vector<64x725xf32>
    %cst_6 = arith.constant dense<0.000000e+00> : vector<64xf32>
    %37 = vector.multi_reduction <add>, %36, %cst_6 [1] : vector<64x725xf32> to vector<64xf32>
    %38 = vector.shape_cast %37 : vector<64xf32> to vector<64x1xf32>
    %cst_7 = arith.constant 1.600000e-03 : f32
    %39 = vector.broadcast %cst_7 : f32 to vector<64x1xf32>
    %40 = arith.mulf %38, %39 : vector<64x1xf32>
    %41 = vector.broadcast %40 : vector<64x1xf32> to vector<64x725xf32>
    %42 = arith.subf %33, %41 : vector<64x725xf32>
    %43 = vector.broadcast %34 : vector<1x725xf32> to vector<64x725xf32>
    %44 = arith.mulf %42, %43 : vector<64x725xf32>
    %45 = arith.mulf %44, %44 : vector<64x725xf32>
    %cst_8 = arith.constant dense<0.000000e+00> : vector<64xf32>
    %46 = vector.multi_reduction <add>, %45, %cst_8 [1] : vector<64x725xf32> to vector<64xf32>
    %47 = vector.shape_cast %46 : vector<64xf32> to vector<64x1xf32>
    %cst_9 = arith.constant 1.600000e-03 : f32
    %48 = vector.broadcast %cst_9 : f32 to vector<64x1xf32>
    %49 = arith.mulf %47, %48 : vector<64x1xf32>
    %c0_10 = arith.constant 0 : index
    %c0_11 = arith.constant 0 : index
    %50 = vector.load %arg3[%c0_10, %c0_11] : memref<64x1xf32, #tpu.memory_space<vmem>>, vector<64x1xf32>
    %cst_12 = arith.constant 1.000000e-03 : f32
    %51 = vector.broadcast %cst_12 : f32 to vector<64x1xf32>
    %52 = arith.addf %49, %51 : vector<64x1xf32>
    %53 = math.rsqrt %52 : vector<64x1xf32>
    %54 = arith.mulf %50, %53 : vector<64x1xf32>
    %c0_13 = arith.constant 0 : index
    %c0_14 = arith.constant 0 : index
    %55 = vector.load %arg4[%c0_13, %c0_14] : memref<64x1xf32, #tpu.memory_space<vmem>>, vector<64x1xf32>
    %56 = arith.mulf %40, %54 : vector<64x1xf32>
    %57 = arith.subf %55, %56 : vector<64x1xf32>
    %58 = vector.broadcast %54 : vector<64x1xf32> to vector<64x725xf32>
    %59 = arith.mulf %33, %58 : vector<64x725xf32>
    %60 = vector.broadcast %57 : vector<64x1xf32> to vector<64x725xf32>
    %61 = arith.addf %59, %60 : vector<64x725xf32>
    %cst_15 = arith.constant 0.000000e+00 : f32
    %62 = vector.broadcast %cst_15 : f32 to vector<64x725xf32>
    %63 = arith.maximumf %61, %62 : vector<64x725xf32>
    %c0_16 = arith.constant 0 : index
    %c0_17 = arith.constant 0 : index
    %64 = vector.load %arg5[%c0_16, %c0_17] : memref<64x725xf32, #tpu.memory_space<vmem>>, vector<64x725xf32>
    tpu.vector_store %arg5[%c0_16, %c0_17], %63 {strides = array<i32>} : memref<64x725xf32, #tpu.memory_space<vmem>>, vector<64x725xf32>,
    return
  }
}

</mosaic_0001>

<bundles_post_ra>
// kernel: relu_conv_bn_relu.1
= control target key start
LH: loop header
LB: loop body
LE: loop exit
PB: predicated region body
PF: predicated region fallthrough
CT: control target
= control target key end

     0   :  { %s4367_s17 = smov 127   ;;  %s4368_s18 = smov 126   ;;  %vm250_vm0 = vcmask 1031168   ;;  %vm180_vm1 = vcmask 1039360   ;;  %vm460_vm2 = vcmask 809984   ;;  %vm390_vm3 = vcmask 1014784   ;;  %s8731_s0 = inlined_call_operand.vmem [shape: f32[48,870], index: 0, kind: input, shape index: {}]   ;;  %s8732_s2 = inlined_call_operand.vmem [shape: bf16[64,1200], index: 2, kind: input, shape index: {}]   ;;  %s8733_s1 = inlined_call_operand.vmem [shape: f32[1,725], index: 1, kind: input, shape index: {}]   ;;  %s8734_s3 = inlined_call_operand.vmem [shape: f32[64,1], index: 3, kind: input, shape index: {}]   ;;  %s8735_s4 = inlined_call_operand.vmem [shape: f32[64,1], index: 4, kind: input, shape index: {}]   ;;  %s8736_s5 = inlined_call_operand.vmem [shape: f32[64,725], index: 5, kind: output, shape index: {}]  }
   0x1   :  { %v23_v0 = vld [vmem:[%s8731_s0 + $0x10] sm:$0xff]  ;;  %v30_v1 = vld [vmem:[%s8731_s0 + $0x48] sm:$0xff]  ;;  %v21_v2 = vld [vmem:[%s8731_s0] sm:$0xff]  ;;  %s4369_s19 = smov 125   ;;  %s4370_s20 = smov 124   ;;  %vm320_vm4 = vcmask 1022976  }
   0x2   :  { %v65_v3 = vmax.f32 %v23_v0, 0.0  ;;  %v72_v4 = vmax.f32 %v30_v1, 0.0  ;;  %v28_v5 = vld [vmem:[%s8731_s0 + $0x38] sm:$0xff]  ;;  %v63_v6 = vmax.f32 %v21_v2, 0.0  ;;  %v31_v8 = vld [vmem:[%s8731_s0 + $0x50] sm:$0xff]  ;;  %v22_v12 = vld [vmem:[%s8731_s0 + $0x8] sm:$0xff] }
   0x3   :  { %v24_v7 = vld [vmem:[%s8731_s0 + $0x18] sm:$0xff]  ;;  %v70_v9 = vmax.f32 %v28_v5, 0.0  ;;  %v73_v11 = vmax.f32 %v31_v8, 0.0  ;;  %v29_v13 = vld [vmem:[%s8731_s0 + $0x40] sm:$0xff]  ;;  %v26_v14 = vld [vmem:[%s8731_s0 + $0x28] sm:$0xff]  ;;  %v64_v16 = vmax.f32 %v22_v12, 0.0 }
   0x4   :  { %v66_v10 = vmax.f32 %v24_v7, 0.0  ;;  %v4442_v15 = vpack.c.bf16 %v72_v4, %v65_v3  ;;  %v71_v17 = vmax.f32 %v29_v13, 0.0  ;;  %v33_v18 = vld [vmem:[%s8731_s0 + $0x60] sm:$0xff]  ;;  %v32_v20 = vld [vmem:[%s8731_s0 + $0x58] sm:$0xff]  ;;  %v68_v23 = vmax.f32 %v26_v14, 0.0  ;;  %v43_v29 = vld [vmem:[%s8731_s0 + $0xb0] sm:$0xff] }
   0x5   :  { %v25_v19 = vld [vmem:[%s8731_s0 + $0x20] sm:$0xff]  ;;  %v4453_v21 = vpack.c.bf16 %v70_v9, %v63_v6  ;;  %v75_v24 = vmax.f32 %v33_v18, 0.0  ;;  %v74_v27 = vmax.f32 %v32_v20, 0.0  ;;  %v36_v28 = vld [vmem:[%s8731_s0 + $0x78] sm:$0xff]  ;;  %v35_v30 = vld [vmem:[%s8731_s0 + $0x70] sm:$0xff]  ;;  %v85_v34 = vmax.f32 %v43_v29, 0.0 }
   0x6   :  { %148 = vrot.lane.b32.xlu1 %v4442_v15, %s4367_s17  ;;  %v4457_v22 = vpack.c.bf16 %v73_v11, %v66_v10  ;;  %v4461_v25 = vpack.c.bf16 %v71_v17, %v64_v16  ;;  %v67_v26 = vmax.f32 %v25_v19, 0.0  ;;  %v42_v31 = vld [vmem:[%s8731_s0 + $0xa8] sm:$0xff]  ;;  %v78_v33 = vmax.f32 %v36_v28, 0.0  ;;  %v45_v39 = vld [vmem:[%s8731_s0 + $0xc0] sm:$0xff]  ;;  %v44_v41 = vld [vmem:[%s8731_s0 + $0xb8] sm:$0xff]  ;;  %s4371_s21 = smov 99  }
   0x7   :  { %144 = vrot.lane.b32.xlu0 %v4453_v21, %s4367_s17  ;;  %v4477_v32 = vpack.c.bf16 %v75_v24, %v68_v23  ;;  %v77_v36 = vmax.f32 %v35_v30, 0.0  ;;  %v84_v37 = vmax.f32 %v42_v31, 0.0  ;;  %v38_v38 = vld [vmem:[%s8731_s0 + $0x88] sm:$0xff]  ;;  %v37_v40 = vld [vmem:[%s8731_s0 + $0x80] sm:$0xff]  ;;  %v87_v44 = vmax.f32 %v45_v39, 0.0  ;;  %v40_v48 = vld [vmem:[%s8731_s0 + $0x98] sm:$0xff] }
   0x8   :  { %v4481_v35 = vpack.c.bf16 %v74_v27, %v67_v26  ;;  %v4497_v42 = vpack.c.bf16 %v85_v34, %v78_v33  ;;  %v80_v43 = vmax.f32 %v38_v38, 0.0  ;;  %v79_v46 = vmax.f32 %v37_v40, 0.0  ;;  %v47_v49 = vld [vmem:[%s8731_s0 + $0xd0] sm:$0xff]  ;;  %v46_v51 = vld [vmem:[%s8731_s0 + $0xc8] sm:$0xff]  ;;  %v57_v59 = vld [vmem:[%s8731_s0 + $0x120] sm:$0xff]  ;;  %s4372_s22 = smov 97  }
   0x9   :  { %8999 = vst [vmem:[#allocation2_spill] sm:$0xff] %v4477_v32  ;;  %v4501_v45 = vpack.c.bf16 %v84_v37, %v77_v36  ;;  %v86_v47 = vmax.f32 %v44_v41, 0.0  ;;  %v39_v50 = vld [vmem:[%s8731_s0 + $0x90] sm:$0xff]  ;;  %v82_v53 = vmax.f32 %v40_v48, 0.0  ;;  %v89_v54 = vmax.f32 %v47_v49, 0.0  ;;  %v50_v58 = vld [vmem:[%s8731_s0 + $0xe8] sm:$0xff] }
   0xa   :  { %150 = vrot.lane.b32.xlu1 %v4457_v22, %s4367_s17  ;;  %9000 = vst [vmem:[#allocation3_spill] sm:$0xff] %v4481_v35  ;;  %v4517_v52 = vpack.c.bf16 %v87_v44, %v80_v43  ;;  %v81_v56 = vmax.f32 %v39_v50, 0.0  ;;  %v88_v57 = vmax.f32 %v46_v51, 0.0  ;;  %v49_v60 = vld [vmem:[%s8731_s0 + $0xe0] sm:$0xff]  ;;  %v56_v61 = vld [vmem:[%s8731_s0 + $0x118] sm:$0xff]  ;;  %v92_v63 = vmax.f32 %v50_v58, 0.0 }
   0xb   :  { %146 = vrot.lane.b32.xlu0 %v4461_v25, %s4367_s17  ;;  %v4521_v55 = vpack.c.bf16 %v86_v47, %v79_v46  ;;  %v4537_v62 = vpack.c.bf16 %v89_v54, %v82_v53  ;;  %v99_v0 = vmax.f32 %v57_v59, 0.0  ;;  %v91_v2 = vmax.f32 %v49_v60, 0.0  ;;  %v52_v4 = vld [vmem:[%s8731_s0 + $0xf8] sm:$0xff]  ;;  %v59_v5 = vld [vmem:[%s8731_s0 + $0x130] sm:$0xff]  ;;  %v58_v7 = vld [vmem:[%s8731_s0 + $0x128] sm:$0xff]  ;;  %s4373_s23 = smov 98  }
   0xc   :  { %v4541_v1 = vpack.c.bf16 %v88_v57, %v81_v56  ;;  %v98_v3 = vmax.f32 %v56_v61, 0.0  ;;  %v51_v6 = vld [vmem:[%s8731_s0 + $0xf0] sm:$0xff]  ;;  %v94_v9 = vmax.f32 %v52_v4, 0.0  ;;  %v101_v10 = vmax.f32 %v59_v5, 0.0  ;;  %v54_v14 = vld [vmem:[%s8731_s0 + $0x108] sm:$0xff]  ;;  %v61_v16 = vld [vmem:[%s8731_s0 + $0x140] sm:$0xff] }
   0xd   :  { %9001 = vst [vmem:[#allocation4_spill] sm:$0xff] %v4537_v62  ;;  %v4557_v8 = vpack.c.bf16 %v99_v0, %v92_v63  ;;  %v93_v12 = vmax.f32 %v51_v6, 0.0  ;;  %v100_v13 = vmax.f32 %v58_v7, 0.0  ;;  %v53_v17 = vld [vmem:[%s8731_s0 + $0x100] sm:$0xff]  ;;  %v60_v18 = vld [vmem:[%s8731_s0 + $0x138] sm:$0xff]  ;;  %v96_v20 = vmax.f32 %v54_v14, 0.0 }
   0xe   :  { %154 = vrot.lane.b32.xlu1 %v4477_v32, %s4367_s17  ;;  %9002 = vst [vmem:[#allocation5_spill] sm:$0xff] %v4541_v1  ;;  %v4561_v11 = vpack.c.bf16 %v98_v3, %v91_v2  ;;  %v4577_v19 = vpack.c.bf16 %v101_v10, %v94_v9  ;;  %v103_v23 = vmax.f32 %v61_v16, 0.0  ;;  %v95_v26 = vmax.f32 %v53_v17, 0.0  ;;  %s4374_s24 = smov 70   ;;  %s4375_s25 = smov 95  }
   0xf   :  { %152 = vrot.lane.b32.xlu0 %v4481_v35, %s4367_s17  ;;  %v4581_v24 = vpack.c.bf16 %v100_v13, %v93_v12  ;;  %v102_v27 = vmax.f32 %v60_v18, 0.0  ;;  %s4376_s26 = smov 100   ;;  %s4377_s27 = smov 96   ;;  %vm8874_vm5 = vcmask 793600   ;;  %vm530_vm6 = vcmask 801792  }
  0x10   :  { %v4585_v28 = vpack.c.bf16 %v103_v23, %v96_v20  ;;  %s4378_s7 = smov 67   ;;  %s4379_s8 = smov 40   ;;  %vm819_vm7 = vcmask 572416   ;;  %vm740_vm8 = vcmask 777216   ;;  %vm670_vm9 = vcmask 785408  }
  0x11   :  { %v4589_v29 = vpack.c.bf16 %v102_v27, %v95_v26  ;;  %s4380_s9 = smov 68   ;;  %s4381_s12 = smov 69   ;;  %vm1056_vm10 = vcmask 547840   ;;  %vm1753_vm11 = vcmask 326656   ;;  %vm8832_vm12 = vcmask 818176  }
  0x12   :  { %158 = vrot.lane.b32.xlu1 %v4497_v42, %s4367_s17  ;;  %9003 = vst [vmem:[#allocation6_spill] sm:$0xff] %v4585_v28  ;;  %s4382_s13 = smov 41   ;;  %vm8875_vm13 = vcmask 556032   ;;  %s8889_s16 = smov 66   ;;  %vm898_vm14 = vcmask 564224   ;;  %vm1214_vm15 = vcmask 334848  }
  0x13   :  { %156 = vrot.lane.b32.xlu0 %v4501_v45, %s4367_s17  ;;  %9004 = vst [vmem:[#allocation7_spill] sm:$0xff] %v4589_v29  ;;  %s9366_s15 = smov 66  }
  0x16   :  { %162 = vrot.lane.b32.xlu1 %v4517_v52, %s4367_s17 }
  0x17   :  { %160 = vrot.lane.b32.xlu0 %v4521_v55, %s4367_s17 }
  0x1a   :  { %166 = vrot.lane.b32.xlu1 %v4537_v62, %s4367_s17 }
  0x1b   :  { %164 = vrot.lane.b32.xlu0 %v4541_v1, %s4367_s17 }
  0x1e   :  { %170 = vrot.lane.b32.xlu1 %v4557_v8, %s4367_s17 }
  0x1f   :  { %168 = vrot.lane.b32.xlu0 %v4561_v11, %s4367_s17 }
  0x22   :  { %174 = vrot.lane.b32.xlu1 %v4577_v19, %s4367_s17 }
  0x23   :  { %172 = vrot.lane.b32.xlu0 %v4581_v24, %s4367_s17 }
  0x26   :  { %178 = vrot.lane.b32.xlu1 %v4585_v28, %s4367_s17 }
  0x27   :  { %176 = vrot.lane.b32.xlu0 %v4589_v29, %s4367_s17 }
  0x2a   :  { %216 = vrot.lane.b32.xlu1 %v4461_v25, %s4368_s18 }
  0x2b   :  { %214 = vrot.lane.b32.xlu0 %v4453_v21, %s4368_s18 }
  0x2e   :  { %220 = vrot.lane.b32.xlu1 %v4457_v22, %s4368_s18 }
  0x2f   :  { %218 = vrot.lane.b32.xlu0 %v4442_v15, %s4368_s18 }
  0x32   :  { %224 = vrot.lane.b32.xlu1 %v4477_v32, %s4368_s18 }
  0x33   :  { %222 = vrot.lane.b32.xlu0 %v4481_v35, %s4368_s18 }
  0x36   :  { %228 = vrot.lane.b32.xlu1 %v4497_v42, %s4368_s18 }
  0x37   :  { %226 = vrot.lane.b32.xlu0 %v4501_v45, %s4368_s18 }
  0x3a   :  { %232 = vrot.lane.b32.xlu1 %v4517_v52, %s4368_s18 }
  0x3b   :  { %230 = vrot.lane.b32.xlu0 %v4521_v55, %s4368_s18 }
  0x3e   :  { %236 = vrot.lane.b32.xlu1 %v4537_v62, %s4368_s18 }
  0x3f   :  { %234 = vrot.lane.b32.xlu0 %v4541_v1, %s4368_s18 }
  0x42   :  { %240 = vrot.lane.b32.xlu1 %v4557_v8, %s4368_s18 }
  0x43   :  { %238 = vrot.lane.b32.xlu0 %v4561_v11, %s4368_s18 }
  0x46   :  { %244 = vrot.lane.b32.xlu1 %v4577_v19, %s4368_s18 }
  0x47   :  { %242 = vrot.lane.b32.xlu0 %v4581_v24, %s4368_s18 }
  0x4a   :  { %248 = vrot.lane.b32.xlu1 %v4585_v28, %s4368_s18 }
  0x4b   :  { %246 = vrot.lane.b32.xlu0 %v4589_v29, %s4368_s18 }
  0x4e   :  { %286 = vrot.lane.b32.xlu1 %v4461_v25, %s4369_s19 }
  0x4f   :  { %284 = vrot.lane.b32.xlu0 %v4453_v21, %s4369_s19 }
  0x52   :  { %290 = vrot.lane.b32.xlu1 %v4457_v22, %s4369_s19 }
  0x53   :  { %288 = vrot.lane.b32.xlu0 %v4442_v15, %s4369_s19 }
  0x56   :  { %294 = vrot.lane.b32.xlu1 %v4477_v32, %s4369_s19 }
  0x57   :  { %292 = vrot.lane.b32.xlu0 %v4481_v35, %s4369_s19 }
  0x5a   :  { %298 = vrot.lane.b32.xlu1 %v4497_v42, %s4369_s19 }
  0x5b   :  { %296 = vrot.lane.b32.xlu0 %v4501_v45, %s4369_s19 }
  0x5e   :  { %302 = vrot.lane.b32.xlu1 %v4517_v52, %s4369_s19 }
  0x5f   :  { %300 = vrot.lane.b32.xlu0 %v4521_v55, %s4369_s19 }
  0x62   :  { %306 = vrot.lane.b32.xlu1 %v4537_v62, %s4369_s19 }
  0x63   :  { %304 = vrot.lane.b32.xlu0 %v4541_v1, %s4369_s19 }
  0x66   :  { %310 = vrot.lane.b32.xlu1 %v4557_v8, %s4369_s19 }
  0x67   :  { %308 = vrot.lane.b32.xlu0 %v4561_v11, %s4369_s19 }
  0x6a   :  { %314 = vrot.lane.b32.xlu1 %v4577_v19, %s4369_s19 }
  0x6b   :  { %312 = vrot.lane.b32.xlu0 %v4581_v24, %s4369_s19 }
  0x6e   :  { %318 = vrot.lane.b32.xlu1 %v4585_v28, %s4369_s19 }
  0x6f   :  { %316 = vrot.lane.b32.xlu0 %v4589_v29, %s4369_s19 }
  0x72   :  { %356 = vrot.lane.b32.xlu1 %v4461_v25, %s4370_s20 }
  0x73   :  { %354 = vrot.lane.b32.xlu0 %v4453_v21, %s4370_s20 }
  0x76   :  { %360 = vrot.lane.b32.xlu1 %v4457_v22, %s4370_s20 }
  0x77   :  { %358 = vrot.lane.b32.xlu0 %v4442_v15, %s4370_s20 }
  0x78   :  { %v4675_v30 = vpop.permute.xlu1 %148 }
  0x79   :  { %v4677_v31 = vpop.permute.xlu0 %144 }
  0x7a   :  { %364 = vrot.lane.b32.xlu1 %v4477_v32, %s4370_s20 }
  0x7b   :  { %362 = vrot.lane.b32.xlu0 %v4481_v35, %s4370_s20 }
  0x7c   :  { %v4683_v33 = vpop.permute.xlu1 %150 }
  0x7d   :  { %9005 = vst [vmem:[#allocation8_spill] sm:$0xff] %v4683_v33  ;;  %v4685_v34 = vpop.permute.xlu0 %146 }
  0x7e   :  { %368 = vrot.lane.b32.xlu1 %v4497_v42, %s4370_s20  ;;  %v4843_v23 = vsel %vm180_vm1, %v4685_v34, %v4675_v30  ;;  %v4855_v27 = vsel %vm180_vm1, %v4677_v31, %v4685_v34 }
  0x7f   :  { %366 = vrot.lane.b32.xlu0 %v4501_v45, %s4370_s20 }
  0x80   :  { %v4691_v36 = vpop.permute.xlu1 %154 }
  0x81   :  { %9006 = vst [vmem:[#allocation9_spill] sm:$0xff] %v4691_v36  ;;  %v4693_v37 = vpop.permute.xlu0 %152 }
  0x82   :  { %9007 = vst [vmem:[#allocation10_spill] sm:$0xff] %v4693_v37  ;;  %372 = vrot.lane.b32.xlu1 %v4517_v52, %s4370_s20 }
  0x83   :  { %370 = vrot.lane.b32.xlu0 %v4521_v55, %s4370_s20 }
  0x84   :  { %v4699_v38 = vpop.permute.xlu1 %158 }
  0x85   :  { %v4701_v39 = vpop.permute.xlu0 %156 }
  0x86   :  { %376 = vrot.lane.b32.xlu1 %v4537_v62, %s4370_s20  ;;  %v4835_v18 = vsel %vm180_vm1, %v4701_v39, %v4699_v38 }
  0x87   :  { %374 = vrot.lane.b32.xlu0 %v4541_v1, %s4370_s20 }
  0x88   :  { %v4707_v40 = vpop.permute.xlu1 %162 }
  0x89   :  { %9008 = vst [vmem:[#allocation11_spill] sm:$0xff] %v4707_v40  ;;  %v4709_v41 = vpop.permute.xlu0 %160 }
  0x8a   :  { %380 = vrot.lane.b32.xlu1 %v4557_v8, %s4370_s20  ;;  %v4823_v16 = vsel %vm180_vm1, %v4699_v38, %v4709_v41 }
  0x8b   :  { %378 = vrot.lane.b32.xlu0 %v4561_v11, %s4370_s20 }
  0x8c   :  { %v4715_v43 = vpop.permute.xlu1 %166 }
  0x8d   :  { %9009 = vst [vmem:[#allocation12_spill] sm:$0xff] %v4715_v43  ;;  %v4717_v44 = vpop.permute.xlu0 %164 }
  0x8e   :  { %9010 = vst [vmem:[#allocation13_spill] sm:$0xff] %v4717_v44  ;;  %384 = vrot.lane.b32.xlu1 %v4577_v19, %s4370_s20 }
  0x8f   :  { %382 = vrot.lane.b32.xlu0 %v4581_v24, %s4370_s20 }
  0x90   :  { %v171_v46 = vpop.permute.xlu1 %170 }
  0x91   :  { %v169_v47 = vpop.permute.xlu0 %168 }
  0x92   :  { %388 = vrot.lane.b32.xlu1 %v4585_v28, %s4370_s20  ;;  %v4815_v13 = vsel %vm180_vm1, %v169_v47, %v171_v46 }
  0x93   :  { %386 = vrot.lane.b32.xlu0 %v4589_v29, %s4370_s20 }
  0x94   :  { %v4727_v48 = vpop.permute.xlu1 %174 }
  0x95   :  { %9011 = vst [vmem:[#allocation14_spill] sm:$0xff] %v4727_v48  ;;  %v4729_v49 = vpop.permute.xlu0 %172 }
  0x96   :  { %426 = vrot.lane.b32.xlu1 %v4461_v25, %s4371_s21  ;;  %v4805_v10 = vsel %vm180_vm1, %v171_v46, %v4729_v49 }
  0x97   :  { %424 = vrot.lane.b32.xlu0 %v4453_v21, %s4371_s21 }
  0x98   :  { %v4735_v50 = vpop.permute.xlu1 %178 }
  0x99   :  { %9012 = vst [vmem:[#allocation15_spill] sm:$0xff] %v4735_v50  ;;  %v4737_v51 = vpop.permute.xlu0 %176 }
  0x9a   :  { %9013 = vst [vmem:[#allocation16_spill] sm:$0xff] %v4737_v51  ;;  %430 = vrot.lane.b32.xlu1 %v4457_v22, %s4371_s21 }
  0x9b   :  { %428 = vrot.lane.b32.xlu0 %v4442_v15, %s4371_s21 }
  0x9c   :  { %v217_v53 = vpop.permute.xlu1 %216 }
  0x9d   :  { %v215_v54 = vpop.permute.xlu0 %214 }
  0x9e   :  { %434 = vrot.lane.b32.xlu1 %v4477_v32, %s4371_s21  ;;  %v4798_v7 = vsel %vm250_vm0, %v215_v54, %v217_v53 }
  0x9f   :  { %432 = vrot.lane.b32.xlu0 %v4481_v35, %s4371_s21 }
  0xa0   :  { %v4747_v56 = vpop.permute.xlu1 %220 }
  0xa1   :  { %9014 = vst [vmem:[#allocation17_spill] sm:$0xff] %v4747_v56  ;;  %v4749_v57 = vpop.permute.xlu0 %218 }
  0xa2   :  { %438 = vrot.lane.b32.xlu1 %v4497_v42, %s4371_s21  ;;  %v4788_v5 = vsel %vm250_vm0, %v217_v53, %v4749_v57 }
  0xa3   :  { %436 = vrot.lane.b32.xlu0 %v4501_v45, %s4371_s21 }
  0xa4   :  { %v4755_v58 = vpop.permute.xlu1 %224 }
  0xa5   :  { %9015 = vst [vmem:[#allocation18_spill] sm:$0xff] %v4755_v58  ;;  %v4757_v59 = vpop.permute.xlu0 %222 }
  0xa6   :  { %9016 = vst [vmem:[#allocation19_spill] sm:$0xff] %v4757_v59  ;;  %442 = vrot.lane.b32.xlu1 %v4517_v52, %s4371_s21 }
  0xa7   :  { %440 = vrot.lane.b32.xlu0 %v4521_v55, %s4371_s21 }
  0xa8   :  { %v229_v60 = vpop.permute.xlu1 %228 }
  0xa9   :  { %v227_v61 = vpop.permute.xlu0 %226 }
  0xaa   :  { %446 = vrot.lane.b32.xlu1 %v4537_v62, %s4371_s21  ;;  %v4781_v3 = vsel %vm250_vm0, %v227_v61, %v229_v60 }
  0xab   :  { %444 = vrot.lane.b32.xlu0 %v4541_v1, %s4371_s21 }
  0xac   :  { %v4767_v63 = vpop.permute.xlu1 %232 }
  0xad   :  { %9017 = vst [vmem:[#allocation20_spill] sm:$0xff] %v4767_v63  ;;  %v4769_v0 = vpop.permute.xlu0 %230 }
  0xae   :  { %450 = vrot.lane.b32.xlu1 %v4557_v8, %s4371_s21  ;;  %v4775_v2 = vsel %vm250_vm0, %v229_v60, %v4769_v0 }
  0xaf   :  { %448 = vrot.lane.b32.xlu0 %v4561_v11, %s4371_s21  ;;  %2327 = vmatprep.subr.bf16.mxu0 %v4775_v2 }
  0xb0   :  { %2328 = vmatpush1.bf16.msra.mxu0 %v4781_v3  ;;  %v4784_v4 = vpop.permute.xlu1 %236 }
  0xb1   :  { %9018 = vst [vmem:[#allocation21_spill] sm:$0xff] %v4784_v4  ;;  %2329 = vmatprep.subr.bf16.mxu0 %v4788_v5  ;;  %v4791_v6 = vpop.permute.xlu0 %234 }
  0xb2   :  { %9019 = vst [vmem:[#allocation22_spill] sm:$0xff] %v4791_v6  ;;  %592 = vrot.lane.b32.xlu1 %v4581_v24, %s4372_s22 }
  0xb3   :  { %590 = vrot.lane.b32.xlu0 %v4557_v8, %s4372_s22 }
  0xb4   :  { %2330 = vmatpush1.bf16.msra.mxu0 %v4798_v7  ;;  %v4801_v9 = vpop.permute.xlu1 %240 }
  0xb5   :  { %2331 = vmatprep.subr.bf16.mxu0 %v4805_v10  ;;  %v4808_v12 = vpop.permute.xlu0 %238 }
  0xb6   :  { %578 = vrot.lane.b32.xlu1 %v4497_v42, %s4372_s22 }
  0xb7   :  { %588 = vrot.lane.b32.xlu0 %v4561_v11, %s4372_s22 }
  0xb8   :  { %2332 = vmatpush1.bf16.msra.mxu0 %v4815_v13  ;;  %v4818_v14 = vpop.permute.xlu1 %244 }
  0xb9   :  { %9020 = vst [vmem:[#allocation23_spill] sm:$0xff] %v4818_v14  ;;  %2333 = vmatprep.subr.bf16.mxu0 %v4823_v16  ;;  %v4826_v17 = vpop.permute.xlu0 %242 }
  0xba   :  { %576 = vrot.lane.b32.xlu1 %v4501_v45, %s4372_s22 }
  0xbb   :  { %580 = vrot.lane.b32.xlu0 %v4521_v55, %s4372_s22 }
  0xbc   :  { %2334 = vmatpush1.bf16.msra.mxu0 %v4835_v18  ;;  %v4838_v20 = vpop.permute.xlu1 %248 }
  0xbd   :  { %9021 = vst [vmem:[#allocation24_spill] sm:$0xff] %v4838_v20  ;;  %2335 = vmatprep.subr.bf16.mxu0 %v4843_v23  ;;  %v4846_v26 = vpop.permute.xlu0 %246 }
  0xbe   :  { %9022 = vst [vmem:[#allocation25_spill] sm:$0xff] %v4846_v26  ;;  %568 = vrot.lane.b32.xlu1 %v4442_v15, %s4372_s22 }
  0xbf   :  { %566 = vrot.lane.b32.xlu0 %v4461_v25, %s4372_s22 }
  0xc0   :  { %2336 = vmatpush1.bf16.msra.mxu0 %v4855_v27  ;;  %v4858_v38 = vpop.permute.xlu1 %286 }
  0xc1   :  { %v4860_v39 = vpop.permute.xlu0 %284  ;;  %2337 = vmatprep.subr.bf16.mxu0 %v4557_v8 }
  0xc2   :  { %520 = vrot.lane.b32.xlu1 %v4557_v8, %s4373_s23 }
  0xc3   :  { %564 = vrot.lane.b32.xlu0 %v4453_v21, %s4372_s22 }
  0xc4   :  { %v4867_v46 = vpop.permute.xlu1 %290  ;;  %2338 = vmatpush1.bf16.msra.mxu0 %v4561_v11 }
  0xc5   :  { %9023 = vst [vmem:[#allocation26_spill] sm:$0xff] %v4867_v46  ;;  %v4870_v31 = vpop.permute.xlu0 %288  ;;  %2339 = vmatprep.subr.bf16.mxu0 %v4497_v42 }
  0xc6   :  { %518 = vrot.lane.b32.xlu1 %v4561_v11, %s4373_s23 }
  0xc7   :  { %522 = vrot.lane.b32.xlu0 %v4581_v24, %s4373_s23 }
  0xc8   :  { %v4877_v34 = vpop.permute.xlu1 %294  ;;  %2340 = vmatpush1.bf16.msra.mxu0 %v4501_v45 }
  0xc9   :  { %9024 = vst [vmem:[#allocation27_spill] sm:$0xff] %v4877_v34  ;;  %v4880_v47 = vpop.permute.xlu0 %292  ;;  %2341 = vmatprep.subr.bf16.mxu0 %v4461_v25 }
  0xca   :  { %9025 = vst [vmem:[#allocation28_spill] sm:$0xff] %v4880_v47  ;;  %510 = vrot.lane.b32.xlu1 %v4521_v55, %s4373_s23 }
  0xcb   :  { %508 = vrot.lane.b32.xlu0 %v4497_v42, %s4373_s23 }
  0xcc   :  { %v4887_v53 = vpop.permute.xlu1 %298  ;;  %2342 = vmatpush1.bf16.msra.mxu0 %v4453_v21 }
  0xcd   :  { %v4890_v54 = vpop.permute.xlu0 %296 }
  0xce   :  { %496 = vrot.lane.b32.xlu1 %v4461_v25, %s4373_s23 }
  0xcf   :  { %506 = vrot.lane.b32.xlu0 %v4501_v45, %s4373_s23 }
  0xd0   :  { %v4896_v60 = vpop.permute.xlu1 %302 }
  0xd1   :  { %9026 = vst [vmem:[#allocation29_spill] sm:$0xff] %v4896_v60  ;;  %v4898_v61 = vpop.permute.xlu0 %300 }
  0xd2   :  { %494 = vrot.lane.b32.xlu1 %v4453_v21, %s4373_s23 }
  0xd3   :  { %498 = vrot.lane.b32.xlu0 %v4442_v15, %s4373_s23 }
  0xd4   :  { %v4904_v20 = vpop.permute.xlu1 %306 }
  0xd5   :  { %9027 = vst [vmem:[#allocation30_spill] sm:$0xff] %v4904_v20  ;;  %v4906_v34 = vpop.permute.xlu0 %304 }
  0xd6   :  { %9028 = vst [vmem:[#allocation31_spill] sm:$0xff] %v4906_v34  ;;  %793 = vrot.lane.b32.xlu1 %v4497_v42, %s4374_s24 }
  0xd7   :  { %452 = vrot.lane.b32.xlu0 %v4581_v24, %s4371_s21 }
  0xd8   :  { %v4912_v36 = vpop.permute.xlu1 %310 }
  0xd9   :  { %v4914_v43 = vpop.permute.xlu0 %308 }
  0xda   :  { %791 = vrot.lane.b32.xlu1 %v4501_v45, %s4374_s24 }
  0xdb   :  { %795 = vrot.lane.b32.xlu0 %v4521_v55, %s4374_s24 }
  0xdc   :  { %v4920_v20 = vpop.permute.xlu1 %314 }
  0xdd   :  { %v4922_v50 = vpop.permute.xlu0 %312 }
  0xde   :  { %781 = vrot.lane.b32.xlu1 %v4442_v15, %s4374_s24 }
  0xdf   :  { %779 = vrot.lane.b32.xlu0 %v4461_v25, %s4374_s24 }
  0xe0   :  { %v4928_v58 = vpop.permute.xlu1 %318 }
  0xe1   :  { %9029 = vst [vmem:[#allocation32_spill] sm:$0xff] %v4928_v58  ;;  %v4930_v4 = vpop.permute.xlu0 %316 }
  0xe2   :  { %9030 = vst [vmem:[#allocation33_spill] sm:$0xff] %v4930_v4  ;;  %730 = vrot.lane.b32.xlu1 %v4557_v8, %s4375_s25 }
  0xe3   :  { %777 = vrot.lane.b32.xlu0 %v4453_v21, %s4374_s24 }
  0xe4   :  { %v4936_v26 = vpop.permute.xlu1 %356 }
  0xe5   :  { %v4938_v47 = vpop.permute.xlu0 %354 }
  0xe6   :  { %728 = vrot.lane.b32.xlu1 %v4561_v11, %s4375_s25 }
  0xe7   :  { %732 = vrot.lane.b32.xlu0 %v4581_v24, %s4375_s25 }
  0xe8   :  { %v4944_v58 = vpop.permute.xlu1 %360 }
  0xe9   :  { %9031 = vst [vmem:[#allocation34_spill] sm:$0xff] %v4944_v58  ;;  %v4946_v34 = vpop.permute.xlu0 %358 }
  0xea   :  { %9032 = vst [vmem:[#allocation35_spill] sm:$0xff] %v4946_v34  ;;  %1310 = vrot.lane.b32.xlu1 %v4581_v24, %s4376_s26 }
  0xeb   :  { %1308 = vrot.lane.b32.xlu0 %v4557_v8, %s4376_s26 }
  0xec   :  { %v4952_v4 = vpop.permute.xlu1 %364 }
  0xed   :  { %9033 = vst [vmem:[#allocation36_spill] sm:$0xff] %v4952_v4  ;;  %v4954_v37 = vpop.permute.xlu0 %362 }
  0xee   :  { %9034 = vst [vmem:[#allocation37_spill] sm:$0xff] %v4954_v37  ;;  %1306 = vrot.lane.b32.xlu1 %v4561_v11, %s4376_s26 }
  0xef   :  { %1312 = vrot.lane.b32.xlu0 %v4577_v19, %s4376_s26 }
  0xf0   :  { %v369_v58 = vpop.permute.xlu1 %368 }
  0xf1   :  { %v367_v44 = vpop.permute.xlu0 %366 }
  0xf2   :  { %720 = vrot.lane.b32.xlu1 %v4521_v55, %s4375_s25 }
  0xf3   :  { %718 = vrot.lane.b32.xlu0 %v4497_v42, %s4375_s25 }
  0xf4   :  { %v4964_v51 = vpop.permute.xlu1 %372 }
  0xf5   :  { %9035 = vst [vmem:[#allocation38_spill] sm:$0xff] %v4964_v51  ;;  %v4966_v59 = vpop.permute.xlu0 %370 }
  0xf6   :  { %9036 = vst [vmem:[#allocation39_spill] sm:$0xff] %v4966_v59  ;;  %1294 = vrot.lane.b32.xlu1 %v4497_v42, %s4376_s26 }
  0xf7   :  { %716 = vrot.lane.b32.xlu0 %v4501_v45, %s4375_s25 }
  0xf8   :  { %v4972_v4 = vpop.permute.xlu1 %376 }
  0xf9   :  { %9037 = vst [vmem:[#allocation40_spill] sm:$0xff] %v4972_v4  ;;  %v4974_v37 = vpop.permute.xlu0 %374 }
  0xfa   :  { %9038 = vst [vmem:[#allocation41_spill] sm:$0xff] %v4974_v37  ;;  %1298 = vrot.lane.b32.xlu1 %v4517_v52, %s4376_s26 }
  0xfb   :  { %1296 = vrot.lane.b32.xlu0 %v4521_v55, %s4376_s26 }
  0xfc   :  { %v381_v6 = vpop.permute.xlu1 %380 }
  0xfd   :  { %v379_v51 = vpop.permute.xlu0 %378 }
  0xfe   :  { %706 = vrot.lane.b32.xlu1 %v4461_v25, %s4375_s25 }
  0xff   :  { %1292 = vrot.lane.b32.xlu0 %v4501_v45, %s4376_s26 }
 0x100   :  { %v4984_v32 = vpop.permute.xlu1 %384 }
 0x101   :  { %9039 = vst [vmem:[#allocation42_spill] sm:$0xff] %v4984_v32  ;;  %v4986_v62 = vpop.permute.xlu0 %382 }
 0x102   :  { %9040 = vst [vmem:[#allocation43_spill] sm:$0xff] %v4986_v62  ;;  %704 = vrot.lane.b32.xlu1 %v4453_v21, %s4375_s25  ;;  %v402_v14 = vsel %vm390_vm3, %v381_v6, %v4986_v62 }
 0x103   :  { %708 = vrot.lane.b32.xlu0 %v4442_v15, %s4375_s25 }
 0x104   :  { %v4992_v4 = vpop.permute.xlu1 %388 }
 0x105   :  { %9041 = vst [vmem:[#allocation44_spill] sm:$0xff] %v4992_v4  ;;  %v4994_v37 = vpop.permute.xlu0 %386 }
 0x106   :  { %9042 = vst [vmem:[#allocation45_spill] sm:$0xff] %v4994_v37  ;;  %1282 = vrot.lane.b32.xlu1 %v4442_v15, %s4376_s26 }
 0x107   :  { %1280 = vrot.lane.b32.xlu0 %v4461_v25, %s4376_s26 }
 0x108   :  { %v427_v28 = vpop.permute.xlu1 %426 }
 0x109   :  { %v425_v32 = vpop.permute.xlu0 %424 }
 0x10a   :  { %1278 = vrot.lane.b32.xlu1 %v4453_v21, %s4376_s26  ;;  %v5018_v29 = vsel %vm460_vm2, %v425_v32, %v427_v28  ;;  %v401_v32 = vsel %vm390_vm3, %v379_v51, %v381_v6  ;;  %v392_v51 = vsel %vm390_vm3, %v4936_v26, %v4946_v34 }
 0x10b   :  { %1284 = vrot.lane.b32.xlu0 %v4457_v22, %s4376_s26 }
 0x10c   :  { %v5004_v35 = vpop.permute.xlu1 %430 }
 0x10d   :  { %v5006_v4 = vpop.permute.xlu0 %428 }
 0x10e   :  { %662 = vrot.lane.b32.xlu1 %v4581_v24, %s4377_s27  ;;  %v5012_v37 = vsel %vm460_vm2, %v427_v28, %v5006_v4 }
 0x10f   :  { %660 = vrot.lane.b32.xlu0 %v4557_v8, %s4377_s27  ;;  %2343 = vmatprep.subr.bf16.mxu0 %v5012_v37 }
 0x110   :  { %2344 = vmatpush2.bf16.msra.mxu0 %v5018_v29  ;;  %v5021_v1 = vpop.permute.xlu1 %434 }
 0x111   :  { %9043 = vst [vmem:[#allocation46_spill] sm:$0xff] %v5021_v1  ;;  %2345 = vmatprep.subr.bf16.mxu0 %v402_v14  ;;  %v5025_v46 = vpop.permute.xlu0 %432  ;;  %v397_v1 = vsel %vm390_vm3, %v369_v58, %v4966_v59  ;;  %v396_v14 = vsel %vm390_vm3, %v367_v44, %v369_v58  ;;  %v391_v44 = vsel %vm390_vm3, %v4938_v47, %v4936_v26 }
 0x112   :  { %9044 = vst [vmem:[#allocation47_spill] sm:$0xff] %v5025_v46  ;;  %648 = vrot.lane.b32.xlu1 %v4497_v42, %s4377_s27  ;;  %v5080_v26 = vsel %vm320_vm4, %v4914_v43, %v4912_v36  ;;  %v4219_v46 = vld [vmem:[%s8732_s2] ss:$40 sps:$4 sm:$0xff]  }
 0x113   :  { %658 = vrot.lane.b32.xlu0 %v4561_v11, %s4377_s27 }
 0x114   :  { %2346 = vmatpush2.bf16.msra.mxu0 %v401_v32  ;;  %v5032_v28 = vpop.permute.xlu1 %438  ;;  %v5065_v32 = vsel %vm320_vm4, %v4912_v36, %v4922_v50  ;;  %v5100_v36 = vsel %vm320_vm4, %v4890_v54, %v4887_v53 }
 0x115   :  { %2347 = vmatprep.subr.bf16.mxu0 %v397_v1  ;;  %v5036_v60 = vpop.permute.xlu0 %436  ;;  %v4217_v1 = vld [vmem:[%s8732_s2 + $0x4] ss:$40 sps:$4 sm:$0xff]  }
 0x116   :  { %646 = vrot.lane.b32.xlu1 %v4501_v45, %s4377_s27  ;;  %2359 = vmatprep.mubr.bf16.mxu0 %v4217_v1  ;;  %v5088_v1 = vsel %vm320_vm4, %v4887_v53, %v4898_v61  ;;  %v5116_v53 = vsel %vm250_vm0, %v4769_v0, %v4767_v63  ;;  %v5134_v0 = vsel %vm250_vm0, %v4801_v9, %v4826_v17 }
 0x117   :  { %650 = vrot.lane.b32.xlu0 %v4521_v55, %s4377_s27  ;;  %9049 = vst [vmem:[#allocation52_spill] sm:$0xff] %v5116_v53 }
 0x118   :  { %2348 = vmatpush2.bf16.msra.mxu0 %v396_v14  ;;  %v5043_v62 = vpop.permute.xlu1 %442  ;;  %v4220_v14 = vld [vmem:[%s8732_s2 + $0xc] ss:$40 sps:$4 sm:$0xff]  }
 0x119   :  { %9045 = vst [vmem:[#allocation48_spill] sm:$0xff] %v5043_v62  ;;  %2349 = vmatprep.subr.bf16.mxu0 %v392_v51  ;;  %v5051_v6 = vpop.permute.xlu0 %440  ;;  %2432 = vmatprep.mubr.bf16.mxu1 %v4220_v14  ;;  %v5108_v14 = vsel %vm320_vm4, %v4858_v38, %v4870_v31 }
 0x11a   :  { %9046 = vst [vmem:[#allocation49_spill] sm:$0xff] %v5051_v6  ;;  %638 = vrot.lane.b32.xlu1 %v4442_v15, %s4377_s27 }
 0x11b   :  { %636 = vrot.lane.b32.xlu0 %v4461_v25, %s4377_s27 }
 0x11c   :  { %2350 = vmatpush2.bf16.msra.mxu0 %v391_v44  ;;  %v5060_v58 = vpop.permute.xlu1 %446 }
 0x11d   :  { %9047 = vst [vmem:[#allocation50_spill] sm:$0xff] %v5060_v58  ;;  %2351 = vmatprep.subr.bf16.mxu0 %v5065_v32  ;;  %v5071_v51 = vpop.permute.xlu0 %444  ;;  %v5128_v58 = vsel %vm320_vm4, %v4860_v39, %v4858_v38  ;;  %v5148_v38 = vsel %vm250_vm0, %v4808_v12, %v4801_v9 }
 0x11e   :  { %9048 = vst [vmem:[#allocation51_spill] sm:$0xff] %v5071_v51  ;;  %1016 = vrot.lane.b32.xlu1 %v4461_v25, %s4378_s7 }
 0x11f   :  { %634 = vrot.lane.b32.xlu0 %v4453_v21, %s4377_s27 }
 0x120   :  { %2352 = vmatpush2.bf16.msra.mxu0 %v5080_v26  ;;  %v5083_v47 = vpop.permute.xlu1 %450 }
 0x121   :  { %2353 = vmatprep.subr.bf16.mxu0 %v5088_v1  ;;  %v5091_v44 = vpop.permute.xlu0 %448 }
 0x122   :  { %1475 = vrot.lane.b32.xlu1 %v4775_v2, %s4379_s8 }
 0x123   :  { %1018 = vrot.lane.b32.xlu0 %v4442_v15, %s4378_s7 }
 0x124   :  { %2354 = vmatpush2.bf16.msra.mxu0 %v5100_v36  ;;  %v5103_v43 = vpop.permute.xlu1 %592 }
 0x125   :  { %2355 = vmatprep.subr.bf16.mxu0 %v5108_v14  ;;  %v591_v2 = vpop.permute.xlu0 %590 }
 0x126   :  { %1014 = vrot.lane.b32.xlu1 %v4453_v21, %s4378_s7  ;;  %v5120_v54 = vsel %vm8874_vm5, %v591_v2, %v5103_v43 }
 0x127   :  { %1477 = vrot.lane.b32.xlu0 %v5116_v53, %s4379_s8  ;;  %2400 = vmatprep.subr.bf16.mxu1 %v5120_v54 }
 0x128   :  { %2356 = vmatpush2.bf16.msra.mxu0 %v5128_v58  ;;  %v579_v51 = vpop.permute.xlu1 %578 }
 0x129   :  { %2357 = vmatprep.subr.bf16.mxu0 %v5134_v0  ;;  %v589_v34 = vpop.permute.xlu0 %588 }
 0x12a   :  { %965 = vrot.lane.b32.xlu1 %v4557_v8, %s4380_s9  ;;  %v5140_v59 = vsel %vm8874_vm5, %v589_v34, %v591_v2 }
 0x12b   :  { %1473 = vrot.lane.b32.xlu0 %v4781_v3, %s4379_s8  ;;  %2401 = vmatpush1.bf16.msra.mxu1 %v5140_v59 }
 0x12c   :  { %2358 = vmatpush2.bf16.msra.mxu0 %v5148_v38  ;;  %v577_v39 = vpop.permute.xlu1 %576 }
 0x12d   :  { %v5154_v53 = vpop.permute.xlu0 %580  ;;  %v5157_v34 = vsel %vm8874_vm5, %v577_v39, %v579_v51 }
 0x12e   :  { %1461 = vrot.lane.b32.xlu1 %v4788_v5, %s4379_s8  ;;  %v5163_v3 = vsel %vm8874_vm5, %v579_v51, %v5154_v53  ;;  %v5176_v5 = vsel %vm250_vm0, %v4749_v57, %v4747_v56 }
 0x12f   :  { %967 = vrot.lane.b32.xlu0 %v4581_v24, %s4380_s9  ;;  %2402 = vmatprep.subr.bf16.mxu1 %v5163_v3  ;;  %9050 = vst [vmem:[#allocation53_spill] sm:$0xff] %v5176_v5 }
 0x130   :  { %v5168_v9 = vpop.permute.xlu1 %568  ;;  %2403 = vmatpush1.bf16.msra.mxu1 %v5157_v34  ;;  %2360 = vmatmul.mubr.bf16.vlgmr.msra.gmra.mxu0 %v4219_v46 }
 0x131   :  { %v567_v12 = vpop.permute.xlu0 %566 }
 0x132   :  { %594 = vrot.lane.b32.xlu1 %v4577_v19, %s4372_s22  ;;  %v5180_v51 = vsel %vm8874_vm5, %v567_v12, %v5168_v9 }
 0x133   :  { %1463 = vrot.lane.b32.xlu0 %v5176_v5, %s4379_s8  ;;  %2404 = vmatprep.subr.bf16.mxu1 %v5180_v51 }
 0x134   :  { %v521_v2 = vpop.permute.xlu1 %520 }
 0x135   :  { %v565_v46 = vpop.permute.xlu0 %564 }
 0x136   :  { %1459 = vrot.lane.b32.xlu1 %v4798_v7, %s4379_s8  ;;  %v5188_v39 = vsel %vm8874_vm5, %v565_v46, %v567_v12 }
 0x137   :  { %963 = vrot.lane.b32.xlu0 %v4561_v11, %s4380_s9  ;;  %2405 = vmatpush1.bf16.msra.mxu1 %v5188_v39 }
 0x138   :  { %v519_v57 = vpop.permute.xlu1 %518 }
 0x139   :  { %v5193_v56 = vpop.permute.xlu0 %522  ;;  %v5196_v5 = vsel %vm530_vm6, %v519_v57, %v521_v2  ;;  %v5213_v57 = vsel %vm180_vm1, %v4729_v49, %v4727_v48 }
 0x13a   :  { %953 = vrot.lane.b32.xlu1 %v4521_v55, %s4380_s9  ;;  %v5202_v7 = vsel %vm530_vm6, %v521_v2, %v5193_v56  ;;  %9052 = vst [vmem:[#allocation55_spill] sm:$0xff] %v5213_v57 }
 0x13b   :  { %951 = vrot.lane.b32.xlu0 %v4497_v42, %s4380_s9  ;;  %2406 = vmatprep.subr.bf16.mxu1 %v5202_v7 }
 0x13c   :  { %v5207_v12 = vpop.permute.xlu1 %510  ;;  %2407 = vmatpush1.bf16.msra.mxu1 %v5196_v5 }
 0x13d   :  { %9051 = vst [vmem:[#allocation54_spill] sm:$0xff] %v5207_v12  ;;  %v509_v46 = vpop.permute.xlu0 %508 }
 0x13e   :  { %1449 = vrot.lane.b32.xlu1 %v5213_v57, %s4379_s8  ;;  %v5219_v2 = vsel %vm530_vm6, %v509_v46, %v5207_v12 }
 0x13f   :  { %1447 = vrot.lane.b32.xlu0 %v4805_v10, %s4379_s8  ;;  %2408 = vmatprep.subr.bf16.mxu1 %v5219_v2 }
 0x140   :  { %v497_v63 = vpop.permute.xlu1 %496 }
 0x141   :  { %v507_v62 = vpop.permute.xlu0 %506 }
 0x142   :  { %949 = vrot.lane.b32.xlu1 %v4501_v45, %s4380_s9  ;;  %v5227_v49 = vsel %vm530_vm6, %v507_v62, %v509_v46 }
 0x143   :  { %582 = vrot.lane.b32.xlu0 %v4517_v52, %s4372_s22  ;;  %2409 = vmatpush1.bf16.msra.mxu1 %v5227_v49 }
 0x144   :  { %v495_v57 = vpop.permute.xlu1 %494 }
 0x145   :  { %v5232_v48 = vpop.permute.xlu0 %498  ;;  %v5235_v10 = vsel %vm530_vm6, %v495_v57, %v497_v63 }
 0x146   :  { %9053 = vst [vmem:[#allocation56_spill] sm:$0xff] %v5235_v10  ;;  %937 = vrot.lane.b32.xlu1 %v4461_v25, %s4380_s9  ;;  %v5241_v12 = vsel %vm530_vm6, %v497_v63, %v5232_v48  ;;  %v5262_v63 = vsel %vm460_vm2, %v5091_v44, %v5083_v47  ;;  %v5285_v44 = vsel %vm460_vm2, %v5036_v60, %v5032_v28 }
 0x147   :  { %9054 = vst [vmem:[#allocation57_spill] sm:$0xff] %v5241_v12  ;;  %1445 = vrot.lane.b32.xlu0 %v4815_v13, %s4379_s8  ;;  %2410 = vmatprep.subr.bf16.mxu1 %v5241_v12  ;;  %9057 = vst [vmem:[#allocation60_spill] sm:$0xff] %v5262_v63 }
 0x148   :  { %2411 = vmatpush1.bf16.msra.mxu1 %v5235_v10  ;;  %v794_v62 = vpop.permute.xlu1 %793  ;;  %9061 = vst [vmem:[#allocation64_spill] sm:$0xff] %v5285_v44 }
 0x149   :  { %v5247_v46 = vpop.permute.xlu0 %452 }
 0x14a   :  { %9055 = vst [vmem:[#allocation58_spill] sm:$0xff] %v5247_v46  ;;  %1433 = vrot.lane.b32.xlu1 %v4823_v16, %s4379_s8  ;;  %v5254_v57 = vsel %vm460_vm2, %v5083_v47, %v5247_v46  ;;  %v5268_v16 = vsel %vm460_vm2, %v5032_v28, %v5051_v6  ;;  %v5278_v47 = vsel %vm180_vm1, %v4709_v41, %v4707_v40 }
 0x14b   :  { %9056 = vst [vmem:[#allocation59_spill] sm:$0xff] %v5254_v57  ;;  %939 = vrot.lane.b32.xlu0 %v4442_v15, %s4380_s9  ;;  %2412 = vmatprep.subr.bf16.mxu1 %v5254_v57  ;;  %9058 = vst [vmem:[#allocation61_spill] sm:$0xff] %v5268_v16 }
 0x14c   :  { %2413 = vmatpush1.bf16.msra.mxu1 %v5262_v63  ;;  %v792_v13 = vpop.permute.xlu1 %791  ;;  %9060 = vst [vmem:[#allocation63_spill] sm:$0xff] %v5278_v47 }
 0x14d   :  { %2414 = vmatprep.subr.bf16.mxu1 %v5268_v16  ;;  %v5271_v46 = vpop.permute.xlu0 %795  ;;  %v826_v41 = vsel %vm819_vm7, %v792_v13, %v794_v62  ;;  %v5309_v13 = vsel %vm180_vm1, %v4675_v30, %v4683_v33 }
 0x14e   :  { %9059 = vst [vmem:[#allocation62_spill] sm:$0xff] %v5271_v46  ;;  %570 = vrot.lane.b32.xlu1 %v4457_v22, %s4372_s22  ;;  %v827_v6 = vsel %vm819_vm7, %v794_v62, %v5271_v46  ;;  %9064 = vst [vmem:[#allocation67_spill] sm:$0xff] %v5309_v13 }
 0x14f   :  { %1435 = vrot.lane.b32.xlu0 %v5278_v47, %s4379_s8 }
 0x150   :  { %2415 = vmatpush1.bf16.msra.mxu1 %v5285_v44  ;;  %v5288_v16 = vpop.permute.xlu1 %781 }
 0x151   :  { %9062 = vst [vmem:[#allocation65_spill] sm:$0xff] %v5288_v16  ;;  %2416 = vmatprep.subr.bf16.mxu1 %v827_v6  ;;  %v780_v63 = vpop.permute.xlu0 %779 }
 0x152   :  { %1431 = vrot.lane.b32.xlu1 %v4835_v18, %s4379_s8  ;;  %v821_v28 = vsel %vm819_vm7, %v780_v63, %v5288_v16 }
 0x153   :  { %935 = vrot.lane.b32.xlu0 %v4453_v21, %s4380_s9 }
 0x154   :  { %2417 = vmatpush2.bf16.msra.mxu1 %v826_v41  ;;  %v731_v60 = vpop.permute.xlu1 %730 }
 0x155   :  { %2418 = vmatprep.subr.bf16.mxu1 %v821_v28  ;;  %v778_v47 = vpop.permute.xlu0 %777 }
 0x156   :  { %888 = vrot.lane.b32.xlu1 %v4581_v24, %s4381_s12  ;;  %v820_v6 = vsel %vm819_vm7, %v778_v47, %v780_v63 }
 0x157   :  { %886 = vrot.lane.b32.xlu0 %v4557_v8, %s4381_s12 }
 0x158   :  { %2419 = vmatpush2.bf16.msra.mxu1 %v820_v6  ;;  %v729_v18 = vpop.permute.xlu1 %728 }
 0x159   :  { %v5304_v62 = vpop.permute.xlu0 %732  ;;  %v751_v41 = vsel %vm740_vm8, %v729_v18, %v731_v60 }
 0x15a   :  { %9063 = vst [vmem:[#allocation66_spill] sm:$0xff] %v5304_v62  ;;  %1421 = vrot.lane.b32.xlu1 %v5309_v13, %s4379_s8  ;;  %v752_v63 = vsel %vm740_vm8, %v731_v60, %v5304_v62 }
 0x15b   :  { %1419 = vrot.lane.b32.xlu0 %v4843_v23, %s4379_s8  ;;  %2420 = vmatprep.subr.bf16.mxu1 %v752_v63 }
 0x15c   :  { %v5318_v47 = vpop.permute.xlu1 %1310  ;;  %2421 = vmatpush2.bf16.msra.mxu1 %v751_v41 }
 0x15d   :  { %v5320_v28 = vpop.permute.xlu0 %1308 }
 0x15e   :  { %884 = vrot.lane.b32.xlu1 %v4561_v11, %s4381_s12 }
 0x15f   :  { %524 = vrot.lane.b32.xlu0 %v4577_v19, %s4373_s23 }
 0x160   :  { %v5326_v30 = vpop.permute.xlu1 %1306 }
 0x161   :  { %v5328_v6 = vpop.permute.xlu0 %1312 }
 0x162   :  { %9065 = vst [vmem:[#allocation68_spill] sm:$0xff] %v5328_v6  ;;  %872 = vrot.lane.b32.xlu1 %v4497_v42, %s4381_s12 }
 0x163   :  { %1417 = vrot.lane.b32.xlu0 %v4855_v27, %s4379_s8 }
 0x164   :  { %v5334_v23 = vpop.permute.xlu1 %720 }
 0x165   :  { %9066 = vst [vmem:[#allocation69_spill] sm:$0xff] %v5334_v23  ;;  %v719_v60 = vpop.permute.xlu0 %718 }
 0x166   :  { %1405 = vrot.lane.b32.xlu1 %v4557_v8, %s4379_s8  ;;  %v747_v18 = vsel %vm740_vm8, %v719_v60, %v5334_v23 }
 0x167   :  { %874 = vrot.lane.b32.xlu0 %v4521_v55, %s4381_s12  ;;  %2422 = vmatprep.subr.bf16.mxu1 %v747_v18 }
 0x168   :  { %v5342_v41 = vpop.permute.xlu1 %1294 }
 0x169   :  { %v717_v63 = vpop.permute.xlu0 %716 }
 0x16a   :  { %512 = vrot.lane.b32.xlu1 %v4517_v52, %s4373_s23  ;;  %v746_v27 = vsel %vm740_vm8, %v717_v63, %v719_v60 }
 0x16b   :  { %1407 = vrot.lane.b32.xlu0 %v4581_v24, %s4379_s8  ;;  %2423 = vmatpush2.bf16.msra.mxu1 %v746_v27 }
 0x16c   :  { %v5349_v62 = vpop.permute.xlu1 %1298 }
 0x16d   :  { %9067 = vst [vmem:[#allocation70_spill] sm:$0xff] %v5349_v62  ;;  %v5351_v16 = vpop.permute.xlu0 %1296 }
 0x16e   :  { %1403 = vrot.lane.b32.xlu1 %v4561_v11, %s4379_s8 }
 0x16f   :  { %870 = vrot.lane.b32.xlu0 %v4501_v45, %s4381_s12 }
 0x170   :  { %v707_v18 = vpop.permute.xlu1 %706 }
 0x171   :  { %v5357_v23 = vpop.permute.xlu0 %1292 }
 0x172   :  { %860 = vrot.lane.b32.xlu1 %v4442_v15, %s4381_s12 }
 0x173   :  { %858 = vrot.lane.b32.xlu0 %v4461_v25, %s4381_s12 }
 0x174   :  { %v705_v60 = vpop.permute.xlu1 %704 }
 0x175   :  { %v5363_v63 = vpop.permute.xlu0 %708  ;;  %v741_v27 = vsel %vm740_vm8, %v705_v60, %v707_v18 }
 0x176   :  { %9068 = vst [vmem:[#allocation71_spill] sm:$0xff] %v5363_v63  ;;  %1393 = vrot.lane.b32.xlu1 %v4521_v55, %s4379_s8  ;;  %v742_v46 = vsel %vm740_vm8, %v707_v18, %v5363_v63 }
 0x177   :  { %1391 = vrot.lane.b32.xlu0 %v4497_v42, %s4379_s8  ;;  %2424 = vmatprep.subr.bf16.mxu1 %v742_v46 }
 0x178   :  { %v5372_v13 = vpop.permute.xlu1 %1282  ;;  %2425 = vmatpush2.bf16.msra.mxu1 %v741_v27 }
 0x179   :  { %v5374_v33 = vpop.permute.xlu0 %1280 }
 0x17a   :  { %856 = vrot.lane.b32.xlu1 %v4453_v21, %s4381_s12 }
 0x17b   :  { %500 = vrot.lane.b32.xlu0 %v4457_v22, %s4373_s23 }
 0x17c   :  { %v5380_v60 = vpop.permute.xlu1 %1278 }
 0x17d   :  { %v5382_v40 = vpop.permute.xlu0 %1284 }
 0x17e   :  { %9069 = vst [vmem:[#allocation72_spill] sm:$0xff] %v5382_v40  ;;  %807 = vrot.lane.b32.xlu1 %v4557_v8, %s4374_s24 }
 0x17f   :  { %1389 = vrot.lane.b32.xlu0 %v4501_v45, %s4379_s8 }
 0x180   :  { %v5388_v46 = vpop.permute.xlu1 %662 }
 0x181   :  { %9070 = vst [vmem:[#allocation73_spill] sm:$0xff] %v5388_v46  ;;  %v661_v18 = vpop.permute.xlu0 %660 }
 0x182   :  { %1377 = vrot.lane.b32.xlu1 %v4461_v25, %s4379_s8  ;;  %v5394_v27 = vsel %vm670_vm9, %v661_v18, %v5388_v46 }
 0x183   :  { %9071 = vst [vmem:[#allocation74_spill] sm:$0xff] %v5394_v27  ;;  %809 = vrot.lane.b32.xlu0 %v4581_v24, %s4374_s24  ;;  %2426 = vmatprep.subr.bf16.mxu1 %v5394_v27 }
 0x184   :  { %v649_v63 = vpop.permute.xlu1 %648 }
 0x185   :  { %v659_v44 = vpop.permute.xlu0 %658 }
 0x186   :  { %454 = vrot.lane.b32.xlu1 %v4577_v19, %s4371_s21  ;;  %v5402_v10 = vsel %vm670_vm9, %v659_v44, %v661_v18 }
 0x187   :  { %9072 = vst [vmem:[#allocation75_spill] sm:$0xff] %v5402_v10  ;;  %1379 = vrot.lane.b32.xlu0 %v4442_v15, %s4379_s8  ;;  %2427 = vmatpush2.bf16.msra.mxu1 %v5402_v10 }
 0x188   :  { %v647_v46 = vpop.permute.xlu1 %646 }
 0x189   :  { %v5407_v57 = vpop.permute.xlu0 %650  ;;  %v5410_v12 = vsel %vm670_vm9, %v647_v46, %v649_v63 }
 0x18a   :  { %9073 = vst [vmem:[#allocation76_spill] sm:$0xff] %v5407_v57  ;;  %9074 = vst [vmem:[#allocation77_spill] sm:$0xff] %v5410_v12  ;;  %1375 = vrot.lane.b32.xlu1 %v4453_v21, %s4379_s8  ;;  %v5416_v27 = vsel %vm670_vm9, %v649_v63, %v5407_v57 }
 0x18b   :  { %9075 = vst [vmem:[#allocation78_spill] sm:$0xff] %v5416_v27  ;;  %805 = vrot.lane.b32.xlu0 %v4561_v11, %s4374_s24  ;;  %2428 = vmatprep.subr.bf16.mxu1 %v5416_v27 }
 0x18c   :  { %v5421_v44 = vpop.permute.xlu1 %638  ;;  %2429 = vmatpush2.bf16.msra.mxu1 %v5410_v12  ;;  %v5436_v12 = vsel %vm460_vm2, %v5006_v4, %v5004_v35 }
 0x18d   :  { %9076 = vst [vmem:[#allocation79_spill] sm:$0xff] %v5421_v44  ;;  %v637_v18 = vpop.permute.xlu0 %636 }
 0x18e   :  { %1204 = vrot.lane.b32.xlu1 %v4581_v24, %s4382_s13  ;;  %v5428_v46 = vsel %vm670_vm9, %v637_v18, %v5421_v44  ;;  %v4222_v44 = vld [vmem:[%s8732_s2 + $0x8] ss:$40 sps:$4 sm:$0xff]  }
 0x18f   :  { %9077 = vst [vmem:[#allocation80_spill] sm:$0xff] %v5428_v46  ;;  %1202 = vrot.lane.b32.xlu0 %v4557_v8, %s4382_s13  ;;  %2430 = vmatprep.subr.bf16.mxu1 %v5428_v46 }
 0x190   :  { %v1017_v63 = vpop.permute.xlu1 %1016 }
 0x191   :  { %v635_v27 = vpop.permute.xlu0 %634 }
 0x192   :  { %1589 = vrot.lane.b32.xlu1 %v5436_v12, %s4379_s8  ;;  %v5441_v57 = vsel %vm670_vm9, %v635_v27, %v637_v18 }
 0x193   :  { %1587 = vrot.lane.b32.xlu0 %v5012_v37, %s4379_s8  ;;  %2431 = vmatpush2.bf16.msra.mxu1 %v5441_v57 }
 0x194   :  { %v1476_v46 = vpop.permute.xlu1 %1475 }
 0x195   :  { %v5449_v10 = vpop.permute.xlu0 %1018 }
 0x196   :  { %9078 = vst [vmem:[#allocation81_spill] sm:$0xff] %v5449_v10  ;;  %1585 = vrot.lane.b32.xlu1 %v5018_v29, %s4379_s8  ;;  %v1058_v4 = vsel %vm1056_vm10, %v1017_v63, %v5449_v10  ;;  %2433 = vmatmul.mubr.bf16.vlgmr.msra.gmra.mxu1 %v4222_v44 }
 0x197   :  { %1200 = vrot.lane.b32.xlu0 %v4561_v11, %s4382_s13  ;;  %2473 = vmatprep.subr.bf16.mxu0 %v1058_v4 }
 0x198   :  { %v1015_v27 = vpop.permute.xlu1 %1014 }
 0x199   :  { %v1057_v37 = vsel %vm1056_vm10, %v1015_v27, %v1017_v63  ;;  %v5458_v18 = vpop.permute.xlu0 %1477  ;;  %v1335_v63 = vsel %vm8832_vm12, %v5318_v47, %v5328_v6 }
 0x19a   :  { %9079 = vst [vmem:[#allocation82_spill] sm:$0xff] %v5458_v18  ;;  %1190 = vrot.lane.b32.xlu1 %v4521_v55, %s4382_s13  ;;  %2474 = vmatpush1.bf16.msra.mxu0 %v1057_v37  ;;  %v1797_v29 = vsel %vm1753_vm11, %v1476_v46, %v5458_v18  ;;  %v1334_v37 = vsel %vm8832_vm12, %v5320_v28, %v5318_v47 }
 0x19b   :  { %1188 = vrot.lane.b32.xlu0 %v4497_v42, %s4382_s13  ;;  %2546 = vmatprep.subr.bf16.mxu1 %v1797_v29 }
 0x19c   :  { %v966_v44 = vpop.permute.xlu1 %965 }
 0x19d   :  { %v1474_v4 = vpop.permute.xlu0 %1473 }
 0x19e   :  { %v1796_v27 = vsel %vm1753_vm11, %v1474_v4, %v1476_v46  ;;  %1575 = vrot.lane.b32.xlu1 %v1335_v63, %s4379_s8  ;;  %v1333_v4 = vsel %vm8832_vm12, %v5326_v30, %v5320_v28 }
 0x19f   :  { %1573 = vrot.lane.b32.xlu0 %v1334_v37, %s4379_s8  ;;  %2547 = vmatpush1.bf16.msra.mxu1 %v1796_v27 }
 0x1a0   :  { %v1462_v18 = vpop.permute.xlu1 %1461 }
 0x1a1   :  { %v5475_v29 = vpop.permute.xlu0 %967 }
 0x1a2   :  { %9080 = vst [vmem:[#allocation83_spill] sm:$0xff] %v5475_v29  ;;  %1186 = vrot.lane.b32.xlu1 %v4501_v45, %s4382_s13  ;;  %v991_v6 = vsel %vm8875_vm13, %v966_v44, %v5475_v29  ;;  %v1328_v29 = vsel %vm8832_vm12, %v5342_v41, %v5351_v16 }
 0x1a3   :  { %664 = vrot.lane.b32.xlu0 %v4577_v19, %s4377_s27  ;;  %2475 = vmatprep.subr.bf16.mxu0 %v991_v6 }
 0x1a4   :  { %v5483_v47 = vpop.permute.xlu1 %594 }
 0x1a5   :  { %v5485_v46 = vpop.permute.xlu0 %1463 }
 0x1a6   :  { %9081 = vst [vmem:[#allocation84_spill] sm:$0xff] %v5485_v46  ;;  %1174 = vrot.lane.b32.xlu1 %v4461_v25, %s4382_s13  ;;  %v1791_v63 = vsel %vm1753_vm11, %v1462_v18, %v5485_v46  ;;  %v9116_v46 = vld [vmem:[#allocation73_spill] sm:$0xff] }
 0x1a7   :  { %1571 = vrot.lane.b32.xlu0 %v1333_v4, %s4379_s8  ;;  %2548 = vmatprep.subr.bf16.mxu1 %v1791_v63 }
 0x1a8   :  { %v1460_v27 = vpop.permute.xlu1 %1459 }
 0x1a9   :  { %v1790_v6 = vsel %vm1753_vm11, %v1460_v27, %v1462_v18  ;;  %v964_v37 = vpop.permute.xlu0 %963  ;;  %v1329_v18 = vsel %vm8832_vm12, %v5351_v16, %v5349_v62 }
 0x1aa   :  { %v990_v10 = vsel %vm8875_vm13, %v964_v37, %v966_v44  ;;  %1559 = vrot.lane.b32.xlu1 %v1328_v29, %s4379_s8  ;;  %2549 = vmatpush1.bf16.msra.mxu1 %v1790_v6  ;;  %v1323_v37 = vsel %vm8832_vm12, %v5372_v13, %v5382_v40 }
 0x1ab   :  { %1176 = vrot.lane.b32.xlu0 %v4442_v15, %s4382_s13  ;;  %2476 = vmatpush1.bf16.msra.mxu0 %v990_v10  ;;  %v1327_v10 = vsel %vm8832_vm12, %v5357_v23, %v5342_v41 }
 0x1ac   :  { %v5503_v28 = vpop.permute.xlu1 %953 }
 0x1ad   :  { %v952_v30 = vpop.permute.xlu0 %951 }
 0x1ae   :  { %652 = vrot.lane.b32.xlu1 %v4517_v52, %s4377_s27  ;;  %v985_v44 = vsel %vm8875_vm13, %v952_v30, %v5503_v28 }
 0x1af   :  { %1561 = vrot.lane.b32.xlu0 %v1329_v18, %s4379_s8  ;;  %2477 = vmatprep.subr.bf16.mxu0 %v985_v44 }
 0x1b0   :  { %v5513_v29 = vpop.permute.xlu1 %1449 }
 0x1b1   :  { %9082 = vst [vmem:[#allocation85_spill] sm:$0xff] %v5513_v29  ;;  %v1448_v4 = vpop.permute.xlu0 %1447 }
 0x1b2   :  { %1557 = vrot.lane.b32.xlu1 %v1327_v10, %s4379_s8  ;;  %v1785_v16 = vsel %vm1753_vm11, %v1448_v4, %v5513_v29 }
 0x1b3   :  { %1172 = vrot.lane.b32.xlu0 %v4453_v21, %s4382_s13  ;;  %2550 = vmatprep.subr.bf16.mxu1 %v1785_v16 }
 0x1b4   :  { %v950_v63 = vpop.permute.xlu1 %949 }
 0x1b5   :  { %v984_v27 = vsel %vm8875_vm13, %v950_v63, %v952_v30  ;;  %v5524_v6 = vpop.permute.xlu0 %582  ;;  %v1322_v30 = vsel %vm8832_vm12, %v5374_v33, %v5372_v13  ;;  %v1321_v63 = vsel %vm8832_vm12, %v5380_v60, %v5374_v33  ;;  %vm8862_vm12 = vcmask 539648  }
 0x1b6   :  { %1125 = vrot.lane.b32.xlu1 %v4581_v24, %s8889_s16  ;;  %2478 = vmatpush1.bf16.msra.mxu0 %v984_v27 }
 0x1b7   :  { %1123 = vrot.lane.b32.xlu0 %v4557_v8, %s8889_s16 }
 0x1b8   :  { %v938_v23 = vpop.permute.xlu1 %937 }
 0x1b9   :  { %v1446_v41 = vpop.permute.xlu0 %1445 }
 0x1ba   :  { %v1784_v18 = vsel %vm1753_vm11, %v1446_v41, %v1448_v4  ;;  %1547 = vrot.lane.b32.xlu1 %v1323_v37, %s4379_s8 }
 0x1bb   :  { %1545 = vrot.lane.b32.xlu0 %v1322_v30, %s4379_s8  ;;  %2551 = vmatpush1.bf16.msra.mxu1 %v1784_v18 }
 0x1bc   :  { %v1434_v44 = vpop.permute.xlu1 %1433 }
 0x1bd   :  { %v5539_v10 = vpop.permute.xlu0 %939 }
 0x1be   :  { %9083 = vst [vmem:[#allocation86_spill] sm:$0xff] %v5539_v10  ;;  %1121 = vrot.lane.b32.xlu1 %v4561_v11, %s8889_s16  ;;  %v979_v16 = vsel %vm8875_vm13, %v938_v23, %v5539_v10 }
 0x1bf   :  { %640 = vrot.lane.b32.xlu0 %v4457_v22, %s4377_s27  ;;  %2479 = vmatprep.subr.bf16.mxu0 %v979_v16  ;;  %v5570_v16 = vsel %vm320_vm4, %v4922_v50, %v4920_v20 }
 0x1c0   :  { %v5547_v4 = vpop.permute.xlu1 %570 }
 0x1c1   :  { %v5549_v13 = vpop.permute.xlu0 %1435 }
 0x1c2   :  { %9084 = vst [vmem:[#allocation87_spill] sm:$0xff] %v5549_v13  ;;  %1109 = vrot.lane.b32.xlu1 %v4497_v42, %s8889_s16  ;;  %v1779_v27 = vsel %vm1753_vm11, %v1434_v44, %v5549_v13 }
 0x1c3   :  { %1543 = vrot.lane.b32.xlu0 %v1321_v63, %s4379_s8  ;;  %2552 = vmatprep.subr.bf16.mxu1 %v1779_v27  ;;  %v4223_v27 = vld [vmem:[%s8732_s2 + $0x5c] ss:$40 sps:$4 sm:$0xff]  }
 0x1c4   :  { %v1432_v41 = vpop.permute.xlu1 %1431  ;;  %2442 = vmatprep.mubr.bf16.mxu1 %v4223_v27  ;;  %v4229_v27 = vld [vmem:[%s8732_s2 + $0xac] ss:$40 sps:$4 sm:$0xff]  }
 0x1c5   :  { %v1778_v37 = vsel %vm1753_vm11, %v1432_v41, %v1434_v44  ;;  %v936_v18 = vpop.permute.xlu0 %935 }
 0x1c6   :  { %v978_v30 = vsel %vm8875_vm13, %v936_v18, %v938_v23  ;;  %1531 = vrot.lane.b32.xlu1 %v5065_v32, %s4379_s8  ;;  %2553 = vmatpush1.bf16.msra.mxu1 %v1778_v37  ;;  %v4227_v18 = vld [vmem:[%s8732_s2 + $0x58] ss:$40 sps:$4 sm:$0xff]  }
 0x1c7   :  { %1111 = vrot.lane.b32.xlu0 %v4521_v55, %s8889_s16  ;;  %2480 = vmatpush1.bf16.msra.mxu0 %v978_v30 }
 0x1c8   :  { %v5565_v33 = vpop.permute.xlu1 %888  ;;  %2443 = vmatmul.mubr.bf16.gmra.mxu1 %v4227_v18  ;;  %v5641_v18 = vld [vmem:[%s8732_s2 + $0xa0] ss:$40 sps:$4 sm:$0xff]  }
 0x1c9   :  { %9085 = vst [vmem:[#allocation88_spill] sm:$0xff] %v5565_v33  ;;  %v887_v60 = vpop.permute.xlu0 %886  ;;  %2452 = vmatprep.mubr.bf16.mxu1 %v4229_v27  ;;  %v4235_v27 = vld [vmem:[%s8732_s2 + $0xfc] ss:$40 sps:$4 sm:$0xff]  }
 0x1ca   :  { %1107 = vrot.lane.b32.xlu1 %v4501_v45, %s8889_s16  ;;  %v912_v32 = vsel %vm898_vm14, %v887_v60, %v5565_v33 }
 0x1cb   :  { %1533 = vrot.lane.b32.xlu0 %v5570_v16, %s4379_s8  ;;  %2481 = vmatprep.subr.bf16.mxu0 %v912_v32 }
 0x1cc   :  { %v5578_v23 = vpop.permute.xlu1 %1421 }
 0x1cd   :  { %9086 = vst [vmem:[#allocation89_spill] sm:$0xff] %v5578_v23  ;;  %v1420_v44 = vpop.permute.xlu0 %1419 }
 0x1ce   :  { %1095 = vrot.lane.b32.xlu1 %v4461_v25, %s8889_s16  ;;  %v1773_v50 = vsel %vm1753_vm11, %v1420_v44, %v5578_v23  ;;  %v5595_v25 = vld [vmem:[%s8732_s2 + $0x54] ss:$40 sps:$4 sm:$0xff]  }
 0x1cf   :  { %1529 = vrot.lane.b32.xlu0 %v5080_v26, %s4379_s8  ;;  %2554 = vmatprep.subr.bf16.mxu1 %v1773_v50  ;;  %v5605_v26 = vld [vmem:[%s8732_s2 + $0x50] ss:$40 sps:$4 sm:$0xff]   ;;  %v5664_v23 = vld [vmem:[%s8732_s2 + $0xf4] ss:$40 sps:$4 sm:$0xff]  }
 0x1d0   :  { %v885_v63 = vpop.permute.xlu1 %884  ;;  %2369 = vmatprep.mubr.bf16.mxu0 %v5595_v25 }
 0x1d1   :  { %v911_v41 = vsel %vm898_vm14, %v885_v63, %v887_v60  ;;  %v5590_v37 = vpop.permute.xlu0 %524  ;;  %2370 = vmatmul.mubr.bf16.gmra.mxu0 %v5605_v26 }
 0x1d2   :  { %1517 = vrot.lane.b32.xlu1 %v5088_v1, %s4379_s8  ;;  %2482 = vmatpush1.bf16.msra.mxu0 %v911_v41  ;;  %v9087_v1 = vld [vmem:[#allocation29_spill] sm:$0xff] }
 0x1d3   :  { %1097 = vrot.lane.b32.xlu0 %v4442_v15, %s8889_s16  ;;  %v5617_v50 = vsel %vm320_vm4, %v4898_v61, %v9087_v1  ;;  %v4233_v61 = vld [vmem:[%s8732_s2 + $0xa8] ss:$40 sps:$4 sm:$0xff]  }
 0x1d4   :  { %v873_v30 = vpop.permute.xlu1 %872  ;;  %2453 = vmatmul.mubr.bf16.gmra.mxu1 %v4233_v61 }
 0x1d5   :  { %v1418_v60 = vpop.permute.xlu0 %1417  ;;  %2462 = vmatprep.mubr.bf16.mxu1 %v4235_v27 }
 0x1d6   :  { %v1772_v32 = vsel %vm1753_vm11, %v1418_v60, %v1420_v44  ;;  %1093 = vrot.lane.b32.xlu1 %v4453_v21, %s8889_s16  ;;  %v5629_v21 = vld [vmem:[%s8732_s2 + $0xa4] ss:$40 sps:$4 sm:$0xff]  }
 0x1d7   :  { %1519 = vrot.lane.b32.xlu0 %v5617_v50, %s4379_s8  ;;  %2555 = vmatpush1.bf16.msra.mxu1 %v1772_v32 }
 0x1d8   :  { %v1406_v63 = vpop.permute.xlu1 %1405  ;;  %2379 = vmatprep.mubr.bf16.mxu0 %v5629_v21 }
 0x1d9   :  { %v5624_v41 = vpop.permute.xlu0 %874  ;;  %2380 = vmatmul.mubr.bf16.gmra.mxu0 %v5641_v18 }
 0x1da   :  { %9088 = vst [vmem:[#allocation29_spill] sm:$0xff] %v5624_v41  ;;  %1044 = vrot.lane.b32.xlu1 %v4557_v8, %s4378_s7  ;;  %v906_v44 = vsel %vm898_vm14, %v873_v30, %v5624_v41  ;;  %2389 = vmatprep.mubr.bf16.mxu0 %v5664_v23  ;;  %v9154_v41 = vld [vmem:[#allocation11_spill] sm:$0xff] }
 0x1db   :  { %1515 = vrot.lane.b32.xlu0 %v5100_v36, %s4379_s8  ;;  %2483 = vmatprep.subr.bf16.mxu0 %v906_v44 }
 0x1dc   :  { %v5645_v60 = vpop.permute.xlu1 %512 }
 0x1dd   :  { %v5648_v32 = vpop.permute.xlu0 %1407 }
 0x1de   :  { %9089 = vst [vmem:[#allocation90_spill] sm:$0xff] %v5648_v32  ;;  %1503 = vrot.lane.b32.xlu1 %v5108_v14, %s4379_s8  ;;  %v1767_v8 = vsel %vm1753_vm11, %v1406_v63, %v5648_v32  ;;  %v4239_v14 = vld [vmem:[%s8732_s2 + $0xf8] ss:$40 sps:$4 sm:$0xff]  }
 0x1df   :  { %1046 = vrot.lane.b32.xlu0 %v4581_v24, %s4378_s7  ;;  %2556 = vmatprep.subr.bf16.mxu1 %v1767_v8  ;;  %v9090_v8 = vld [vmem:[#allocation26_spill] sm:$0xff] }
 0x1e0   :  { %v1404_v36 = vpop.permute.xlu1 %1403  ;;  %v5675_v13 = vsel %vm320_vm4, %v4870_v31, %v9090_v8  ;;  %2463 = vmatmul.mubr.bf16.gmra.mxu1 %v4239_v14 }
 0x1e1   :  { %v1766_v61 = vsel %vm1753_vm11, %v1404_v36, %v1406_v63  ;;  %v871_v44 = vpop.permute.xlu0 %870  ;;  %v4240_v63 = vld [vmem:[%s8732_s2 + $0xf0] ss:$40 sps:$4 sm:$0xff]  }
 0x1e2   :  { %v905_v32 = vsel %vm898_vm14, %v871_v44, %v873_v30  ;;  %1042 = vrot.lane.b32.xlu1 %v4561_v11, %s4378_s7  ;;  %2557 = vmatpush1.bf16.msra.mxu1 %v1766_v61  ;;  %v5699_v61 = vld [vmem:[%s8732_s2 + $0x14] ss:$40 sps:$4 sm:$0xff]  }
 0x1e3   :  { %1505 = vrot.lane.b32.xlu0 %v5675_v13, %s4379_s8  ;;  %2484 = vmatpush1.bf16.msra.mxu0 %v905_v32  ;;  %v4243_v32 = vld [vmem:[%s8732_s2 + $0x1c] ss:$40 sps:$4 sm:$0xff]  }
 0x1e4   :  { %v5682_v36 = vpop.permute.xlu1 %860  ;;  %2390 = vmatmul.mubr.bf16.gmra.mxu0 %v4240_v63  ;;  %2578 = vmatprep.mubr.bf16.mxu1 %v4243_v32  ;;  %v9093_v63 = vld [vmem:[#allocation23_spill] sm:$0xff] }
 0x1e5   :  { %9091 = vst [vmem:[#allocation26_spill] sm:$0xff] %v5682_v36  ;;  %v859_v11 = vpop.permute.xlu0 %858  ;;  %2505 = vmatprep.mubr.bf16.mxu0 %v5699_v61 }
 0x1e6   :  { %1030 = vrot.lane.b32.xlu1 %v4497_v42, %s4378_s7  ;;  %v900_v31 = vsel %vm898_vm14, %v859_v11, %v5682_v36  ;;  %v9153_v36 = vld [vmem:[#allocation13_spill] sm:$0xff] }
 0x1e7   :  { %1501 = vrot.lane.b32.xlu0 %v5128_v58, %s4379_s8  ;;  %2485 = vmatprep.subr.bf16.mxu0 %v900_v31  ;;  %v6070_v33 = vsel %vm180_vm1, %v9154_v41, %v9153_v36  ;;  %v4261_v41 = vld [vmem:[%s8732_s2 + $0xb8] ss:$40 sps:$4 sm:$0xff]  }
 0x1e8   :  { %v5691_v30 = vpop.permute.xlu1 %1393 }
 0x1e9   :  { %9092 = vst [vmem:[#allocation91_spill] sm:$0xff] %v5691_v30  ;;  %v1392_v27 = vpop.permute.xlu0 %1391 }
 0x1ea   :  { %1489 = vrot.lane.b32.xlu1 %v5134_v0, %s4379_s8  ;;  %v1761_v42 = vsel %vm1753_vm11, %v1392_v27, %v5691_v30  ;;  %v5716_v0 = vsel %vm250_vm0, %v4826_v17, %v9093_v63  ;;  %v5732_v17 = vsel %vm8874_vm5, %v5103_v43, %v5483_v47 }
 0x1eb   :  { %1032 = vrot.lane.b32.xlu0 %v4521_v55, %s4378_s7  ;;  %2558 = vmatprep.subr.bf16.mxu1 %v1761_v42 }
 0x1ec   :  { %v857_v58 = vpop.permute.xlu1 %856 }
 0x1ed   :  { %v899_v44 = vsel %vm898_vm14, %v857_v58, %v859_v11  ;;  %v5709_v14 = vpop.permute.xlu0 %500 }
 0x1ee   :  { %1028 = vrot.lane.b32.xlu1 %v4501_v45, %s4378_s7  ;;  %2486 = vmatpush1.bf16.msra.mxu0 %v899_v44 }
 0x1ef   :  { %1491 = vrot.lane.b32.xlu0 %v5716_v0, %s4379_s8 }
 0x1f0   :  { %v808_v31 = vpop.permute.xlu1 %807 }
 0x1f1   :  { %v1390_v32 = vpop.permute.xlu0 %1389 }
 0x1f2   :  { %v1760_v42 = vsel %vm1753_vm11, %v1390_v32, %v1392_v27  ;;  %1699 = vrot.lane.b32.xlu1 %v5120_v54, %s4379_s8 }
 0x1f3   :  { %1487 = vrot.lane.b32.xlu0 %v5148_v38, %s4379_s8  ;;  %2559 = vmatpush1.bf16.msra.mxu1 %v1760_v42 }
 0x1f4   :  { %v1378_v45 = vpop.permute.xlu1 %1377 }
 0x1f5   :  { %v5725_v11 = vpop.permute.xlu0 %809 }
 0x1f6   :  { %9094 = vst [vmem:[#allocation23_spill] sm:$0xff] %v5725_v11  ;;  %1697 = vrot.lane.b32.xlu1 %v5140_v59, %s4379_s8  ;;  %v833_v27 = vsel %vm819_vm7, %v808_v31, %v5725_v11  ;;  %v5745_v59 = vsel %vm8874_vm5, %v5154_v53, %v5524_v6  ;;  %v9151_v11 = vld [vmem:[#allocation14_spill] sm:$0xff] }
 0x1f7   :  { %1701 = vrot.lane.b32.xlu0 %v5732_v17, %s4379_s8  ;;  %2487 = vmatprep.subr.bf16.mxu0 %v833_v27 }
 0x1f8   :  { %v5738_v54 = vpop.permute.xlu1 %454 }
 0x1f9   :  { %v5740_v38 = vpop.permute.xlu0 %1379 }
 0x1fa   :  { %9095 = vst [vmem:[#allocation92_spill] sm:$0xff] %v5740_v38  ;;  %1687 = vrot.lane.b32.xlu1 %v5745_v59, %s4379_s8  ;;  %v1755_v43 = vsel %vm1753_vm11, %v1378_v45, %v5740_v38 }
 0x1fb   :  { %1685 = vrot.lane.b32.xlu0 %v5163_v3, %s4379_s8  ;;  %2560 = vmatprep.subr.bf16.mxu1 %v1755_v43  ;;  %v5764_v3 = vsel %vm8874_vm5, %v5168_v9, %v5547_v4 }
 0x1fc   :  { %v1376_v58 = vpop.permute.xlu1 %1375 }
 0x1fd   :  { %v1754_v44 = vsel %vm1753_vm11, %v1376_v58, %v1378_v45  ;;  %v806_v32 = vpop.permute.xlu0 %805  ;;  %v5777_v45 = vsel %vm530_vm6, %v5193_v56, %v5590_v37 }
 0x1fe   :  { %v832_v42 = vsel %vm819_vm7, %v806_v32, %v808_v31  ;;  %1671 = vrot.lane.b32.xlu1 %v5180_v51, %s4379_s8  ;;  %2561 = vmatpush1.bf16.msra.mxu1 %v1754_v44 }
 0x1ff   :  { %1683 = vrot.lane.b32.xlu0 %v5157_v34, %s4379_s8  ;;  %2488 = vmatpush1.bf16.msra.mxu0 %v832_v42 }
 0x200   :  { %v5759_v53 = vpop.permute.xlu1 %1204 }
 0x201   :  { %9096 = vst [vmem:[#allocation93_spill] sm:$0xff] %v5759_v53  ;;  %v1203_v27 = vpop.permute.xlu0 %1202 }
 0x202   :  { %1669 = vrot.lane.b32.xlu1 %v5188_v39, %s4379_s8  ;;  %v1228_v51 = vsel %vm1214_vm15, %v1203_v27, %v5759_v53  ;;  %v9139_v53 = vld [vmem:[#allocation2_spill] sm:$0xff] }
 0x203   :  { %1673 = vrot.lane.b32.xlu0 %v5764_v3, %s4379_s8  ;;  %2489 = vmatprep.subr.bf16.mxu0 %v1228_v51  ;;  %v5809_v51 = vsel %vm530_vm6, %v5232_v48, %v5709_v14  ;;  %v9104_v48 = vld [vmem:[#allocation56_spill] sm:$0xff] }
 0x204   :  { %v5772_v34 = vpop.permute.xlu1 %1589 }
 0x205   :  { %9097 = vst [vmem:[#allocation94_spill] sm:$0xff] %v5772_v34  ;;  %v1588_v31 = vpop.permute.xlu0 %1587 }
 0x206   :  { %1659 = vrot.lane.b32.xlu1 %v5777_v45, %s4379_s8  ;;  %v1845_v9 = vsel %vm1753_vm11, %v1588_v31, %v5772_v34  ;;  %v9114_v34 = vld [vmem:[#allocation64_spill] sm:$0xff] }
 0x207   :  { %1657 = vrot.lane.b32.xlu0 %v5202_v7, %s4379_s8  ;;  %2562 = vmatprep.subr.bf16.mxu1 %v1845_v9  ;;  %v9099_v7 = vld [vmem:[#allocation54_spill] sm:$0xff] }
 0x208   :  { %v1586_v39 = vpop.permute.xlu1 %1585  ;;  %v5796_v42 = vsel %vm530_vm6, %v9099_v7, %v5645_v60 }
 0x209   :  { %v1844_v43 = vsel %vm1753_vm11, %v1586_v39, %v1588_v31  ;;  %v1201_v58 = vpop.permute.xlu0 %1200  ;;  %v9101_v31 = vld [vmem:[#allocation57_spill] sm:$0xff] }
 0x20a   :  { %v1227_v44 = vsel %vm1214_vm15, %v1201_v58, %v1203_v27  ;;  %1643 = vrot.lane.b32.xlu1 %v5219_v2, %s4379_s8  ;;  %2563 = vmatpush2.bf16.msra.mxu1 %v1844_v43  ;;  %v9103_v58 = vld [vmem:[#allocation59_spill] sm:$0xff] }
 0x20b   :  { %1655 = vrot.lane.b32.xlu0 %v5196_v5, %s4379_s8  ;;  %2490 = vmatpush2.bf16.msra.mxu0 %v1227_v44 }
 0x20c   :  { %v5791_v56 = vpop.permute.xlu1 %1190 }
 0x20d   :  { %9098 = vst [vmem:[#allocation95_spill] sm:$0xff] %v5791_v56  ;;  %v1189_v32 = vpop.permute.xlu0 %1188 }
 0x20e   :  { %1641 = vrot.lane.b32.xlu1 %v5227_v49, %s4379_s8  ;;  %v1222_v27 = vsel %vm1214_vm15, %v1189_v32, %v5791_v56 }
 0x20f   :  { %1645 = vrot.lane.b32.xlu0 %v5796_v42, %s4379_s8  ;;  %2491 = vmatprep.subr.bf16.mxu0 %v1222_v27 }
 0x210   :  { %v5804_v5 = vpop.permute.xlu1 %1575 }
 0x211   :  { %9100 = vst [vmem:[#allocation54_spill] sm:$0xff] %v5804_v5  ;;  %v1574_v2 = vpop.permute.xlu0 %1573 }
 0x212   :  { %1631 = vrot.lane.b32.xlu1 %v5809_v51, %s4379_s8  ;;  %v1839_v49 = vsel %vm1753_vm11, %v1574_v2, %v5804_v5  ;;  %v9105_v5 = vld [vmem:[#allocation58_spill] sm:$0xff] }
 0x213   :  { %1629 = vrot.lane.b32.xlu0 %v9101_v31, %s4379_s8  ;;  %2564 = vmatprep.subr.bf16.mxu1 %v1839_v49  ;;  %v5828_v49 = vsel %vm460_vm2, %v9105_v5, %v5738_v54 }
 0x214   :  { %v1187_v9 = vpop.permute.xlu1 %1186 }
 0x215   :  { %v1221_v39 = vsel %vm1214_vm15, %v1187_v9, %v1189_v32  ;;  %v5818_v43 = vpop.permute.xlu0 %664  ;;  %v9106_v32 = vld [vmem:[#allocation60_spill] sm:$0xff] }
 0x216   :  { %9102 = vst [vmem:[#allocation57_spill] sm:$0xff] %v5818_v43  ;;  %1615 = vrot.lane.b32.xlu1 %v9103_v58, %s4379_s8  ;;  %2492 = vmatpush2.bf16.msra.mxu0 %v1221_v39  ;;  %v9108_v39 = vld [vmem:[#allocation48_spill] sm:$0xff]  ;;  %v9109_v58 = vld [vmem:[#allocation49_spill] sm:$0xff] }
 0x217   :  { %1627 = vrot.lane.b32.xlu0 %v9104_v48, %s4379_s8  ;;  %v5839_v48 = vsel %vm460_vm2, %v9109_v58, %v9108_v39 }
 0x218   :  { %v1175_v44 = vpop.permute.xlu1 %1174 }
 0x219   :  { %v1572_v7 = vpop.permute.xlu0 %1571 }
 0x21a   :  { %v1838_v27 = vsel %vm1753_vm11, %v1572_v7, %v1574_v2  ;;  %1613 = vrot.lane.b32.xlu1 %v9106_v32, %s4379_s8  ;;  %v9110_v2 = vld [vmem:[#allocation61_spill] sm:$0xff]  ;;  %v9113_v32 = vld [vmem:[#allocation74_spill] sm:$0xff] }
 0x21b   :  { %1617 = vrot.lane.b32.xlu0 %v5828_v49, %s4379_s8  ;;  %2565 = vmatpush2.bf16.msra.mxu1 %v1838_v27 }
 0x21c   :  { %v1560_v31 = vpop.permute.xlu1 %1559 }
 0x21d   :  { %v5834_v9 = vpop.permute.xlu0 %1176 }
 0x21e   :  { %9107 = vst [vmem:[#allocation59_spill] sm:$0xff] %v5834_v9  ;;  %1603 = vrot.lane.b32.xlu1 %v5839_v48, %s4379_s8  ;;  %v1216_v5 = vsel %vm1214_vm15, %v1175_v44, %v5834_v9 }
 0x21f   :  { %1601 = vrot.lane.b32.xlu0 %v9110_v2, %s4379_s8  ;;  %2493 = vmatprep.subr.bf16.mxu0 %v1216_v5  ;;  %v9115_v2 = vld [vmem:[#allocation75_spill] sm:$0xff] }
 0x220   :  { %v5847_v7 = vpop.permute.xlu1 %652 }
 0x221   :  { %9111 = vst [vmem:[#allocation56_spill] sm:$0xff] %v5847_v7  ;;  %v5849_v27 = vpop.permute.xlu0 %1561 }
 0x222   :  { %9112 = vst [vmem:[#allocation58_spill] sm:$0xff] %v5849_v27  ;;  %1741 = vrot.lane.b32.xlu1 %v9113_v32, %s4379_s8  ;;  %v1833_v58 = vsel %vm1753_vm11, %v1560_v31, %v5849_v27  ;;  %v5864_v32 = vsel %vm670_vm9, %v9116_v46, %v5818_v43  ;;  %v9147_v43 = vld [vmem:[#allocation17_spill] sm:$0xff] }
 0x223   :  { %1599 = vrot.lane.b32.xlu0 %v9114_v34, %s4379_s8  ;;  %2566 = vmatprep.subr.bf16.mxu1 %v1833_v58  ;;  %9117 = vst [vmem:[#allocation60_spill] sm:$0xff] %v5864_v32 }
 0x224   :  { %v1558_v38 = vpop.permute.xlu1 %1557 }
 0x225   :  { %v1832_v30 = vsel %vm1753_vm11, %v1558_v38, %v1560_v31  ;;  %v1173_v29 = vpop.permute.xlu0 %1172  ;;  %v9119_v31 = vld [vmem:[#allocation76_spill] sm:$0xff] }
 0x226   :  { %v1215_v5 = vsel %vm1214_vm15, %v1173_v29, %v1175_v44  ;;  %1739 = vrot.lane.b32.xlu1 %v9115_v2, %s4379_s8  ;;  %2567 = vmatpush2.bf16.msra.mxu1 %v1832_v30  ;;  %v5873_v29 = vsel %vm670_vm9, %v9119_v31, %v5847_v7  ;;  %v9121_v30 = vld [vmem:[#allocation78_spill] sm:$0xff]  ;;  %v9124_v31 = vld [vmem:[#allocation77_spill] sm:$0xff]  ;;  %v9143_v7 = vld [vmem:[#allocation20_spill] sm:$0xff] }
 0x227   :  { %1743 = vrot.lane.b32.xlu0 %v5864_v32, %s4379_s8  ;;  %2494 = vmatpush2.bf16.msra.mxu0 %v1215_v5  ;;  %9120 = vst [vmem:[#allocation49_spill] sm:$0xff] %v5873_v29  ;;  %v9123_v5 = vld [vmem:[#allocation80_spill] sm:$0xff]  ;;  %v9146_v32 = vld [vmem:[#allocation19_spill] sm:$0xff] }
 0x228   :  { %v5868_v34 = vpop.permute.xlu1 %1125  ;;  %v6028_v40 = vsel %vm250_vm0, %v9147_v43, %v9146_v32  ;;  %v4255_v43 = vld [vmem:[%s8732_s2 + $0x68] ss:$40 sps:$4 sm:$0xff]  }
 0x229   :  { %9118 = vst [vmem:[#allocation48_spill] sm:$0xff] %v5868_v34  ;;  %v1124_v38 = vpop.permute.xlu0 %1123 }
 0x22a   :  { %1729 = vrot.lane.b32.xlu1 %v5873_v29, %s4379_s8  ;;  %v1149_v46 = vsel %vm8862_vm12, %v1124_v38, %v5868_v34 }
 0x22b   :  { %1727 = vrot.lane.b32.xlu0 %v9121_v30, %s4379_s8  ;;  %2495 = vmatprep.subr.bf16.mxu0 %v1149_v46  ;;  %v9126_v46 = vld [vmem:[#allocation79_spill] sm:$0xff] }
 0x22c   :  { %v5881_v44 = vpop.permute.xlu1 %1547 }
 0x22d   :  { %9122 = vst [vmem:[#allocation61_spill] sm:$0xff] %v5881_v44  ;;  %v1546_v58 = vpop.permute.xlu0 %1545 }
 0x22e   :  { %1713 = vrot.lane.b32.xlu1 %v9123_v5, %s4379_s8  ;;  %v1827_v2 = vsel %vm1753_vm11, %v1546_v58, %v5881_v44  ;;  %v9131_v44 = vld [vmem:[#allocation3_spill] sm:$0xff] }
 0x22f   :  { %1725 = vrot.lane.b32.xlu0 %v9124_v31, %s4379_s8  ;;  %2568 = vmatprep.subr.bf16.mxu1 %v1827_v2 }
 0x230   :  { %v1122_v27 = vpop.permute.xlu1 %1121 }
 0x231   :  { %v1148_v34 = vsel %vm8862_vm12, %v1122_v27, %v1124_v38  ;;  %v5890_v9 = vpop.permute.xlu0 %640  ;;  %v9128_v27 = vld [vmem:[#allocation5_spill] sm:$0xff]  ;;  %v9129_v38 = vld [vmem:[#allocation7_spill] sm:$0xff] }
 0x232   :  { %9125 = vst [vmem:[#allocation74_spill] sm:$0xff] %v5890_v9  ;;  %1711 = vrot.lane.b32.xlu1 %v5441_v57, %s4379_s8  ;;  %2496 = vmatpush2.bf16.msra.mxu0 %v1148_v34  ;;  %v5897_v30 = vsel %vm670_vm9, %v9126_v46, %v5890_v9 }
 0x233   :  { %9127 = vst [vmem:[#allocation64_spill] sm:$0xff] %v5897_v30  ;;  %1715 = vrot.lane.b32.xlu0 %v5897_v30, %s4379_s8 }
 0x234   :  { %v1110_v5 = vpop.permute.xlu1 %1109 }
 0x235   :  { %v1544_v31 = vpop.permute.xlu0 %1543 }
 0x236   :  { %v1826_v2 = vsel %vm1753_vm11, %v1544_v31, %v1546_v58  ;;  %584 = vrot.lane.b32.xlu1 %v9128_v27, %s4372_s22 }
 0x237   :  { %596 = vrot.lane.b32.xlu0 %v9129_v38, %s4372_s22  ;;  %2569 = vmatpush2.bf16.msra.mxu1 %v1826_v2 }
 0x238   :  { %v1532_v57 = vpop.permute.xlu1 %1531 }
 0x239   :  { %v5906_v34 = vpop.permute.xlu0 %1111 }
 0x23a   :  { %9130 = vst [vmem:[#allocation75_spill] sm:$0xff] %v5906_v34  ;;  %526 = vrot.lane.b32.xlu1 %v9129_v38, %s4373_s23  ;;  %v1143_v46 = vsel %vm8862_vm12, %v1110_v5, %v5906_v34 }
 0x23b   :  { %572 = vrot.lane.b32.xlu0 %v9131_v44, %s4372_s22  ;;  %2497 = vmatprep.subr.bf16.mxu0 %v1143_v46 }
 0x23c   :  { %v1108_v58 = vpop.permute.xlu1 %1107 }
 0x23d   :  { %v1142_v31 = vsel %vm8862_vm12, %v1108_v58, %v1110_v5  ;;  %v5915_v30 = vpop.permute.xlu0 %1533 }
 0x23e   :  { %9132 = vst [vmem:[#allocation73_spill] sm:$0xff] %v5915_v30  ;;  %502 = vrot.lane.b32.xlu1 %v9131_v44, %s4373_s23  ;;  %2498 = vmatpush2.bf16.msra.mxu0 %v1142_v31  ;;  %v1821_v2 = vsel %vm1753_vm11, %v1532_v57, %v5915_v30 }
 0x23f   :  { %514 = vrot.lane.b32.xlu0 %v9128_v27, %s4373_s23  ;;  %2570 = vmatprep.subr.bf16.mxu1 %v1821_v2 }
 0x240   :  { %v1096_v34 = vpop.permute.xlu1 %1095 }
 0x241   :  { %v1530_v9 = vpop.permute.xlu0 %1529 }
 0x242   :  { %v1820_v46 = vsel %vm1753_vm11, %v1530_v9, %v1532_v57  ;;  %1022 = vrot.lane.b32.xlu1 %v9131_v44, %s4378_s7 }
 0x243   :  { %1020 = vrot.lane.b32.xlu0 %v4457_v22, %s4378_s7  ;;  %2571 = vmatpush2.bf16.msra.mxu1 %v1820_v46  ;;  %v9135_v46 = vld [vmem:[#allocation6_spill] sm:$0xff] }
 0x244   :  { %v1518_v5 = vpop.permute.xlu1 %1517 }
 0x245   :  { %v5928_v58 = vpop.permute.xlu0 %1097 }
 0x246   :  { %9133 = vst [vmem:[#allocation76_spill] sm:$0xff] %v5928_v58  ;;  %969 = vrot.lane.b32.xlu1 %v4577_v19, %s4380_s9  ;;  %v1137_v31 = vsel %vm8862_vm12, %v1096_v34, %v5928_v58 }
 0x247   :  { %456 = vrot.lane.b32.xlu0 %v9129_v38, %s4371_s21  ;;  %2499 = vmatprep.subr.bf16.mxu0 %v1137_v31 }
 0x248   :  { %v1094_v9 = vpop.permute.xlu1 %1093 }
 0x249   :  { %v1136_v57 = vsel %vm8862_vm12, %v1094_v9, %v1096_v34  ;;  %v5937_v2 = vpop.permute.xlu0 %1519  ;;  %vm2314_vm12 = vcmask 392192  }
 0x24a   :  { %9134 = vst [vmem:[#allocation78_spill] sm:$0xff] %v5937_v2  ;;  %598 = vrot.lane.b32.xlu1 %v9135_v46, %s4372_s22  ;;  %2500 = vmatpush2.bf16.msra.mxu0 %v1136_v57  ;;  %v1815_v30 = vsel %vm1753_vm11, %v1518_v5, %v5937_v2  ;;  %v9137_v57 = vld [vmem:[#allocation4_spill] sm:$0xff] }
 0x24b   :  { %971 = vrot.lane.b32.xlu0 %v9129_v38, %s4380_s9  ;;  %2572 = vmatprep.subr.bf16.mxu1 %v1815_v30 }
 0x24c   :  { %v1045_v58 = vpop.permute.xlu1 %1044 }
 0x24d   :  { %v1516_v56 = vpop.permute.xlu0 %1515 }
 0x24e   :  { %v1814_v31 = vsel %vm1753_vm11, %v1516_v56, %v1518_v5  ;;  %957 = vrot.lane.b32.xlu1 %v9128_v27, %s4380_s9 }
 0x24f   :  { %955 = vrot.lane.b32.xlu0 %v4517_v52, %s4380_s9  ;;  %2573 = vmatpush2.bf16.msra.mxu1 %v1814_v31 }
 0x250   :  { %v1504_v34 = vpop.permute.xlu1 %1503 }
 0x251   :  { %v5950_v9 = vpop.permute.xlu0 %1046 }
 0x252   :  { %9136 = vst [vmem:[#allocation80_spill] sm:$0xff] %v5950_v9  ;;  %797 = vrot.lane.b32.xlu1 %v4517_v52, %s4374_s24  ;;  %v1070_v30 = vsel %vm1056_vm10, %v1045_v58, %v5950_v9 }
 0x253   :  { %586 = vrot.lane.b32.xlu0 %v9137_v57, %s4372_s22  ;;  %2501 = vmatprep.subr.bf16.mxu0 %v1070_v30 }
 0x254   :  { %v1043_v56 = vpop.permute.xlu1 %1042 }
 0x255   :  { %v1069_v5 = vsel %vm1056_vm10, %v1043_v56, %v1045_v58  ;;  %v5959_v2 = vpop.permute.xlu0 %1505 }
 0x256   :  { %9138 = vst [vmem:[#allocation77_spill] sm:$0xff] %v5959_v2  ;;  %941 = vrot.lane.b32.xlu1 %v4457_v22, %s4380_s9  ;;  %2502 = vmatpush2.bf16.msra.mxu0 %v1069_v5  ;;  %v1809_v31 = vsel %vm1753_vm11, %v1504_v34, %v5959_v2 }
 0x257   :  { %799 = vrot.lane.b32.xlu0 %v9128_v27, %s4374_s24  ;;  %2574 = vmatprep.subr.bf16.mxu1 %v1809_v31 }
 0x258   :  { %v1031_v9 = vpop.permute.xlu1 %1030 }
 0x259   :  { %v1502_v29 = vpop.permute.xlu0 %1501 }
 0x25a   :  { %v1808_v30 = vsel %vm1753_vm11, %v1502_v29, %v1504_v34  ;;  %574 = vrot.lane.b32.xlu1 %v9139_v53, %s4372_s22 }
 0x25b   :  { %943 = vrot.lane.b32.xlu0 %v9131_v44, %s4380_s9  ;;  %2575 = vmatpush2.bf16.msra.mxu1 %v1808_v30  ;;  %v4244_v30 = vld [vmem:[%s8732_s2 + $0x10] ss:$40 sps:$4 sm:$0xff]  }
 0x25c   :  { %v1490_v58 = vpop.permute.xlu1 %1489 }
 0x25d   :  { %v5972_v56 = vpop.permute.xlu0 %1032 }
 0x25e   :  { %9140 = vst [vmem:[#allocation79_spill] sm:$0xff] %v5972_v56  ;;  %785 = vrot.lane.b32.xlu1 %v9131_v44, %s4374_s24  ;;  %v1064_v5 = vsel %vm1056_vm10, %v1031_v9, %v5972_v56 }
 0x25f   :  { %783 = vrot.lane.b32.xlu0 %v4457_v22, %s4374_s24  ;;  %2503 = vmatprep.subr.bf16.mxu0 %v1064_v5  ;;  %v4247_v5 = vld [vmem:[%s8732_s2 + $0x64] ss:$40 sps:$4 sm:$0xff]  }
 0x260   :  { %v1029_v29 = vpop.permute.xlu1 %1028 }
 0x261   :  { %v1063_v34 = vsel %vm1056_vm10, %v1029_v29, %v1031_v9  ;;  %v5981_v31 = vpop.permute.xlu0 %1491 }
 0x262   :  { %9141 = vst [vmem:[#allocation5_spill] sm:$0xff] %v5981_v31  ;;  %892 = vrot.lane.b32.xlu1 %v9129_v38, %s4381_s12  ;;  %2504 = vmatpush2.bf16.msra.mxu0 %v1063_v34  ;;  %v1803_v2 = vsel %vm1753_vm11, %v1490_v58, %v5981_v31  ;;  %v4241_v34 = vld [vmem:[%s8732_s2 + $0x18] ss:$40 sps:$4 sm:$0xff]  }
 0x263   :  { %890 = vrot.lane.b32.xlu0 %v4577_v19, %s4381_s12  ;;  %2576 = vmatprep.subr.bf16.mxu1 %v1803_v2  ;;  %v9142_v31 = vld [vmem:[#allocation22_spill] sm:$0xff] }
 0x264   :  { %v1700_v9 = vpop.permute.xlu1 %1699  ;;  %v6006_v2 = vsel %vm250_vm0, %v9143_v7, %v9142_v31  ;;  %v4250_v7 = vld [vmem:[%s8732_s2 + $0xb4] ss:$40 sps:$4 sm:$0xff]  }
 0x265   :  { %v1488_v29 = vpop.permute.xlu0 %1487  ;;  %2506 = vmatmul.mubr.bf16.vlgmr.msra.gmra.mxu0 %v4244_v30 }
 0x266   :  { %v1802_v56 = vsel %vm1753_vm11, %v1488_v29, %v1490_v58  ;;  %734 = vrot.lane.b32.xlu1 %v4577_v19, %s4375_s25  ;;  %2515 = vmatprep.mubr.bf16.mxu0 %v4247_v5  ;;  %v4249_v5 = vld [vmem:[%s8732_s2 + $0x60] ss:$40 sps:$4 sm:$0xff]  }
 0x267   :  { %528 = vrot.lane.b32.xlu0 %v9135_v46, %s4373_s23  ;;  %2577 = vmatpush2.bf16.msra.mxu1 %v1802_v56 }
 0x268   :  { %2692 = vmatprep.subr.bf16.mxu1 %v6006_v2  ;;  %v1698_v58 = vpop.permute.xlu1 %1697 }
 0x269   :  { %v1892_v30 = vsel %vm1753_vm11, %v1698_v58, %v1700_v9  ;;  %v6010_v29 = vpop.permute.xlu0 %1701  ;;  %v9145_v58 = vld [vmem:[#allocation52_spill] sm:$0xff] }
 0x26a   :  { %9144 = vst [vmem:[#allocation7_spill] sm:$0xff] %v6010_v29  ;;  %876 = vrot.lane.b32.xlu1 %v4517_v52, %s4381_s12  ;;  %2579 = vmatmul.mubr.bf16.vlgmr.msra.gmra.mxu1 %v4241_v34  ;;  %v1893_v56 = vsel %vm1753_vm11, %v1700_v9, %v6010_v29  ;;  %v4253_v9 = vld [vmem:[%s8732_s2 + $0x6c] ss:$40 sps:$4 sm:$0xff]  }
 0x26b   :  { %736 = vrot.lane.b32.xlu0 %v9129_v38, %s4375_s25  ;;  %2619 = vmatprep.subr.bf16.mxu0 %v1893_v56  ;;  %v9149_v56 = vld [vmem:[#allocation53_spill] sm:$0xff] }
 0x26c   :  { %2693 = vmatpush1.bf16.msra.mxu1 %v9145_v58  ;;  %2620 = vmatpush1.bf16.msra.mxu0 %v1892_v30  ;;  %v6030_v34 = vpop.permute.xlu1 %1687  ;;  %v9150_v58 = vld [vmem:[#allocation16_spill] sm:$0xff] }
 0x26d   :  { %9148 = vst [vmem:[#allocation6_spill] sm:$0xff] %v6030_v34  ;;  %2694 = vmatprep.subr.bf16.mxu1 %v6028_v40  ;;  %v1686_v29 = vpop.permute.xlu0 %1685  ;;  %2516 = vmatmul.mubr.bf16.gmra.mxu0 %v4249_v5  ;;  %v6049_v5 = vsel %vm180_vm1, %v9151_v11, %v9150_v58  ;;  %v4256_v11 = vld [vmem:[%s8732_s2 + $0x104] ss:$40 sps:$4 sm:$0xff]  }
 0x26e   :  { %516 = vrot.lane.b32.xlu1 %v9137_v57, %s4373_s23  ;;  %v1887_v30 = vsel %vm1753_vm11, %v1686_v29, %v6030_v34  ;;  %2525 = vmatprep.mubr.bf16.mxu0 %v4250_v7  ;;  %v4259_v7 = vld [vmem:[%s8732_s2 + $0xbc] ss:$40 sps:$4 sm:$0xff]  }
 0x26f   :  { %878 = vrot.lane.b32.xlu0 %v9128_v27, %s4381_s12  ;;  %2621 = vmatprep.subr.bf16.mxu0 %v1887_v30  ;;  %v4252_v30 = vld [vmem:[%s8732_s2 + $0xb0] ss:$40 sps:$4 sm:$0xff]  }
 0x270   :  { %2695 = vmatpush1.bf16.msra.mxu1 %v9149_v56  ;;  %v1672_v62 = vpop.permute.xlu1 %1671  ;;  %2588 = vmatprep.mubr.bf16.mxu1 %v4253_v9  ;;  %v9152_v9 = vld [vmem:[#allocation55_spill] sm:$0xff] }
 0x271   :  { %2696 = vmatprep.subr.bf16.mxu1 %v6049_v5  ;;  %v1684_v34 = vpop.permute.xlu0 %1683 }
 0x272   :  { %v1886_v56 = vsel %vm1753_vm11, %v1684_v34, %v1686_v29  ;;  %1316 = vrot.lane.b32.xlu1 %v9135_v46, %s4376_s26  ;;  %2589 = vmatmul.mubr.bf16.gmra.mxu1 %v4255_v43 }
 0x273   :  { %1314 = vrot.lane.b32.xlu0 %v9129_v38, %s4376_s26  ;;  %2622 = vmatpush1.bf16.msra.mxu0 %v1886_v56 }
 0x274   :  { %2697 = vmatpush1.bf16.msra.mxu1 %v9152_v9  ;;  %v1670_v29 = vpop.permute.xlu1 %1669  ;;  %2598 = vmatprep.mubr.bf16.mxu1 %v4259_v7  ;;  %v9156_v7 = vld [vmem:[#allocation63_spill] sm:$0xff]  ;;  %v9157_v9 = vld [vmem:[#allocation10_spill] sm:$0xff] }
 0x275   :  { %2698 = vmatprep.subr.bf16.mxu1 %v6070_v33  ;;  %v1880_v34 = vsel %vm1753_vm11, %v1670_v29, %v1672_v62  ;;  %v6074_v43 = vpop.permute.xlu0 %1673  ;;  %2526 = vmatmul.mubr.bf16.gmra.mxu0 %v4252_v30  ;;  %v9158_v30 = vld [vmem:[#allocation8_spill] sm:$0xff] }
 0x276   :  { %9155 = vst [vmem:[#allocation4_spill] sm:$0xff] %v6074_v43  ;;  %724 = vrot.lane.b32.xlu1 %v9128_v27, %s4375_s25  ;;  %v1881_v56 = vsel %vm1753_vm11, %v1672_v62, %v6074_v43  ;;  %2535 = vmatprep.mubr.bf16.mxu0 %v4256_v11  ;;  %v6089_v29 = vsel %vm180_vm1, %v9158_v30, %v9157_v9  ;;  %v4265_v62 = vld [vmem:[%s8732_s2 + $0x10c] ss:$40 sps:$4 sm:$0xff]  }
 0x277   :  { %722 = vrot.lane.b32.xlu0 %v4517_v52, %s4375_s25  ;;  %2623 = vmatprep.subr.bf16.mxu0 %v1881_v56  ;;  %9159 = vst [vmem:[#allocation2_spill] sm:$0xff] %v6089_v29  ;;  %v4258_v56 = vld [vmem:[%s8732_s2 + $0x100] ss:$40 sps:$4 sm:$0xff]  }
 0x278   :  { %2699 = vmatpush1.bf16.msra.mxu1 %v9156_v7  ;;  %2624 = vmatpush1.bf16.msra.mxu0 %v1880_v34  ;;  %v6091_v10 = vpop.permute.xlu1 %1659  ;;  %v4264_v7 = vld [vmem:[%s8732_s2 + $0x24] ss:$40 sps:$4 sm:$0xff]  }
 0x279   :  { %9160 = vst [vmem:[#allocation22_spill] sm:$0xff] %v6091_v10  ;;  %2700 = vmatprep.subr.bf16.mxu1 %v6089_v29  ;;  %v1658_v11 = vpop.permute.xlu0 %1657  ;;  %v9161_v30 = vld [vmem:[#allocation67_spill] sm:$0xff] }
 0x27a   :  { %864 = vrot.lane.b32.xlu1 %v9131_v44, %s4381_s12  ;;  %v1875_v34 = vsel %vm1753_vm11, %v1658_v11, %v6091_v10  ;;  %2599 = vmatmul.mubr.bf16.gmra.mxu1 %v4261_v41  ;;  %v4267_v41 = vld [vmem:[%s8732_s2 + $0x108] ss:$40 sps:$4 sm:$0xff]  }
 0x27b   :  { %862 = vrot.lane.b32.xlu0 %v4457_v22, %s4381_s12  ;;  %2625 = vmatprep.subr.bf16.mxu0 %v1875_v34 }
 0x27c   :  { %2701 = vmatpush1.bf16.msra.mxu1 %v9161_v30  ;;  %v1644_v43 = vpop.permute.xlu1 %1643  ;;  %2608 = vmatprep.mubr.bf16.mxu1 %v4265_v62 }
 0x27d   :  { %v1656_v29 = vpop.permute.xlu0 %1655  ;;  %2702 = vmatprep.subr.bf16.mxu1 %v4577_v19  ;;  %2536 = vmatmul.mubr.bf16.gmra.mxu0 %v4258_v56 }
 0x27e   :  { %v1874_v10 = vsel %vm1753_vm11, %v1656_v29, %v1658_v11  ;;  %1300 = vrot.lane.b32.xlu1 %v9128_v27, %s4376_s26  ;;  %4163 = vmatprep.mubr.msk.bf16.mxu0 %vm2314_vm12, %v4264_v7  ;;  %v4293_v11 = vld [vmem:[%s8732_s2 + $0x4] ss:$40 sps:$4 sm:$0xff]  }
 0x27f   :  { %504 = vrot.lane.b32.xlu0 %v9139_v53, %s4373_s23  ;;  %2626 = vmatpush1.bf16.msra.mxu0 %v1874_v10 }
 0x280   :  { %2703 = vmatpush1.bf16.msra.mxu1 %v4581_v24  ;;  %v1642_v62 = vpop.permute.xlu1 %1641 }
 0x281   :  { %v1868_v56 = vsel %vm1753_vm11, %v1642_v62, %v1644_v43  ;;  %v6122_v34 = vpop.permute.xlu0 %1645  ;;  %2704 = vmatprep.subr.bf16.mxu1 %v4517_v52 }
 0x282   :  { %710 = vrot.lane.b32.xlu1 %v4457_v22, %s4375_s25  ;;  %v1869_v29 = vsel %vm1753_vm11, %v1644_v43, %v6122_v34  ;;  %2609 = vmatmul.mubr.bf16.gmra.mxu1 %v4267_v41 }
 0x283   :  { %1302 = vrot.lane.b32.xlu0 %v9137_v57, %s4376_s26  ;;  %2627 = vmatprep.subr.bf16.mxu0 %v1869_v29 }
 0x284   :  { %2705 = vmatpush1.bf16.msra.mxu1 %v4521_v55  ;;  %2628 = vmatpush1.bf16.msra.mxu0 %v1868_v56  ;;  %v6132_v24 = vpop.permute.xlu1 %1631  ;;  %v9163_v55 = vld [vmem:[#allocation47_spill] sm:$0xff]  ;;  %v9165_v56 = vld [vmem:[#allocation42_spill] sm:$0xff] }
 0x285   :  { %9162 = vst [vmem:[#allocation20_spill] sm:$0xff] %v6132_v24  ;;  %v1630_v10 = vpop.permute.xlu0 %1629  ;;  %2706 = vmatprep.subr.bf16.mxu1 %v4457_v22  ;;  %2724 = vmatprep.mubr.bf16.mxu1 %v4293_v11  ;;  %v6148_v7 = vsel %vm460_vm2, %v5004_v35, %v9163_v55 }
 0x286   :  { %811 = vrot.lane.b32.xlu1 %v4577_v19, %s4374_s24  ;;  %v1863_v43 = vsel %vm1753_vm11, %v1630_v10, %v6132_v24 }
 0x287   :  { %712 = vrot.lane.b32.xlu0 %v9131_v44, %s4375_s25  ;;  %2629 = vmatprep.subr.bf16.mxu0 %v1863_v43 }
 0x288   :  { %2707 = vmatpush1.bf16.msra.mxu1 %v4442_v15  ;;  %v1616_v30 = vpop.permute.xlu1 %1615  ;;  %v9164_v15 = vld [vmem:[#allocation45_spill] sm:$0xff] }
 0x289   :  { %2708 = vmatprep.subr.bf16.mxu1 %v6148_v7  ;;  %v1628_v41 = vpop.permute.xlu0 %1627  ;;  %v404_v35 = vsel %vm390_vm3, %v9165_v56, %v9164_v15 }
 0x28a   :  { %v1862_v62 = vsel %vm1753_vm11, %v1628_v41, %v1630_v10  ;;  %458 = vrot.lane.b32.xlu1 %v9135_v46, %s4371_s21 }
 0x28b   :  { %813 = vrot.lane.b32.xlu0 %v9129_v38, %s4374_s24  ;;  %2630 = vmatpush1.bf16.msra.mxu0 %v1862_v62  ;;  %v9168_v62 = vld [vmem:[#allocation41_spill] sm:$0xff] }
 0x28c   :  { %2709 = vmatpush2.bf16.msra.mxu1 %v5436_v12  ;;  %v1614_v29 = vpop.permute.xlu1 %1613  ;;  %v9167_v12 = vld [vmem:[#allocation43_spill] sm:$0xff] }
 0x28d   :  { %2710 = vmatprep.subr.bf16.mxu1 %v404_v35  ;;  %v1856_v11 = vsel %vm1753_vm11, %v1614_v29, %v1616_v30  ;;  %v6161_v43 = vpop.permute.xlu0 %1617  ;;  %v403_v41 = vsel %vm390_vm3, %v9167_v12, %v9165_v56  ;;  %v9169_v35 = vld [vmem:[#allocation38_spill] sm:$0xff]  ;;  %v9170_v56 = vld [vmem:[#allocation39_spill] sm:$0xff] }
 0x28e   :  { %9166 = vst [vmem:[#allocation52_spill] sm:$0xff] %v6161_v43  ;;  %1288 = vrot.lane.b32.xlu1 %v9139_v53, %s4376_s26  ;;  %v1857_v10 = vsel %vm1753_vm11, %v1616_v30, %v6161_v43  ;;  %v399_v29 = vsel %vm390_vm3, %v9169_v35, %v9168_v62  ;;  %v9172_v12 = vld [vmem:[#allocation34_spill] sm:$0xff] }
 0x28f   :  { %1286 = vrot.lane.b32.xlu0 %v9131_v44, %s4376_s26  ;;  %2631 = vmatprep.subr.bf16.mxu0 %v1857_v10  ;;  %v9171_v10 = vld [vmem:[#allocation37_spill] sm:$0xff] }
 0x290   :  { %2711 = vmatpush2.bf16.msra.mxu1 %v403_v41  ;;  %2632 = vmatpush1.bf16.msra.mxu0 %v1856_v11  ;;  %v6175_v15 = vpop.permute.xlu1 %1603  ;;  %v398_v11 = vsel %vm390_vm3, %v9170_v56, %v9169_v35  ;;  %v394_v41 = vsel %vm390_vm3, %v9172_v12, %v9171_v10  ;;  %v9174_v56 = vld [vmem:[#allocation33_spill] sm:$0xff] }
 0x291   :  { %2712 = vmatprep.subr.bf16.mxu1 %v399_v29  ;;  %v1602_v24 = vpop.permute.xlu0 %1601 }
 0x292   :  { %1206 = vrot.lane.b32.xlu1 %v4577_v19, %s4382_s13  ;;  %v1851_v30 = vsel %vm1753_vm11, %v1602_v24, %v6175_v15 }
 0x293   :  { %666 = vrot.lane.b32.xlu0 %v9129_v38, %s4377_s27  ;;  %2633 = vmatprep.subr.bf16.mxu0 %v1851_v30  ;;  %v9173_v30 = vld [vmem:[#allocation35_spill] sm:$0xff] }
 0x294   :  { %2713 = vmatpush2.bf16.msra.mxu1 %v398_v11  ;;  %v1742_v29 = vpop.permute.xlu1 %1741  ;;  %v393_v35 = vsel %vm390_vm3, %v9173_v30, %v9172_v12  ;;  %v6200_v11 = vsel %vm320_vm4, %v4920_v20, %v9174_v56  ;;  %v9175_v20 = vld [vmem:[#allocation31_spill] sm:$0xff] }
 0x295   :  { %2714 = vmatprep.subr.bf16.mxu1 %v394_v41  ;;  %v1600_v62 = vpop.permute.xlu0 %1599  ;;  %v6216_v12 = vsel %vm320_vm4, %v9087_v1, %v9175_v20 }
 0x296   :  { %v1850_v43 = vsel %vm1753_vm11, %v1600_v62, %v1602_v24  ;;  %654 = vrot.lane.b32.xlu1 %v9128_v27, %s4377_s27 }
 0x297   :  { %1208 = vrot.lane.b32.xlu0 %v9129_v38, %s4382_s13  ;;  %2634 = vmatpush1.bf16.msra.mxu0 %v1850_v43 }
 0x298   :  { %2715 = vmatpush2.bf16.msra.mxu1 %v393_v35  ;;  %v1740_v41 = vpop.permute.xlu1 %1739 }
 0x299   :  { %2716 = vmatprep.subr.bf16.mxu1 %v6200_v11  ;;  %v1910_v24 = vsel %vm1753_vm11, %v1740_v41, %v1742_v29  ;;  %v6204_v62 = vpop.permute.xlu0 %1743 }
 0x29a   :  { %1194 = vrot.lane.b32.xlu1 %v9128_v27, %s4382_s13  ;;  %v1911_v43 = vsel %vm1753_vm11, %v1742_v29, %v6204_v62 }
 0x29b   :  { %1192 = vrot.lane.b32.xlu0 %v4517_v52, %s4382_s13  ;;  %2645 = vmatprep.subr.bf16.mxu0 %v1911_v43 }
 0x29c   :  { %2717 = vmatpush2.bf16.msra.mxu1 %v5570_v16  ;;  %2646 = vmatpush2.bf16.msra.mxu0 %v1910_v24  ;;  %v6218_v30 = vpop.permute.xlu1 %1729  ;;  %v9176_v16 = vld [vmem:[#allocation28_spill] sm:$0xff] }
 0x29d   :  { %2718 = vmatprep.subr.bf16.mxu1 %v6216_v12  ;;  %v1728_v35 = vpop.permute.xlu0 %1727  ;;  %v6231_v1 = vsel %vm320_vm4, %v9090_v8, %v9176_v16 }
 0x29e   :  { %642 = vrot.lane.b32.xlu1 %v9131_v44, %s4377_s27  ;;  %v1905_v29 = vsel %vm1753_vm11, %v1728_v35, %v6218_v30 }
 0x29f   :  { %668 = vrot.lane.b32.xlu0 %v9135_v46, %s4377_s27  ;;  %2647 = vmatprep.subr.bf16.mxu0 %v1905_v29 }
 0x2a0   :  { %2719 = vmatpush2.bf16.msra.mxu1 %v5617_v50  ;;  %v1714_v41 = vpop.permute.xlu1 %1713  ;;  %v9177_v50 = vld [vmem:[#allocation25_spill] sm:$0xff] }
 0x2a1   :  { %2720 = vmatprep.subr.bf16.mxu1 %v6231_v1  ;;  %v1726_v24 = vpop.permute.xlu0 %1725  ;;  %v6243_v8 = vsel %vm250_vm0, %v9093_v63, %v9177_v50  ;;  %v4262_v63 = vld [vmem:[%s8732_s2 + $0x20] ss:$40 sps:$4 sm:$0xff]  }
 0x2a2   :  { %v1904_v43 = vsel %vm1753_vm11, %v1726_v24, %v1728_v35  ;;  %1180 = vrot.lane.b32.xlu1 %v9131_v44, %s4382_s13 }
 0x2a3   :  { %1178 = vrot.lane.b32.xlu0 %v4457_v22, %s4382_s13  ;;  %2648 = vmatpush2.bf16.msra.mxu0 %v1904_v43 }
 0x2a4   :  { %2721 = vmatpush2.bf16.msra.mxu1 %v5675_v13  ;;  %v1712_v29 = vpop.permute.xlu1 %1711 }
 0x2a5   :  { %2722 = vmatprep.subr.bf16.mxu1 %v6243_v8  ;;  %v1898_v10 = vsel %vm1753_vm11, %v1712_v29, %v1714_v41  ;;  %v6247_v35 = vpop.permute.xlu0 %1715  ;;  %v4268_v29 = vld [vmem:[%s8732_s2 + $0x74] ss:$40 sps:$4 sm:$0xff]  }
 0x2a6   :  { %9178 = vst [vmem:[#allocation19_spill] sm:$0xff] %v6247_v35  ;;  %1127 = vrot.lane.b32.xlu1 %v4577_v19, %s8889_s16  ;;  %v1899_v24 = vsel %vm1753_vm11, %v1714_v41, %v6247_v35  ;;  %v4294_v41 = vld [vmem:[%s8732_s2] ss:$40 sps:$4 sm:$0xff]  }
 0x2a7   :  { %656 = vrot.lane.b32.xlu0 %v9137_v57, %s4377_s27  ;;  %2649 = vmatprep.subr.bf16.mxu0 %v1899_v24  ;;  %v9179_v24 = vld [vmem:[#allocation21_spill] sm:$0xff] }
 0x2a8   :  { %2723 = vmatpush2.bf16.msra.mxu1 %v5716_v0  ;;  %2650 = vmatpush2.bf16.msra.mxu0 %v1898_v10  ;;  %v6256_v13 = vpop.permute.xlu1 %584 }
 0x2a9   :  { %v6261_v43 = vpop.permute.xlu0 %596 }
 0x2aa   :  { %1479 = vrot.lane.b32.xlu1 %v6006_v2, %s4379_s8  ;;  %v6271_v0 = vsel %vm8874_vm5, %v5483_v47, %v6261_v43  ;;  %v6285_v47 = vsel %vm8874_vm5, %v5524_v6, %v6256_v13 }
 0x2ab   :  { %1129 = vrot.lane.b32.xlu0 %v9129_v38, %s8889_s16  ;;  %2765 = vmatprep.subr.bf16.mxu0 %v6271_v0 }
 0x2ac   :  { %2652 = vmatmul.mubr.bf16.vlgmr.msra.gmra.mxu0 %v4262_v63  ;;  %v6276_v10 = vpop.permute.xlu1 %526  ;;  %2725 = vmatmul.mubr.bf16.vlgmr.msra.gmra.mxu1 %v4294_v41  ;;  %v6296_v63 = vsel %vm250_vm0, %v9142_v31, %v9179_v24  ;;  %v4271_v41 = vld [vmem:[%s8732_s2 + $0xc4] ss:$40 sps:$4 sm:$0xff]  }
 0x2ad   :  { %2766 = vmatpush1.bf16.msra.mxu0 %v5732_v17  ;;  %v6287_v2 = vpop.permute.xlu0 %572  ;;  %4164 = vmatprep.mubr.msk.bf16.mxu0 %vm2314_vm12, %v4268_v29  ;;  %9180 = vst [vmem:[#allocation17_spill] sm:$0xff] %v6296_v63  ;;  %v4270_v17 = vld [vmem:[%s8732_s2 + $0x70] ss:$40 sps:$4 sm:$0xff]  }
 0x2ae   :  { %2767 = vmatprep.subr.bf16.mxu0 %v6285_v47  ;;  %644 = vrot.lane.b32.xlu1 %v9139_v53, %s4377_s27  ;;  %v6310_v29 = vsel %vm8874_vm5, %v5547_v4, %v6287_v2  ;;  %v6329_v4 = vsel %vm530_vm6, %v5590_v37, %v6276_v10 }
 0x2af   :  { %1481 = vrot.lane.b32.xlu0 %v6296_v63, %s4379_s8  ;;  %2734 = vmatprep.mubr.bf16.mxu1 %v5595_v25  ;;  %v9182_v63 = vld [vmem:[#allocation18_spill] sm:$0xff] }
 0x2b0   :  { %v6301_v6 = vpop.permute.xlu1 %502  ;;  %v6334_v35 = vsel %vm250_vm0, %v9146_v32, %v9182_v63 }
 0x2b1   :  { %2768 = vmatpush1.bf16.msra.mxu0 %v5745_v59  ;;  %v6312_v31 = vpop.permute.xlu0 %514 }
 0x2b2   :  { %2769 = vmatprep.subr.bf16.mxu0 %v6310_v29  ;;  %1115 = vrot.lane.b32.xlu1 %v9128_v27, %s8889_s16 }
 0x2b3   :  { %1113 = vrot.lane.b32.xlu0 %v4517_v52, %s8889_s16 }
 0x2b4   :  { %v6322_v25 = vpop.permute.xlu1 %1022  ;;  %2662 = vmatmul.mubr.bf16.gmra.mxu0 %v4270_v17  ;;  %2735 = vmatmul.mubr.bf16.gmra.mxu1 %v5605_v26  ;;  %v4273_v17 = vld [vmem:[%s8732_s2 + $0xc0] ss:$40 sps:$4 sm:$0xff]  }
 0x2b5   :  { %9181 = vst [vmem:[#allocation53_spill] sm:$0xff] %v6322_v25  ;;  %2770 = vmatpush1.bf16.msra.mxu0 %v5764_v3  ;;  %v1021_v59 = vpop.permute.xlu0 %1020  ;;  %4165 = vmatprep.mubr.msk.bf16.mxu0 %vm2314_vm12, %v4271_v41  ;;  %v9183_v3 = vld [vmem:[#allocation81_spill] sm:$0xff]  ;;  %v6354_v41 = vsel %vm530_vm6, %v5645_v60, %v6312_v31  ;;  %v6373_v60 = vsel %vm530_vm6, %v5709_v14, %v6301_v6  ;;  %v9186_v14 = vld [vmem:[#allocation83_spill] sm:$0xff] }
 0x2b6   :  { %2771 = vmatprep.subr.bf16.mxu0 %v6329_v4  ;;  %1467 = vrot.lane.b32.xlu1 %v6334_v35, %s4379_s8  ;;  %v1060_v26 = vsel %vm1056_vm10, %v1021_v59, %v6322_v25  ;;  %v1059_v37 = vsel %vm1056_vm10, %v9183_v3, %v1021_v59  ;;  %v9234_v25 = vld [vmem:[#allocation50_spill] sm:$0xff] }
 0x2b7   :  { %1465 = vrot.lane.b32.xlu0 %v6028_v40, %s4379_s8  ;;  %2838 = vmatprep.subr.bf16.mxu1 %v1060_v26  ;;  %v4274_v40 = vld [vmem:[%s8732_s2 + $0x114] ss:$40 sps:$4 sm:$0xff]   ;;  %v9185_v26 = vld [vmem:[#allocation15_spill] sm:$0xff] }
 0x2b8   :  { %2839 = vmatpush1.bf16.msra.mxu1 %v1059_v37  ;;  %v970_v32 = vpop.permute.xlu1 %969  ;;  %2744 = vmatprep.mubr.bf16.mxu1 %v5629_v21  ;;  %v6380_v3 = vsel %vm180_vm1, %v9150_v58, %v9185_v26  ;;  %v4276_v37 = vld [vmem:[%s8732_s2 + $0x110] ss:$40 sps:$4 sm:$0xff]  }
 0x2b9   :  { %2772 = vmatpush1.bf16.msra.mxu0 %v5777_v45  ;;  %v6356_v59 = vpop.permute.xlu0 %456 }
 0x2ba   :  { %2773 = vmatprep.subr.bf16.mxu0 %v6354_v41  ;;  %1101 = vrot.lane.b32.xlu1 %v9131_v44, %s8889_s16 }
 0x2bb   :  { %1099 = vrot.lane.b32.xlu0 %v4457_v22, %s8889_s16 }
 0x2bc   :  { %v6366_v21 = vpop.permute.xlu1 %598  ;;  %2672 = vmatmul.mubr.bf16.gmra.mxu0 %v4273_v17  ;;  %2745 = vmatmul.mubr.bf16.gmra.mxu1 %v5641_v18  ;;  %v6402_v17 = vsel %vm460_vm2, %v5738_v54, %v6356_v59  ;;  %v9188_v54 = vld [vmem:[#allocation51_spill] sm:$0xff] }
 0x2bd   :  { %2774 = vmatpush1.bf16.msra.mxu0 %v5796_v42  ;;  %v6375_v45 = vpop.permute.xlu0 %971  ;;  %4166 = vmatprep.mubr.msk.bf16.mxu0 %vm2314_vm12, %v4274_v40  ;;  %v992_v42 = vsel %vm8875_vm13, %v9186_v14, %v970_v32  ;;  %v9189_v14 = vld [vmem:[#allocation12_spill] sm:$0xff] }
 0x2be   :  { %9184 = vst [vmem:[#allocation16_spill] sm:$0xff] %v6375_v45  ;;  %2775 = vmatprep.subr.bf16.mxu0 %v6373_v60  ;;  %1453 = vrot.lane.b32.xlu1 %v6380_v3, %s4379_s8  ;;  %v993_v18 = vsel %vm8875_vm13, %v970_v32, %v6375_v45 }
 0x2bf   :  { %1451 = vrot.lane.b32.xlu0 %v6049_v5, %s4379_s8  ;;  %2840 = vmatprep.subr.bf16.mxu1 %v993_v18 }
 0x2c0   :  { %2841 = vmatpush1.bf16.msra.mxu1 %v992_v42  ;;  %v6392_v58 = vpop.permute.xlu1 %957  ;;  %2754 = vmatprep.mubr.bf16.mxu1 %v5664_v23  ;;  %v4295_v42 = vld [vmem:[%s8732_s2 + $0xc] ss:$40 sps:$4 sm:$0xff]  }
 0x2c1   :  { %9187 = vst [vmem:[#allocation14_spill] sm:$0xff] %v6392_v58  ;;  %2776 = vmatpush1.bf16.msra.mxu0 %v5809_v51  ;;  %v956_v5 = vpop.permute.xlu0 %955  ;;  %v6417_v51 = vsel %vm460_vm2, %v9108_v39, %v9188_v54 }
 0x2c2   :  { %2777 = vmatprep.subr.bf16.mxu0 %v6402_v17  ;;  %1050 = vrot.lane.b32.xlu1 %v9129_v38, %s4378_s7  ;;  %v987_v32 = vsel %vm8875_vm13, %v956_v5, %v6392_v58  ;;  %v986_v40 = vsel %vm8875_vm13, %v5503_v28, %v956_v5  ;;  %v6424_v28 = vsel %vm180_vm1, %v9153_v36, %v9189_v14  ;;  %v9197_v58 = vld [vmem:[#allocation65_spill] sm:$0xff] }
 0x2c3   :  { %1048 = vrot.lane.b32.xlu0 %v4577_v19, %s4378_s7  ;;  %2842 = vmatprep.subr.bf16.mxu1 %v987_v32 }
 0x2c4   :  { %2843 = vmatpush1.bf16.msra.mxu1 %v986_v40  ;;  %v798_v23 = vpop.permute.xlu1 %797  ;;  %2682 = vmatmul.mubr.bf16.gmra.mxu0 %v4276_v37 }
 0x2c5   :  { %2778 = vmatpush1.bf16.msra.mxu0 %v5828_v49  ;;  %v6419_v18 = vpop.permute.xlu0 %586  ;;  %2797 = vmatprep.mubr.bf16.mxu0 %v4295_v42  ;;  %v4296_v49 = vld [vmem:[%s8732_s2 + $0xf0] ss:$40 sps:$4 sm:$0xff]  }
 0x2c6   :  { %2779 = vmatprep.subr.bf16.mxu0 %v6417_v51  ;;  %1439 = vrot.lane.b32.xlu1 %v6424_v28, %s4379_s8 }
 0x2c7   :  { %1437 = vrot.lane.b32.xlu0 %v6070_v33, %s4379_s8  ;;  %2755 = vmatmul.mubr.bf16.gmra.mxu1 %v4296_v49  ;;  %v9191_v33 = vld [vmem:[#allocation62_spill] sm:$0xff] }
 0x2c8   :  { %v942_v36 = vpop.permute.xlu1 %941  ;;  %2870 = vmatprep.mubr.bf16.mxu1 %v5699_v61  ;;  %v828_v5 = vsel %vm819_vm7, %v9191_v33, %v798_v23  ;;  %v9194_v49 = vld [vmem:[#allocation2_spill] sm:$0xff] }
 0x2c9   :  { %2780 = vmatpush1.bf16.msra.mxu0 %v5839_v48  ;;  %v6439_v39 = vpop.permute.xlu0 %799  ;;  %v9193_v48 = vld [vmem:[#allocation9_spill] sm:$0xff] }
 0x2ca   :  { %9190 = vst [vmem:[#allocation55_spill] sm:$0xff] %v6439_v39  ;;  %1036 = vrot.lane.b32.xlu1 %v9128_v27, %s4378_s7  ;;  %v829_v37 = vsel %vm819_vm7, %v798_v23, %v6439_v39  ;;  %v6456_v40 = vsel %vm180_vm1, %v9157_v9, %v9193_v48  ;;  %v9195_v23 = vld [vmem:[#allocation86_spill] sm:$0xff]  ;;  %v9300_v39 = vld [vmem:[#allocation20_spill] sm:$0xff] }
 0x2cb   :  { %1034 = vrot.lane.b32.xlu0 %v4517_v52, %s4378_s7  ;;  %2781 = vmatprep.subr.bf16.mxu0 %v829_v37  ;;  %v980_v37 = vsel %vm8875_vm13, %v9195_v23, %v942_v36 }
 0x2cc   :  { %v6449_v32 = vpop.permute.xlu1 %574 }
 0x2cd   :  { %2782 = vmatpush2.bf16.msra.mxu0 %v828_v5  ;;  %v6451_v61 = vpop.permute.xlu0 %943 }
 0x2ce   :  { %9192 = vst [vmem:[#allocation13_spill] sm:$0xff] %v6451_v61  ;;  %1425 = vrot.lane.b32.xlu1 %v6456_v40, %s4379_s8  ;;  %v981_v42 = vsel %vm8875_vm13, %v942_v36, %v6451_v61 }
 0x2cf   :  { %1423 = vrot.lane.b32.xlu0 %v9194_v49, %s4379_s8  ;;  %2844 = vmatprep.subr.bf16.mxu1 %v981_v42  ;;  %v6481_v49 = vsel %vm8874_vm5, %v6261_v43, %v6366_v21 }
 0x2d0   :  { %2845 = vmatpush1.bf16.msra.mxu1 %v980_v37  ;;  %v6466_v33 = vpop.permute.xlu1 %785 }
 0x2d1   :  { %9196 = vst [vmem:[#allocation11_spill] sm:$0xff] %v6466_v33  ;;  %v784_v5 = vpop.permute.xlu0 %783 }
 0x2d2   :  { %1411 = vrot.lane.b32.xlu1 %v9129_v38, %s4379_s8  ;;  %v823_v9 = vsel %vm819_vm7, %v784_v5, %v6466_v33  ;;  %v822_v61 = vsel %vm819_vm7, %v9197_v58, %v784_v5  ;;  %v9199_v58 = vld [vmem:[#allocation88_spill] sm:$0xff] }
 0x2d3   :  { %1409 = vrot.lane.b32.xlu0 %v4577_v19, %s4379_s8  ;;  %2783 = vmatprep.subr.bf16.mxu0 %v823_v9  ;;  %v6502_v9 = vsel %vm8874_vm5, %v6256_v13, %v6419_v18 }
 0x2d4   :  { %2784 = vmatpush2.bf16.msra.mxu0 %v822_v61  ;;  %v6476_v42 = vpop.permute.xlu1 %892 }
 0x2d5   :  { %9198 = vst [vmem:[#allocation63_spill] sm:$0xff] %v6476_v42  ;;  %v891_v36 = vpop.permute.xlu0 %890 }
 0x2d6   :  { %1705 = vrot.lane.b32.xlu1 %v6481_v49, %s4379_s8  ;;  %v914_v23 = vsel %vm898_vm14, %v891_v36, %v6476_v42  ;;  %v913_v37 = vsel %vm898_vm14, %v9199_v58, %v891_v36  ;;  %v9201_v36 = vld [vmem:[#allocation66_spill] sm:$0xff] }
 0x2d7   :  { %1703 = vrot.lane.b32.xlu0 %v6271_v0, %s4379_s8  ;;  %2846 = vmatprep.subr.bf16.mxu1 %v914_v23 }
 0x2d8   :  { %2847 = vmatpush1.bf16.msra.mxu1 %v913_v37  ;;  %v735_v19 = vpop.permute.xlu1 %734 }
 0x2d9   :  { %v6491_v61 = vpop.permute.xlu0 %528 }
 0x2da   :  { %1397 = vrot.lane.b32.xlu1 %v9128_v27, %s4379_s8 }
 0x2db   :  { %1395 = vrot.lane.b32.xlu0 %v4517_v52, %s4379_s8  ;;  %v753_v52 = vsel %vm740_vm8, %v9201_v36, %v735_v19  ;;  %v6529_v36 = vsel %vm8874_vm5, %v6287_v2, %v6449_v32  ;;  %vm9211_vm5 = vcmask 818176  }
 0x2dc   :  { %v877_v43 = vpop.permute.xlu1 %876  ;;  %vm9213_vm13 = vmmov %vm9211_vm5 }
 0x2dd   :  { %v6497_v5 = vpop.permute.xlu0 %736 }
 0x2de   :  { %9200 = vst [vmem:[#allocation10_spill] sm:$0xff] %v6497_v5  ;;  %1691 = vrot.lane.b32.xlu1 %v6502_v9, %s4379_s8  ;;  %v754_v0 = vsel %vm740_vm8, %v735_v19, %v6497_v5  ;;  %v9298_v5 = vld [vmem:[#allocation58_spill] sm:$0xff] }
 0x2df   :  { %1689 = vrot.lane.b32.xlu0 %v6285_v47, %s4379_s8  ;;  %2785 = vmatprep.subr.bf16.mxu0 %v754_v0  ;;  %v9203_v47 = vld [vmem:[#allocation29_spill] sm:$0xff] }
 0x2e0   :  { %2786 = vmatpush2.bf16.msra.mxu0 %v753_v52  ;;  %v6512_v23 = vpop.permute.xlu1 %516  ;;  %v907_v37 = vsel %vm898_vm14, %v9203_v47, %v877_v43  ;;  %v9208_v47 = vld [vmem:[#allocation69_spill] sm:$0xff] }
 0x2e1   :  { %v6514_v58 = vpop.permute.xlu0 %878 }
 0x2e2   :  { %9202 = vst [vmem:[#allocation8_spill] sm:$0xff] %v6514_v58  ;;  %1383 = vrot.lane.b32.xlu1 %v9131_v44, %s4379_s8  ;;  %v908_v13 = vsel %vm898_vm14, %v877_v43, %v6514_v58 }
 0x2e3   :  { %1381 = vrot.lane.b32.xlu0 %v4457_v22, %s4379_s8  ;;  %2848 = vmatprep.subr.bf16.mxu1 %v908_v13  ;;  %v9206_v13 = vld [vmem:[#allocation46_spill] sm:$0xff] }
 0x2e4   :  { %2849 = vmatpush1.bf16.msra.mxu1 %v907_v37  ;;  %v6524_v19 = vpop.permute.xlu1 %1316  ;;  %v6540_v43 = vsel %vm460_vm2, %v9163_v55, %v9206_v13  ;;  %v6555_v55 = vsel %vm530_vm6, %v6276_v10, %v6491_v61 }
 0x2e5   :  { %9204 = vst [vmem:[#allocation67_spill] sm:$0xff] %v6524_v19  ;;  %v1315_v0 = vpop.permute.xlu0 %1314  ;;  %9207 = vst [vmem:[#allocation42_spill] sm:$0xff] %v6540_v43 }
 0x2e6   :  { %1677 = vrot.lane.b32.xlu1 %v6529_v36, %s4379_s8  ;;  %v1337_v10 = vsel %vm9211_vm5, %v1315_v0, %v6524_v19 }
 0x2e7   :  { %1675 = vrot.lane.b32.xlu0 %v6310_v29, %s4379_s8 }
 0x2e8   :  { %v6535_v22 = vpop.permute.xlu1 %724 }
 0x2e9   :  { %9205 = vst [vmem:[#allocation47_spill] sm:$0xff] %v6535_v22  ;;  %v723_v52 = vpop.permute.xlu0 %722 }
 0x2ea   :  { %1593 = vrot.lane.b32.xlu1 %v6540_v43, %s4379_s8  ;;  %v749_v2 = vsel %vm740_vm8, %v723_v52, %v6535_v22  ;;  %v748_v37 = vsel %vm740_vm8, %v9208_v47, %v723_v52  ;;  %v9210_v52 = vld [vmem:[#allocation26_spill] sm:$0xff] }
 0x2eb   :  { %1591 = vrot.lane.b32.xlu0 %v6148_v7, %s4379_s8  ;;  %2787 = vmatprep.subr.bf16.mxu0 %v749_v2 }
 0x2ec   :  { %2788 = vmatpush2.bf16.msra.mxu0 %v748_v37  ;;  %v6550_v29 = vpop.permute.xlu1 %864  ;;  %v9212_v37 = vld [vmem:[#allocation68_spill] sm:$0xff] }
 0x2ed   :  { %9209 = vst [vmem:[#allocation43_spill] sm:$0xff] %v6550_v29  ;;  %v863_v58 = vpop.permute.xlu0 %862  ;;  %v1336_v45 = vsel %vm9213_vm13, %v9212_v37, %v1315_v0  ;;  %v9216_v0 = vld [vmem:[#allocation70_spill] sm:$0xff]  ;;  %vm9217_vm13 = vmmov %vm9211_vm5 }
 0x2ee   :  { %1663 = vrot.lane.b32.xlu1 %v6555_v55, %s4379_s8  ;;  %v902_v42 = vsel %vm898_vm14, %v863_v58, %v6550_v29  ;;  %v901_v47 = vsel %vm898_vm14, %v9210_v52, %v863_v58 }
 0x2ef   :  { %1661 = vrot.lane.b32.xlu0 %v6329_v4, %s4379_s8  ;;  %2850 = vmatprep.subr.bf16.mxu1 %v902_v42  ;;  %v6578_v4 = vsel %vm530_vm6, %v6312_v31, %v6512_v23 }
 0x2f0   :  { %2851 = vmatpush1.bf16.msra.mxu1 %v901_v47  ;;  %v1301_v7 = vpop.permute.xlu1 %1300 }
 0x2f1   :  { %v6565_v2 = vpop.permute.xlu0 %504  ;;  %v1330_v47 = vsel %vm9217_vm13, %v9216_v0, %v1301_v7  ;;  %vm9223_vm13 = vmmov %vm9211_vm5 }
 0x2f2   :  { %1579 = vrot.lane.b32.xlu1 %v1337_v10, %s4379_s8  ;;  %v9218_v10 = vld [vmem:[#allocation71_spill] sm:$0xff] }
 0x2f3   :  { %1577 = vrot.lane.b32.xlu0 %v1336_v45, %s4379_s8 }
 0x2f4   :  { %v711_v29 = vpop.permute.xlu1 %710 }
 0x2f5   :  { %v6573_v58 = vpop.permute.xlu0 %1302 }
 0x2f6   :  { %9214 = vst [vmem:[#allocation38_spill] sm:$0xff] %v6573_v58  ;;  %1649 = vrot.lane.b32.xlu1 %v6578_v4, %s4379_s8  ;;  %v1331_v45 = vsel %vm9211_vm5, %v1301_v7, %v6573_v58  ;;  %v6603_v7 = vsel %vm530_vm6, %v6301_v6, %v6565_v2  ;;  %v9233_v58 = vld [vmem:[#allocation49_spill] sm:$0xff] }
 0x2f7   :  { %1647 = vrot.lane.b32.xlu0 %v6354_v41, %s4379_s8  ;;  %v743_v41 = vsel %vm740_vm8, %v9218_v10, %v711_v29  ;;  %v9222_v10 = vld [vmem:[#allocation72_spill] sm:$0xff] }
 0x2f8   :  { %v812_v42 = vpop.permute.xlu1 %811 }
 0x2f9   :  { %v6584_v52 = vpop.permute.xlu0 %712 }
 0x2fa   :  { %9215 = vst [vmem:[#allocation39_spill] sm:$0xff] %v6584_v52  ;;  %1565 = vrot.lane.b32.xlu1 %v1331_v45, %s4379_s8  ;;  %v744_v31 = vsel %vm740_vm8, %v711_v29, %v6584_v52  ;;  %v9220_v29 = vld [vmem:[#allocation23_spill] sm:$0xff] }
 0x2fb   :  { %1563 = vrot.lane.b32.xlu0 %v1330_v47, %s4379_s8  ;;  %2789 = vmatprep.subr.bf16.mxu0 %v744_v31  ;;  %v834_v0 = vsel %vm819_vm7, %v9220_v29, %v812_v42 }
 0x2fc   :  { %2790 = vmatpush2.bf16.msra.mxu0 %v743_v41  ;;  %v6596_v37 = vpop.permute.xlu1 %458 }
 0x2fd   :  { %v6598_v19 = vpop.permute.xlu0 %813 }
 0x2fe   :  { %9219 = vst [vmem:[#allocation34_spill] sm:$0xff] %v6598_v19  ;;  %1635 = vrot.lane.b32.xlu1 %v6603_v7, %s4379_s8  ;;  %v835_v45 = vsel %vm819_vm7, %v812_v42, %v6598_v19  ;;  %v6624_v42 = vsel %vm460_vm2, %v6356_v59, %v6596_v37  ;;  %v9229_v59 = vld [vmem:[#allocation32_spill] sm:$0xff] }
 0x2ff   :  { %1633 = vrot.lane.b32.xlu0 %v6373_v60, %s4379_s8  ;;  %2852 = vmatprep.subr.bf16.mxu1 %v835_v45  ;;  %9224 = vst [vmem:[#allocation33_spill] sm:$0xff] %v6624_v42  ;;  %v9225_v45 = vld [vmem:[#allocation57_spill] sm:$0xff] }
 0x300   :  { %2853 = vmatpush1.bf16.msra.mxu1 %v834_v0  ;;  %v6613_v47 = vpop.permute.xlu1 %1288 }
 0x301   :  { %9221 = vst [vmem:[#allocation35_spill] sm:$0xff] %v6613_v47  ;;  %v1287_v31 = vpop.permute.xlu0 %1286 }
 0x302   :  { %v1325_v6 = vsel %vm9211_vm5, %v1287_v31, %v6613_v47  ;;  %v1324_v41 = vsel %vm9223_vm13, %v9222_v10, %v1287_v31  ;;  %v9226_v31 = vld [vmem:[#allocation60_spill] sm:$0xff]  ;;  %v6640_v47 = vsel %vm320_vm4, %v9174_v56, %v9229_v59  ;;  %vm9250_vm5 = vcmask 539648  }
 0x303   :  { %1551 = vrot.lane.b32.xlu1 %v1325_v6, %s4379_s8  ;;  %1549 = vrot.lane.b32.xlu0 %v1324_v41, %s4379_s8  ;;  %v9228_v10 = vld [vmem:[#allocation56_spill] sm:$0xff]  ;;  %9230 = vst [vmem:[#allocation28_spill] sm:$0xff] %v6640_v47  ;;  %vm9252_vm13 = vmmov %vm9250_vm5 }
 0x304   :  { %v1207_v19 = vpop.permute.xlu1 %1206 }
 0x305   :  { %v667_v60 = vpop.permute.xlu0 %666 }
 0x306   :  { %v684_v29 = vsel %vm670_vm9, %v9225_v45, %v667_v60 }
 0x307   :  { %1621 = vrot.lane.b32.xlu1 %v6624_v42, %s4379_s8  ;;  %1619 = vrot.lane.b32.xlu0 %v6402_v17, %s4379_s8  ;;  %v9231_v17 = vld [vmem:[#allocation93_spill] sm:$0xff] }
 0x308   :  { %2791 = vmatprep.subr.bf16.mxu0 %v684_v29  ;;  %v655_v0 = vpop.permute.xlu1 %654 }
 0x309   :  { %2792 = vmatpush2.bf16.msra.mxu0 %v9226_v31  ;;  %v6633_v6 = vpop.permute.xlu0 %1208  ;;  %v679_v41 = vsel %vm670_vm9, %v9228_v10, %v655_v0  ;;  %v1229_v31 = vsel %vm1214_vm15, %v9231_v17, %v1207_v19  ;;  %v9239_v17 = vld [vmem:[#allocation30_spill] sm:$0xff] }
 0x30a   :  { %9227 = vst [vmem:[#allocation31_spill] sm:$0xff] %v6633_v6  ;;  %2793 = vmatprep.subr.bf16.mxu0 %v679_v41  ;;  %v1230_v45 = vsel %vm1214_vm15, %v1207_v19, %v6633_v6  ;;  %v6656_v6 = vsel %vm460_vm2, %v9188_v54, %v9234_v25 }
 0x30b   :  { %1537 = vrot.lane.b32.xlu1 %v6640_v47, %s4379_s8  ;;  %1535 = vrot.lane.b32.xlu0 %v6200_v11, %s4379_s8  ;;  %9235 = vst [vmem:[#allocation21_spill] sm:$0xff] %v6656_v6  ;;  %v9236_v47 = vld [vmem:[#allocation95_spill] sm:$0xff] }
 0x30c   :  { %2854 = vmatprep.subr.bf16.mxu1 %v1230_v45  ;;  %v6650_v10 = vpop.permute.xlu1 %1194  ;;  %v9238_v45 = vld [vmem:[#allocation74_spill] sm:$0xff] }
 0x30d   :  { %9232 = vst [vmem:[#allocation25_spill] sm:$0xff] %v6650_v10  ;;  %2794 = vmatpush2.bf16.msra.mxu0 %v9233_v58  ;;  %2855 = vmatpush2.bf16.msra.mxu1 %v1229_v31  ;;  %v1193_v56 = vpop.permute.xlu0 %1192  ;;  %v6673_v31 = vsel %vm320_vm4, %v9175_v20, %v9239_v17 }
 0x30e   :  { %v1224_v52 = vsel %vm1214_vm15, %v1193_v56, %v6650_v10  ;;  %v1223_v11 = vsel %vm1214_vm15, %v9236_v47, %v1193_v56  ;;  %9240 = vst [vmem:[#allocation81_spill] sm:$0xff] %v6673_v31 }
 0x30f   :  { %1607 = vrot.lane.b32.xlu1 %v6656_v6, %s4379_s8  ;;  %1605 = vrot.lane.b32.xlu0 %v6417_v51, %s4379_s8  ;;  %v9241_v51 = vld [vmem:[#allocation64_spill] sm:$0xff] }
 0x310   :  { %2856 = vmatprep.subr.bf16.mxu1 %v1224_v52  ;;  %v643_v19 = vpop.permute.xlu1 %642 }
 0x311   :  { %2857 = vmatpush2.bf16.msra.mxu1 %v1223_v11  ;;  %v6666_v58 = vpop.permute.xlu0 %668  ;;  %v674_v54 = vsel %vm670_vm9, %v9238_v45, %v643_v19  ;;  %v9244_v11 = vld [vmem:[#allocation59_spill] sm:$0xff] }
 0x312   :  { %9237 = vst [vmem:[#allocation18_spill] sm:$0xff] %v6666_v58  ;;  %2795 = vmatprep.subr.bf16.mxu0 %v674_v54  ;;  %v6684_v56 = vsel %vm670_vm9, %v667_v60, %v6666_v58 }
 0x313   :  { %1523 = vrot.lane.b32.xlu1 %v6673_v31, %s4379_s8  ;;  %1521 = vrot.lane.b32.xlu0 %v6216_v12, %s4379_s8  ;;  %9243 = vst [vmem:[#allocation83_spill] sm:$0xff] %v6684_v56 }
 0x314   :  { %2796 = vmatpush2.bf16.msra.mxu0 %v9241_v51  ;;  %v6680_v52 = vpop.permute.xlu1 %1180  ;;  %v4297_v51 = vld [vmem:[%s8732_s2 + $0x8] ss:$40 sps:$4 sm:$0xff]  }
 0x315   :  { %9242 = vst [vmem:[#allocation15_spill] sm:$0xff] %v6680_v52  ;;  %v1179_v47 = vpop.permute.xlu0 %1178 }
 0x316   :  { %v1218_v20 = vsel %vm1214_vm15, %v1179_v47, %v6680_v52  ;;  %v1217_v45 = vsel %vm1214_vm15, %v9244_v11, %v1179_v47  ;;  %v4298_v52 = vld [vmem:[%s8732_s2 + $0x5c] ss:$40 sps:$4 sm:$0xff]   ;;  %v9246_v47 = vld [vmem:[#allocation27_spill] sm:$0xff] }
 0x317   :  { %1745 = vrot.lane.b32.xlu0 %v684_v29, %s4379_s8  ;;  %1747 = vrot.lane.b32.xlu1 %v6684_v56, %s4379_s8  ;;  %v6704_v29 = vsel %vm320_vm4, %v9176_v16, %v9246_v47  ;;  %v41_v16 = vld [vmem:[%s8731_s0 + $0xa0] sm:$0xff] }
 0x318   :  { %2858 = vmatprep.subr.bf16.mxu1 %v1218_v20  ;;  %v1128_v12 = vpop.permute.xlu1 %1127  ;;  %2798 = vmatmul.mubr.bf16.vlgmr.msra.gmra.mxu0 %v4297_v51  ;;  %9247 = vst [vmem:[#allocation12_spill] sm:$0xff] %v6704_v29 }
 0x319   :  { %2859 = vmatpush2.bf16.msra.mxu1 %v1217_v45  ;;  %v6696_v60 = vpop.permute.xlu0 %656  ;;  %2807 = vmatprep.mubr.bf16.mxu0 %v4298_v52 }
 0x31a   :  { %9245 = vst [vmem:[#allocation51_spill] sm:$0xff] %v6696_v60  ;;  %v6714_v45 = vsel %vm670_vm9, %v655_v0, %v6696_v60  ;;  %v48_v0 = vld [vmem:[%s8731_s0 + $0xd8] sm:$0xff] }
 0x31b   :  { %1507 = vrot.lane.b32.xlu0 %v6231_v1, %s4379_s8  ;;  %1509 = vrot.lane.b32.xlu1 %v6704_v29, %s4379_s8  ;;  %9249 = vst [vmem:[#allocation9_spill] sm:$0xff] %v6714_v45  ;;  %v9251_v1 = vld [vmem:[#allocation48_spill] sm:$0xff] }
 0x31c   :  { %v1480_v20 = vpop.permute.xlu1 %1479  ;;  %v1150_v51 = vsel %vm9252_vm13, %v9251_v1, %v1128_v12  ;;  %v4300_v1 = vld [vmem:[%s8732_s2 + $0xac] ss:$40 sps:$4 sm:$0xff]   ;;  %vm9261_vm13 = vmmov %vm9250_vm5 }
 0x31d   :  { %v6710_v11 = vpop.permute.xlu0 %1129 }
 0x31e   :  { %9248 = vst [vmem:[#allocation62_spill] sm:$0xff] %v6710_v11  ;;  %v1151_v52 = vsel %vm9250_vm5, %v1128_v12, %v6710_v11  ;;  %v34_v11 = vld [vmem:[%s8731_s0 + $0x68] sm:$0xff] }
 0x31f   :  { %1731 = vrot.lane.b32.xlu0 %v679_v41, %s4379_s8  ;;  %1733 = vrot.lane.b32.xlu1 %v6714_v45, %s4379_s8  ;;  %v27_v41 = vld [vmem:[%s8731_s0 + $0x30] sm:$0xff]  ;;  %v76_v58 = vmax.f32 %v34_v11, 0.0 }
 0x320   :  { %2860 = vmatprep.subr.bf16.mxu1 %v1151_v52  ;;  %v6726_v10 = vpop.permute.xlu1 %644  ;;  %v4299_v52 = vld [vmem:[%s8732_s2 + $0x58] ss:$40 sps:$4 sm:$0xff]   ;;  %v9255_v45 = vld [vmem:[#allocation24_spill] sm:$0xff]  ;;  %v69_v29 = vmax.f32 %v27_v41, 0.0 }
 0x321   :  { %9253 = vst [vmem:[#allocation2_spill] sm:$0xff] %v6726_v10  ;;  %2808 = vmatmul.mubr.bf16.gmra.mxu0 %v4299_v52  ;;  %2861 = vmatpush2.bf16.msra.mxu1 %v1150_v51  ;;  %v6740_v12 = vpop.permute.xlu0 %1481  ;;  %v6748_v60 = vsel %vm250_vm0, %v9177_v50, %v9255_v45  ;;  %v83_v51 = vmax.f32 %v41_v16, 0.0  ;;  %v90_v52 = vmax.f32 %v48_v0, 0.0  ;;  %v55_v50 = vld [vmem:[%s8731_s0 + $0x110] sm:$0xff]  ;;  %v6768_v16 = vsel %vm670_vm9, %v643_v19, %v6726_v10  ;;  %v9295_v45 = vld [vmem:[#allocation54_spill] sm:$0xff] }
 0x322   :  { %9254 = vst [vmem:[#allocation86_spill] sm:$0xff] %v6740_v12  ;;  %2817 = vmatprep.mubr.bf16.mxu0 %v4300_v1  ;;  %9256 = vst [vmem:[#allocation65_spill] sm:$0xff] %v6748_v60  ;;  %v1799_v56 = vsel %vm1753_vm11, %v1480_v20, %v6740_v12  ;;  %v9257_v1 = vld [vmem:[#allocation82_spill] sm:$0xff]  ;;  %v6779_v41 = vpack.c.bf16 %v76_v58, %v69_v29  ;;  %v9264_v29 = vld [vmem:[#allocation84_spill] sm:$0xff] }
 0x323   :  { %1493 = vrot.lane.b32.xlu0 %v6243_v8, %s4379_s8  ;;  %1495 = vrot.lane.b32.xlu1 %v6748_v60, %s4379_s8  ;;  %v1798_v47 = vsel %vm1753_vm11, %v9257_v1, %v1480_v20  ;;  %v62_v8 = vld [vmem:[%s8731_s0 + $0x148] sm:$0xff]  ;;  %9259 = vst [vmem:[#allocation66_spill] sm:$0xff] %v6768_v16  ;;  %v6777_v0 = vpack.c.bf16 %v90_v52, %v83_v51 }
 0x324   :  { %2911 = vmatprep.subr.bf16.mxu0 %v1799_v56  ;;  %v6758_v31 = vpop.permute.xlu1 %1115  ;;  %v9260_v20 = vld [vmem:[#allocation75_spill] sm:$0xff]  ;;  %9262 = vst [vmem:[#allocation29_spill] sm:$0xff] %v6779_v41  ;;  %v104_v1 = vmax.f32 %v62_v8, 0.0 }
 0x325   :  { %9258 = vst [vmem:[#allocation88_spill] sm:$0xff] %v6758_v31  ;;  %2912 = vmatpush1.bf16.msra.mxu0 %v1798_v47  ;;  %v1114_v12 = vpop.permute.xlu0 %1113  ;;  %v97_v47 = vmax.f32 %v55_v50, 0.0 }
 0x326   :  { %v1145_v56 = vsel %vm9250_vm5, %v1114_v12, %v6758_v31  ;;  %v1144_v11 = vsel %vm9261_vm13, %v9260_v20, %v1114_v12  ;;  %v4301_v31 = vld [vmem:[%s8732_s2 + $0xa8] ss:$40 sps:$4 sm:$0xff]   ;;  %vm9267_vm13 = vmmov %vm9250_vm5 }
 0x327   :  { %1717 = vrot.lane.b32.xlu0 %v674_v54, %s4379_s8  ;;  %1719 = vrot.lane.b32.xlu1 %v6768_v16, %s4379_s8  ;;  %v4302_v54 = vld [vmem:[%s8732_s2 + $0xfc] ss:$40 sps:$4 sm:$0xff]  }
 0x328   :  { %2862 = vmatprep.subr.bf16.mxu1 %v1145_v56  ;;  %v6781_v19 = vpop.permute.xlu1 %1467  ;;  %v9266_v56 = vld [vmem:[#allocation76_spill] sm:$0xff] }
 0x329   :  { %9263 = vst [vmem:[#allocation69_spill] sm:$0xff] %v6781_v19  ;;  %2818 = vmatmul.mubr.bf16.gmra.mxu0 %v4301_v31  ;;  %2863 = vmatpush2.bf16.msra.mxu1 %v1144_v11  ;;  %v1466_v12 = vpop.permute.xlu0 %1465  ;;  %v6797_v31 = vpack.c.bf16 %v104_v1, %v97_v47  ;;  %v4303_v47 = vld [vmem:[%s8732_s2 + $0xf8] ss:$40 sps:$4 sm:$0xff]  }
 0x32a   :  { %2827 = vmatprep.mubr.bf16.mxu0 %v4302_v54  ;;  %v1793_v58 = vsel %vm1753_vm11, %v1466_v12, %v6781_v19  ;;  %v1792_v51 = vsel %vm1753_vm11, %v9264_v29, %v1466_v12  ;;  %v4304_v12 = vld [vmem:[%s8732_s2 + $0x1c] ss:$40 sps:$4 sm:$0xff]  }
 0x32b   :  { %1262 = vrot.lane.b32.xlu0 %v6777_v0, %s4368_s18  ;;  %1260 = vrot.lane.b32.xlu1 %v6779_v41, %s4368_s18 }
 0x32c   :  { %2913 = vmatprep.subr.bf16.mxu0 %v1793_v58  ;;  %v6799_v52 = vpop.permute.xlu1 %1101  ;;  %v9269_v58 = vld [vmem:[#allocation85_spill] sm:$0xff] }
 0x32d   :  { %9265 = vst [vmem:[#allocation26_spill] sm:$0xff] %v6799_v52  ;;  %2914 = vmatpush1.bf16.msra.mxu0 %v1792_v51  ;;  %v1100_v50 = vpop.permute.xlu0 %1099 }
 0x32e   :  { %v1139_v8 = vsel %vm9250_vm5, %v1100_v50, %v6799_v52  ;;  %v1138_v20 = vsel %vm9267_vm13, %v9266_v56, %v1100_v50  ;;  %v9271_v56 = vld [vmem:[#allocation80_spill] sm:$0xff]  ;;  %vm9370_vm5 = vcmask 556032  }
 0x32f   :  { %1255 = vrot.lane.b32.xlu0 %v6797_v31, %s4367_s17  ;;  %1253 = vrot.lane.b32.xlu1 %v6777_v0, %s4367_s17  ;;  %vm9372_vm13 = vmmov %vm9370_vm5 }
 0x330   :  { %2864 = vmatprep.subr.bf16.mxu1 %v1139_v8  ;;  %v6809_v11 = vpop.permute.xlu1 %1453 }
 0x331   :  { %9268 = vst [vmem:[#allocation68_spill] sm:$0xff] %v6809_v11  ;;  %2828 = vmatmul.mubr.bf16.gmra.mxu0 %v4303_v47  ;;  %2865 = vmatpush2.bf16.msra.mxu1 %v1138_v20  ;;  %v1452_v1 = vpop.permute.xlu0 %1451 }
 0x332   :  { %2943 = vmatprep.mubr.bf16.mxu0 %v4304_v12  ;;  %v1787_v54 = vsel %vm1753_vm11, %v1452_v1, %v6809_v11  ;;  %v1786_v29 = vsel %vm1753_vm11, %v9269_v58, %v1452_v1 }
 0x333   :  { %1251 = vrot.lane.b32.xlu0 %v6779_v41, %s4367_s17  ;;  %801 = vrot.lane.b32.xlu1 %v9137_v57, %s4374_s24 }
 0x334   :  { %2915 = vmatprep.subr.bf16.mxu0 %v1787_v54  ;;  %v6825_v51 = vpop.permute.xlu1 %1050  ;;  %v9273_v54 = vld [vmem:[#allocation87_spill] sm:$0xff] }
 0x335   :  { %9270 = vst [vmem:[#allocation70_spill] sm:$0xff] %v6825_v51  ;;  %2916 = vmatpush1.bf16.msra.mxu0 %v1786_v29  ;;  %v1049_v50 = vpop.permute.xlu0 %1048 }
 0x336   :  { %v1072_v8 = vsel %vm1056_vm10, %v1049_v50, %v6825_v51  ;;  %v1071_v20 = vsel %vm1056_vm10, %v9271_v56, %v1049_v50  ;;  %v9275_v56 = vld [vmem:[#allocation79_spill] sm:$0xff] }
 0x337   :  { %803 = vrot.lane.b32.xlu0 %v6777_v0, %s4374_s24  ;;  %787 = vrot.lane.b32.xlu1 %v9139_v53, %s4374_s24  ;;  %v9281_v51 = vld [vmem:[#allocation7_spill] sm:$0xff] }
 0x338   :  { %2866 = vmatprep.subr.bf16.mxu1 %v1072_v8  ;;  %v6835_v47 = vpop.permute.xlu1 %1439 }
 0x339   :  { %9272 = vst [vmem:[#allocation71_spill] sm:$0xff] %v6835_v47  ;;  %2867 = vmatpush2.bf16.msra.mxu1 %v1071_v20  ;;  %v1438_v1 = vpop.permute.xlu0 %1437 }
 0x33a   :  { %v1781_v12 = vsel %vm1753_vm11, %v1438_v1, %v6835_v47  ;;  %v1780_v58 = vsel %vm1753_vm11, %v9273_v54, %v1438_v1 }
 0x33b   :  { %789 = vrot.lane.b32.xlu0 %v6779_v41, %s4374_s24  ;;  %1339 = vrot.lane.b32.xlu1 %v6779_v41, %s4371_s21 }
 0x33c   :  { %2917 = vmatprep.subr.bf16.mxu0 %v1781_v12  ;;  %v6845_v29 = vpop.permute.xlu1 %1036 }
 0x33d   :  { %9274 = vst [vmem:[#allocation23_spill] sm:$0xff] %v6845_v29  ;;  %2918 = vmatpush1.bf16.msra.mxu0 %v1780_v58  ;;  %v1035_v50 = vpop.permute.xlu0 %1034  ;;  %v9277_v58 = vld [vmem:[#allocation89_spill] sm:$0xff] }
 0x33e   :  { %v1066_v8 = vsel %vm1056_vm10, %v1035_v50, %v6845_v29  ;;  %v1065_v20 = vsel %vm1056_vm10, %v9275_v56, %v1035_v50 }
 0x33f   :  { %738 = vrot.lane.b32.xlu0 %v9135_v46, %s4375_s25  ;;  %1318 = vrot.lane.b32.xlu1 %v6797_v31, %s4376_s26 }
 0x340   :  { %2868 = vmatprep.subr.bf16.mxu1 %v1066_v8  ;;  %v6855_v1 = vpop.permute.xlu1 %1425  ;;  %v4305_v8 = vld [vmem:[%s8732_s2 + $0x10] ss:$40 sps:$4 sm:$0xff]  }
 0x341   :  { %9276 = vst [vmem:[#allocation72_spill] sm:$0xff] %v6855_v1  ;;  %2869 = vmatpush2.bf16.msra.mxu1 %v1065_v20  ;;  %v1424_v12 = vpop.permute.xlu0 %1423  ;;  %v4306_v20 = vld [vmem:[%s8732_s2 + $0x64] ss:$40 sps:$4 sm:$0xff]  }
 0x342   :  { %v1775_v54 = vsel %vm1753_vm11, %v1424_v12, %v6855_v1  ;;  %v1774_v29 = vsel %vm1753_vm11, %v9277_v58, %v1424_v12  ;;  %v9279_v58 = vld [vmem:[#allocation90_spill] sm:$0xff] }
 0x343   :  { %726 = vrot.lane.b32.xlu0 %v9137_v57, %s4375_s25  ;;  %1304 = vrot.lane.b32.xlu1 %v6777_v0, %s4376_s26 }
 0x344   :  { %2919 = vmatprep.subr.bf16.mxu0 %v1775_v54  ;;  %v6865_v50 = vpop.permute.xlu1 %1411  ;;  %2871 = vmatmul.mubr.bf16.vlgmr.msra.gmra.mxu1 %v4305_v8 }
 0x345   :  { %9278 = vst [vmem:[#allocation57_spill] sm:$0xff] %v6865_v50  ;;  %2920 = vmatpush1.bf16.msra.mxu0 %v1774_v29  ;;  %v1410_v56 = vpop.permute.xlu0 %1409  ;;  %2880 = vmatprep.mubr.bf16.mxu1 %v4306_v20 }
 0x346   :  { %v1769_v12 = vsel %vm1753_vm11, %v1410_v56, %v6865_v50  ;;  %v1768_v54 = vsel %vm1753_vm11, %v9279_v58, %v1410_v56 }
 0x347   :  { %714 = vrot.lane.b32.xlu0 %v9139_v53, %s4375_s25  ;;  %1290 = vrot.lane.b32.xlu1 %v6779_v41, %s4376_s26 }
 0x348   :  { %2921 = vmatprep.subr.bf16.mxu0 %v1769_v12  ;;  %v6881_v29 = vpop.permute.xlu1 %1705  ;;  %v4307_v12 = vld [vmem:[%s8732_s2 + $0x60] ss:$40 sps:$4 sm:$0xff]  }
 0x349   :  { %9280 = vst [vmem:[#allocation60_spill] sm:$0xff] %v6881_v29  ;;  %2922 = vmatpush1.bf16.msra.mxu0 %v1768_v54  ;;  %v1704_v8 = vpop.permute.xlu0 %1703 }
 0x34a   :  { %v1895_v20 = vsel %vm1753_vm11, %v1704_v8, %v6881_v29  ;;  %v1894_v52 = vsel %vm1753_vm11, %v9281_v51, %v1704_v8  ;;  %v4308_v51 = vld [vmem:[%s8732_s2 + $0xb4] ss:$40 sps:$4 sm:$0xff]   ;;  %v9283_v8 = vld [vmem:[#allocation91_spill] sm:$0xff]  ;;  %v9285_v29 = vld [vmem:[#allocation6_spill] sm:$0xff] }
 0x34b   :  { %1273 = vrot.lane.b32.xlu0 %v6797_v31, %s4369_s19  ;;  %1271 = vrot.lane.b32.xlu1 %v6777_v0, %s4369_s19 }
 0x34c   :  { %2984 = vmatprep.subr.bf16.mxu1 %v1895_v20  ;;  %v6891_v56 = vpop.permute.xlu1 %1397  ;;  %2881 = vmatmul.mubr.bf16.gmra.mxu1 %v4307_v12 }
 0x34d   :  { %9282 = vst [vmem:[#allocation56_spill] sm:$0xff] %v6891_v56  ;;  %2985 = vmatpush1.bf16.msra.mxu1 %v1894_v52  ;;  %v1396_v58 = vpop.permute.xlu0 %1395  ;;  %2890 = vmatprep.mubr.bf16.mxu1 %v4308_v51 }
 0x34e   :  { %v1763_v54 = vsel %vm1753_vm11, %v1396_v58, %v6891_v56  ;;  %v1762_v20 = vsel %vm1753_vm11, %v9283_v8, %v1396_v58 }
 0x34f   :  { %1269 = vrot.lane.b32.xlu0 %v6779_v41, %s4369_s19  ;;  %1024 = vrot.lane.b32.xlu1 %v9139_v53, %s4378_s7 }
 0x350   :  { %2923 = vmatprep.subr.bf16.mxu0 %v1763_v54  ;;  %v6907_v52 = vpop.permute.xlu1 %1691  ;;  %v4309_v54 = vld [vmem:[%s8732_s2 + $0xb0] ss:$40 sps:$4 sm:$0xff]  }
 0x351   :  { %9284 = vst [vmem:[#allocation93_spill] sm:$0xff] %v6907_v52  ;;  %2924 = vmatpush1.bf16.msra.mxu0 %v1762_v20  ;;  %v1690_v12 = vpop.permute.xlu0 %1689 }
 0x352   :  { %v1889_v51 = vsel %vm1753_vm11, %v1690_v12, %v6907_v52  ;;  %v1888_v56 = vsel %vm1753_vm11, %v9285_v29, %v1690_v12  ;;  %v9287_v52 = vld [vmem:[#allocation92_spill] sm:$0xff]  ;;  %v4310_v29 = vld [vmem:[%s8732_s2 + $0x104] ss:$40 sps:$4 sm:$0xff]  }
 0x353   :  { %2986 = vmatprep.subr.bf16.mxu1 %v1889_v51  ;;  %1026 = vrot.lane.b32.xlu0 %v6779_v41, %s4378_s7  ;;  %v9302_v41 = vld [vmem:[#allocation61_spill] sm:$0xff] }
 0x354   :  { %2987 = vmatpush1.bf16.msra.mxu1 %v1888_v56  ;;  %v6915_v58 = vpop.permute.xlu1 %1383 }
 0x355   :  { %9286 = vst [vmem:[#allocation49_spill] sm:$0xff] %v6915_v58  ;;  %v1382_v8 = vpop.permute.xlu0 %1381  ;;  %2891 = vmatmul.mubr.bf16.gmra.mxu1 %v4309_v54  ;;  %v9289_v54 = vld [vmem:[#allocation4_spill] sm:$0xff] }
 0x356   :  { %v1757_v20 = vsel %vm1753_vm11, %v1382_v8, %v6915_v58  ;;  %v1756_v50 = vsel %vm1753_vm11, %v9287_v52, %v1382_v8  ;;  %2900 = vmatprep.mubr.bf16.mxu1 %v4310_v29  ;;  %v2361_v52 = vpop.f32.mrf.mxu0  ;;  %v9291_v29 = vld [vmem:[#allocation94_spill] sm:$0xff] }
 0x357   :  { %2925 = vmatprep.subr.bf16.mxu0 %v1757_v20  ;;  %v4311_v20 = vld [vmem:[%s8732_s2 + $0x100] ss:$40 sps:$4 sm:$0xff]  }
 0x358   :  { %2926 = vmatpush1.bf16.msra.mxu0 %v1756_v50  ;;  %v6927_v56 = vpop.permute.xlu1 %1677 }
 0x359   :  { %9288 = vst [vmem:[#allocation95_spill] sm:$0xff] %v6927_v56  ;;  %v1676_v12 = vpop.permute.xlu0 %1675 }
 0x35a   :  { %v1883_v51 = vsel %vm1753_vm11, %v1676_v12, %v6927_v56  ;;  %v1882_v1 = vsel %vm1753_vm11, %v9289_v54, %v1676_v12  ;;  %v4312_v12 = vld [vmem:[%s8732_s2 + $0x24] ss:$40 sps:$4 sm:$0xff]  }
 0x35b   :  { %2988 = vmatprep.subr.bf16.mxu1 %v1883_v51  ;;  %v2434_v51 = vpop.f32.mrf.mxu1 }
 0x35c   :  { %2989 = vmatpush1.bf16.msra.mxu1 %v1882_v1  ;;  %v6933_v58 = vpop.permute.xlu1 %1593  ;;  %v2363_v1 = vpop.f32.mrf.mxu0  ;;  %v6946_v54 = vadd.f32 %v2434_v51, %v2361_v52 }
 0x35d   :  { %9290 = vst [vmem:[#allocation74_spill] sm:$0xff] %v6933_v58  ;;  %v1592_v8 = vpop.permute.xlu0 %1591  ;;  %2901 = vmatmul.mubr.bf16.gmra.mxu1 %v4311_v20 }
 0x35e   :  { %v1847_v50 = vsel %vm1753_vm11, %v1592_v8, %v6933_v58  ;;  %v1846_v56 = vsel %vm1753_vm11, %v9291_v29, %v1592_v8  ;;  %4167 = vmatprep.mubr.msk.bf16.mxu1 %vm2314_vm12, %v4312_v12  ;;  %v2365_v20 = vpop.f32.mrf.mxu0  ;;  %v2436_v58 = vpop.f32.mrf.mxu1  ;;  %v9293_v29 = vld [vmem:[#allocation22_spill] sm:$0xff] }
 0x35f   :  { %2927 = vmatprep.subr.bf16.mxu0 %v1847_v50  ;;  %v6954_v16 = vadd.f32 %v2436_v58, %v2363_v1 }
 0x360   :  { %2928 = vmatpush2.bf16.msra.mxu0 %v1846_v56  ;;  %v6948_v47 = vpop.permute.xlu1 %1663  ;;  %v6956_v12 = vpop.f32.mrf.mxu0 }
 0x361   :  { %9292 = vst [vmem:[#allocation64_spill] sm:$0xff] %v6948_v47  ;;  %v1662_v11 = vpop.permute.xlu0 %1661  ;;  %v2438_v50 = vpop.f32.mrf.mxu1 }
 0x362   :  { %v1877_v8 = vsel %vm1753_vm11, %v1662_v11, %v6948_v47  ;;  %v1876_v19 = vsel %vm1753_vm11, %v9293_v29, %v1662_v11  ;;  %v6960_v56 = vadd.f32 %v2438_v50, %v2365_v20  ;;  %v2371_v51 = vpop.f32.mrf.mxu0 }
 0x363   :  { %2990 = vmatprep.subr.bf16.mxu1 %v1877_v8  ;;  %v6962_v60 = vpop.f32.mrf.mxu1 }
 0x364   :  { %2991 = vmatpush1.bf16.msra.mxu1 %v1876_v19  ;;  %v6958_v52 = vpop.permute.xlu1 %1579  ;;  %v2373_v58 = vpop.f32.mrf.mxu0 }
 0x365   :  { %9294 = vst [vmem:[#allocation59_spill] sm:$0xff] %v6958_v52  ;;  %v1578_v10 = vpop.permute.xlu0 %1577  ;;  %v2444_v1 = vpop.f32.mrf.mxu1 }
 0x366   :  { %v1841_v47 = vsel %vm1753_vm11, %v1578_v10, %v6958_v52  ;;  %v1840_v11 = vsel %vm1753_vm11, %v9295_v45, %v1578_v10  ;;  %v6970_v19 = vadd.f32 %v2444_v1, %v2371_v51  ;;  %v2375_v20 = vpop.f32.mrf.mxu0 }
 0x367   :  { %2929 = vmatprep.subr.bf16.mxu0 %v1841_v47  ;;  %v2446_v50 = vpop.f32.mrf.mxu1 }
 0x368   :  { %2930 = vmatpush2.bf16.msra.mxu0 %v1840_v11  ;;  %v6968_v8 = vpop.permute.xlu1 %1649  ;;  %v6976_v22 = vadd.f32 %v2446_v50, %v2373_v58  ;;  %v6978_v10 = vpop.f32.mrf.mxu0 }
 0x369   :  { %9296 = vst [vmem:[#allocation48_spill] sm:$0xff] %v6968_v8  ;;  %v1648_v29 = vpop.permute.xlu0 %1647  ;;  %v2448_v45 = vpop.f32.mrf.mxu1 }
 0x36a   :  { %v1871_v17 = vsel %vm1753_vm11, %v1648_v29, %v6968_v8  ;;  %v1870_v52 = vsel %vm1753_vm11, %v6122_v34, %v1648_v29  ;;  %v6982_v51 = vadd.f32 %v2448_v45, %v2375_v20  ;;  %v2381_v11 = vpop.f32.mrf.mxu0 }
 0x36b   :  { %2992 = vmatprep.subr.bf16.mxu1 %v1871_v17  ;;  %v6984_v59 = vpop.f32.mrf.mxu1 }
 0x36c   :  { %2993 = vmatpush1.bf16.msra.mxu1 %v1870_v52  ;;  %v6980_v47 = vpop.permute.xlu1 %1565  ;;  %v2383_v58 = vpop.f32.mrf.mxu0 }
 0x36d   :  { %9297 = vst [vmem:[#allocation82_spill] sm:$0xff] %v6980_v47  ;;  %v1564_v1 = vpop.permute.xlu0 %1563  ;;  %v2454_v29 = vpop.f32.mrf.mxu1 }
 0x36e   :  { %v1835_v8 = vsel %vm1753_vm11, %v1564_v1, %v6980_v47  ;;  %v1834_v34 = vsel %vm1753_vm11, %v9298_v5, %v1564_v1  ;;  %v6992_v52 = vadd.f32 %v2454_v29, %v2381_v11  ;;  %v2385_v20 = vpop.f32.mrf.mxu0 }
 0x36f   :  { %2931 = vmatprep.subr.bf16.mxu0 %v1835_v8  ;;  %v2456_v45 = vpop.f32.mrf.mxu1 }
 0x370   :  { %2932 = vmatpush2.bf16.msra.mxu0 %v1834_v34  ;;  %v6990_v17 = vpop.permute.xlu1 %1635  ;;  %v6998_v6 = vadd.f32 %v2456_v45, %v2383_v58  ;;  %v2387_v5 = vpop.f32.mrf.mxu0 }
 0x371   :  { %9299 = vst [vmem:[#allocation75_spill] sm:$0xff] %v6990_v17  ;;  %v1634_v50 = vpop.permute.xlu0 %1633  ;;  %v2458_v8 = vpop.f32.mrf.mxu1 }
 0x372   :  { %v1865_v33 = vsel %vm1753_vm11, %v1634_v50, %v6990_v17  ;;  %v1864_v47 = vsel %vm1753_vm11, %v9300_v39, %v1634_v50  ;;  %v7000_v1 = vadd.f32 %v2458_v8, %v2385_v20  ;;  %v2391_v34 = vpop.f32.mrf.mxu0 }
 0x373   :  { %2994 = vmatprep.subr.bf16.mxu1 %v1865_v33  ;;  %v2460_v25 = vpop.f32.mrf.mxu1 }
 0x374   :  { %2995 = vmatpush1.bf16.msra.mxu1 %v1864_v47  ;;  %v2393_v39 = vpop.f32.mrf.mxu0  ;;  %v7008_v58 = vadd.f32 %v2460_v25, %v2387_v5 }
 0x375   :  { %v7002_v11 = vpop.permute.xlu1 %1551  ;;  %v1550_v29 = vpop.permute.xlu0 %1549 }
 0x376   :  { %9301 = vst [vmem:[#allocation84_spill] sm:$0xff] %v7002_v11  ;;  %v1829_v43 = vsel %vm1753_vm11, %v1550_v29, %v7002_v11  ;;  %v1828_v17 = vsel %vm1753_vm11, %v9302_v41, %v1550_v29  ;;  %v2464_v33 = vpop.f32.mrf.mxu1  ;;  %v2395_v47 = vpop.f32.mrf.mxu0  ;;  %v9304_v11 = vld [vmem:[#allocation52_spill] sm:$0xff] }
 0x377   :  { %2933 = vmatprep.subr.bf16.mxu0 %v1829_v43  ;;  %v7012_v45 = vadd.f32 %v2464_v33, %v2391_v34 }
 0x378   :  { %2934 = vmatpush2.bf16.msra.mxu0 %v1828_v17  ;;  %v2466_v41 = vpop.f32.mrf.mxu1  ;;  %v2397_v29 = vpop.f32.mrf.mxu0 }
 0x379   :  { %v7010_v20 = vpop.permute.xlu1 %1621  ;;  %v1620_v50 = vpop.permute.xlu0 %1619  ;;  %v7018_v43 = vadd.f32 %v2466_v41, %v2393_v39 }
 0x37a   :  { %9303 = vst [vmem:[#allocation76_spill] sm:$0xff] %v7010_v20  ;;  %v1859_v8 = vsel %vm1753_vm11, %v1620_v50, %v7010_v20  ;;  %v1858_v13 = vsel %vm1753_vm11, %v9304_v11, %v1620_v50  ;;  %v2468_v25 = vpop.f32.mrf.mxu1  ;;  %v2507_v17 = vpop.f32.mrf.mxu0  ;;  %v9306_v20 = vld [vmem:[#allocation73_spill] sm:$0xff] }
 0x37b   :  { %2996 = vmatprep.subr.bf16.mxu1 %v1859_v8  ;;  %v7022_v44 = vadd.f32 %v2468_v25, %v2395_v47  ;;  %v2508_v34 = vadd.f32 %v2507_v17, %v6946_v54 }
 0x37c   :  { %2997 = vmatpush1.bf16.msra.mxu1 %v1858_v13  ;;  %v2470_v50 = vpop.f32.mrf.mxu1  ;;  %v2509_v8 = vpop.f32.mrf.mxu0  ;;  %v2441_v13 = vadd.f32 %v6962_v60, %v6956_v12 }
 0x37d   :  { %v7020_v5 = vpop.permute.xlu1 %1537  ;;  %v1536_v42 = vpop.permute.xlu0 %1535  ;;  %v7031_v39 = vadd.f32 %v2470_v50, %v2397_v29  ;;  %v2510_v41 = vadd.f32 %v2509_v8, %v6954_v16 }
 0x37e   :  { %9305 = vst [vmem:[#allocation85_spill] sm:$0xff] %v7020_v5  ;;  %v1823_v33 = vsel %vm1753_vm11, %v1536_v42, %v7020_v5  ;;  %v1822_v11 = vsel %vm1753_vm11, %v9306_v20, %v1536_v42  ;;  %v2580_v47 = vpop.f32.mrf.mxu1  ;;  %v2511_v25 = vpop.f32.mrf.mxu0 }
 0x37f   :  { %2935 = vmatprep.subr.bf16.mxu0 %v1823_v33  ;;  %v7036_v5 = vadd.f32 %v2580_v47, %v2508_v34  ;;  %v2512_v42 = vadd.f32 %v2511_v25, %v6960_v56 }
 0x380   :  { %2936 = vmatpush2.bf16.msra.mxu0 %v1822_v11  ;;  %v2582_v12 = vpop.f32.mrf.mxu1  ;;  %v2513_v29 = vpop.f32.mrf.mxu0 }
 0x381   :  { %v7034_v54 = vpop.permute.xlu1 %1607  ;;  %v1606_v17 = vpop.permute.xlu0 %1605  ;;  %v7043_v16 = vadd.f32 %v2582_v12, %v2510_v41  ;;  %v2514_v33 = vadd.f32 %v2513_v29, %v2441_v13  ;;  %v2451_v13 = vadd.f32 %v6984_v59, %v6978_v10 }
 0x382   :  { %v1853_v20 = vsel %vm1753_vm11, %v1606_v17, %v7034_v54  ;;  %v1852_v60 = vsel %vm1753_vm11, %v6175_v15, %v1606_v17  ;;  %v2584_v11 = vpop.f32.mrf.mxu1  ;;  %v2517_v50 = vpop.f32.mrf.mxu0  ;;  %v9307_v15 = vld [vmem:[#allocation78_spill] sm:$0xff] }
 0x383   :  { %2998 = vmatprep.subr.bf16.mxu1 %v1853_v20  ;;  %v7047_v47 = vadd.f32 %v2584_v11, %v2512_v42  ;;  %v2518_v56 = vadd.f32 %v2517_v50, %v6970_v19 }
 0x384   :  { %2999 = vmatpush1.bf16.msra.mxu1 %v1852_v60  ;;  %v2586_v20 = vpop.f32.mrf.mxu1  ;;  %v2519_v41 = vpop.f32.mrf.mxu0 }
 0x385   :  { %v7045_v8 = vpop.permute.xlu1 %1523  ;;  %v1522_v34 = vpop.permute.xlu0 %1521  ;;  %v7056_v60 = vadd.f32 %v2586_v20, %v2514_v33  ;;  %v2520_v12 = vadd.f32 %v2519_v41, %v6976_v22 }
 0x386   :  { %v1817_v25 = vsel %vm1753_vm11, %v1522_v34, %v7045_v8  ;;  %v1816_v17 = vsel %vm1753_vm11, %v9307_v15, %v1522_v34  ;;  %v2590_v42 = vpop.f32.mrf.mxu1  ;;  %v2521_v29 = vpop.f32.mrf.mxu0 }
 0x387   :  { %2937 = vmatprep.subr.bf16.mxu0 %v1817_v25  ;;  %v7061_v50 = vadd.f32 %v2590_v42, %v2518_v56  ;;  %v2522_v34 = vadd.f32 %v2521_v29, %v6982_v51 }
 0x388   :  { %2938 = vmatpush2.bf16.msra.mxu0 %v1816_v17  ;;  %v2592_v10 = vpop.f32.mrf.mxu1  ;;  %v2523_v33 = vpop.f32.mrf.mxu0 }
 0x389   :  { %v7059_v19 = vpop.permute.xlu1 %1747  ;;  %v1746_v11 = vpop.permute.xlu0 %1745  ;;  %v7068_v22 = vadd.f32 %v2592_v10, %v2520_v12  ;;  %v2524_v15 = vadd.f32 %v2523_v33, %v2451_v13 }
 0x38a   :  { %v1913_v25 = vsel %vm1753_vm11, %v1746_v11, %v7059_v19  ;;  %v1912_v59 = vsel %vm1753_vm11, %v6204_v62, %v1746_v11  ;;  %v2594_v17 = vpop.f32.mrf.mxu1  ;;  %v2527_v20 = vpop.f32.mrf.mxu0  ;;  %v9308_v62 = vld [vmem:[#allocation77_spill] sm:$0xff] }
 0x38b   :  { %3010 = vmatprep.subr.bf16.mxu1 %v1913_v25  ;;  %v7072_v42 = vadd.f32 %v2594_v17, %v2522_v34  ;;  %v2528_v51 = vadd.f32 %v2527_v20, %v6992_v52 }
 0x38c   :  { %3011 = vmatpush2.bf16.msra.mxu1 %v1912_v59  ;;  %v2596_v25 = vpop.f32.mrf.mxu1  ;;  %v2529_v12 = vpop.f32.mrf.mxu0 }
 0x38d   :  { %v7070_v41 = vpop.permute.xlu1 %1509  ;;  %v1508_v56 = vpop.permute.xlu0 %1507  ;;  %v7079_v13 = vadd.f32 %v2596_v25, %v2524_v15  ;;  %v2530_v59 = vadd.f32 %v2529_v12, %v6998_v6 }
 0x38e   :  { %v1811_v29 = vsel %vm1753_vm11, %v1508_v56, %v7070_v41  ;;  %v1810_v11 = vsel %vm1753_vm11, %v9308_v62, %v1508_v56  ;;  %v2600_v10 = vpop.f32.mrf.mxu1  ;;  %v2531_v33 = vpop.f32.mrf.mxu0 }
 0x38f   :  { %2939 = vmatprep.subr.bf16.mxu0 %v1811_v29  ;;  %v7084_v52 = vadd.f32 %v2600_v10, %v2528_v51  ;;  %v2532_v20 = vadd.f32 %v2531_v33, %v7000_v1 }
 0x390   :  { %2940 = vmatpush2.bf16.msra.mxu0 %v1810_v11  ;;  %v2602_v15 = vpop.f32.mrf.mxu1  ;;  %v2533_v62 = vpop.f32.mrf.mxu0 }
 0x391   :  { %v7082_v34 = vpop.permute.xlu1 %1733  ;;  %v1732_v17 = vpop.permute.xlu0 %1731  ;;  %v7091_v6 = vadd.f32 %v2602_v15, %v2530_v59  ;;  %v2534_v11 = vadd.f32 %v2533_v62, %v7008_v58 }
 0x392   :  { %9309 = vst [vmem:[#allocation80_spill] sm:$0xff] %v7082_v34  ;;  %v1907_v56 = vsel %vm1753_vm11, %v1732_v17, %v7082_v34  ;;  %v1906_v29 = vsel %vm1753_vm11, %v6218_v30, %v1732_v17  ;;  %v2604_v25 = vpop.f32.mrf.mxu1  ;;  %v2537_v12 = vpop.f32.mrf.mxu0  ;;  %v9310_v17 = vld [vmem:[#allocation5_spill] sm:$0xff] }
 0x393   :  { %3012 = vmatprep.subr.bf16.mxu1 %v1907_v56  ;;  %v7096_v1 = vadd.f32 %v2604_v25, %v2532_v20  ;;  %v2538_v33 = vadd.f32 %v2537_v12, %v7012_v45 }
 0x394   :  { %3013 = vmatpush2.bf16.msra.mxu1 %v1906_v29  ;;  %v2606_v59 = vpop.f32.mrf.mxu1  ;;  %v2539_v15 = vpop.f32.mrf.mxu0 }
 0x395   :  { %v7094_v51 = vpop.permute.xlu1 %1495  ;;  %v1494_v10 = vpop.permute.xlu0 %1493  ;;  %v7103_v58 = vadd.f32 %v2606_v59, %v2534_v11  ;;  %v2540_v29 = vadd.f32 %v2539_v15, %v7018_v43 }
 0x396   :  { %v1805_v30 = vsel %vm1753_vm11, %v1494_v10, %v7094_v51  ;;  %v1804_v56 = vsel %vm1753_vm11, %v9310_v17, %v1494_v10  ;;  %v2610_v62 = vpop.f32.mrf.mxu1  ;;  %v2541_v34 = vpop.f32.mrf.mxu0 }
 0x397   :  { %2941 = vmatprep.subr.bf16.mxu0 %v1805_v30  ;;  %v7109_v25 = vadd.f32 %v2610_v62, %v2538_v33  ;;  %v2542_v12 = vadd.f32 %v2541_v34, %v7022_v44  ;;  %v9311_v30 = vld [vmem:[#allocation19_spill] sm:$0xff]  ;;  %v9312_v44 = vld [vmem:[#allocation17_spill] sm:$0xff] }
 0x398   :  { %2942 = vmatpush2.bf16.msra.mxu0 %v1804_v56  ;;  %v2612_v17 = vpop.f32.mrf.mxu1  ;;  %v2543_v43 = vpop.f32.mrf.mxu0  ;;  %v4313_v56 = vld [vmem:[%s8732_s2 + $0x18] ss:$40 sps:$4 sm:$0xff]  }
 0x399   :  { %v7106_v20 = vpop.permute.xlu1 %1719  ;;  %3057 = vmatprep.subr.bf16.mxu0 %v9179_v24  ;;  %v1718_v45 = vpop.permute.xlu0 %1717  ;;  %v7119_v59 = vadd.f32 %v2612_v17, %v2540_v29  ;;  %v2544_v33 = vadd.f32 %v2543_v43, %v7031_v39  ;;  %v4314_v29 = vld [vmem:[%s8732_s2 + $0x6c] ss:$40 sps:$4 sm:$0xff]  }
 0x39a   :  { %v1901_v10 = vsel %vm1753_vm11, %v1718_v45, %v7106_v20  ;;  %v1900_v11 = vsel %vm1753_vm11, %v9311_v30, %v1718_v45  ;;  %v2614_v34 = vpop.f32.mrf.mxu1  ;;  %v2653_v15 = vpop.f32.mrf.mxu0 }
 0x39b   :  { %3014 = vmatprep.subr.bf16.mxu1 %v1901_v10  ;;  %2944 = vmatmul.mubr.bf16.vlgmr.msra.gmra.mxu0 %v4313_v56  ;;  %v7125_v45 = vadd.f32 %v2614_v34, %v2542_v12  ;;  %v7128_v10 = vadd.f32 %v2653_v15, %v7036_v5  ;;  %v4315_v12 = vld [vmem:[%s8732_s2 + $0x20] ss:$40 sps:$4 sm:$0xff]  }
 0x39c   :  { %3015 = vmatpush2.bf16.msra.mxu1 %v1900_v11  ;;  %3058 = vmatpush1.bf16.msra.mxu0 %v9312_v44  ;;  %v2616_v30 = vpop.f32.mrf.mxu1  ;;  %v2655_v11 = vpop.f32.mrf.mxu0 }
 0x39d   :  { %3059 = vmatprep.subr.bf16.mxu0 %v9182_v63  ;;  %3130 = vmatprep.subr.bf16.mxu1 %v6366_v21  ;;  %v1263_v62 = vpop.permute.xlu0 %1262  ;;  %9313 = vst [vmem:[#allocation87_spill] sm:$0xff] %v7128_v10  ;;  %v1261_v17 = vpop.permute.xlu1 %1260  ;;  %v7140_v5 = vadd.f32 %v2616_v30, %v2544_v33  ;;  %v7143_v43 = vadd.f32 %v2655_v11, %v7043_v16  ;;  %v4316_v16 = vld [vmem:[%s8732_s2 + $0x74] ss:$40 sps:$4 sm:$0xff]  }
 0x39e   :  { %1485 = vrot.lane.b32.xlu0 %v1263_v62, %s4379_s8  ;;  %v1267_v39 = vsel %vm250_vm0, %v9179_v24, %v1263_v62  ;;  %2953 = vmatprep.mubr.bf16.mxu0 %v4314_v29  ;;  %v2657_v24 = vpop.f32.mrf.mxu0  ;;  %v1266_v62 = vsel %vm250_vm0, %v9182_v63, %v1261_v17 }
 0x39f   :  { %3017 = vmatmul.mubr.bf16.vlgmr.msra.gmra.mxu1 %v4315_v12  ;;  %1483 = vrot.lane.b32.xlu1 %v1267_v39, %s4379_s8  ;;  %9314 = vst [vmem:[#allocation79_spill] sm:$0xff] %v7143_v43  ;;  %v7152_v44 = vadd.f32 %v2657_v24, %v7047_v47 }
 0x3a0   :  { %3060 = vmatpush1.bf16.msra.mxu0 %v6334_v35  ;;  %3131 = vmatpush1.bf16.msra.mxu1 %v6481_v49  ;;  %v2659_v35 = vpop.f32.mrf.mxu0  ;;  %v4317_v49 = vld [vmem:[%s8732_s2 + $0x68] ss:$40 sps:$4 sm:$0xff]  }
 0x3a1   :  { %3061 = vmatprep.subr.bf16.mxu0 %v9185_v26  ;;  %3132 = vmatprep.subr.bf16.mxu1 %v6419_v18  ;;  %v7149_v56 = vpop.permute.xlu0 %1255  ;;  %9315 = vst [vmem:[#allocation89_spill] sm:$0xff] %v7152_v44  ;;  %v7166_v47 = vadd.f32 %v2659_v35, %v7056_v60  ;;  %v7170_v34 = vpop.permute.xlu1 %1253  ;;  %v4319_v60 = vld [vmem:[%s8732_s2 + $0x70] ss:$40 sps:$4 sm:$0xff]  }
 0x3a2   :  { %973 = vrot.lane.b32.xlu0 %v9135_v46, %s4380_s9  ;;  %4168 = vmatprep.mubr.msk.bf16.mxu1 %vm2314_vm12, %v4316_v16  ;;  %v2663_v33 = vpop.f32.mrf.mxu0 }
 0x3a3   :  { %1264 = vrot.lane.b32.xlu1 %v6797_v31, %s4368_s18  ;;  %2954 = vmatmul.mubr.bf16.gmra.mxu0 %v4317_v49  ;;  %9316 = vst [vmem:[#allocation90_spill] sm:$0xff] %v7166_v47  ;;  %v7179_v39 = vadd.f32 %v2663_v33, %v7061_v50 }
 0x3a4   :  { %3062 = vmatpush1.bf16.msra.mxu0 %v6380_v3  ;;  %3133 = vmatpush1.bf16.msra.mxu1 %v6502_v9  ;;  %v4318_v3 = vld [vmem:[%s8732_s2 + $0xbc] ss:$40 sps:$4 sm:$0xff]   ;;  %v2665_v9 = vpop.f32.mrf.mxu0 }
 0x3a5   :  { %3063 = vmatprep.subr.bf16.mxu0 %v9189_v14  ;;  %3134 = vmatprep.subr.bf16.mxu1 %v6449_v32  ;;  %v7174_v15 = vpop.permute.xlu0 %1251  ;;  %9317 = vst [vmem:[#allocation7_spill] sm:$0xff] %v7179_v39  ;;  %v7193_v63 = vadd.f32 %v2665_v9, %v7068_v22  ;;  %v7206_v22 = vpop.permute.xlu1 %801  ;;  %v9327_v9 = vld [vmem:[#allocation3_spill] sm:$0xff] }
 0x3a6   :  { %1469 = vrot.lane.b32.xlu0 %v1266_v62, %s4379_s8  ;;  %2963 = vmatprep.mubr.bf16.mxu0 %v4318_v3  ;;  %v2667_v50 = vpop.f32.mrf.mxu0  ;;  %v4327_v3 = vld [vmem:[%s8732_s2 + $0x110] ss:$40 sps:$4 sm:$0xff]  }
 0x3a7   :  { %3027 = vmatmul.mubr.bf16.gmra.mxu1 %v4319_v60  ;;  %975 = vrot.lane.b32.xlu1 %v6797_v31, %s4380_s9  ;;  %9318 = vst [vmem:[#allocation91_spill] sm:$0xff] %v7193_v63  ;;  %v7198_v29 = vadd.f32 %v2667_v50, %v7072_v42  ;;  %v4321_v42 = vld [vmem:[%s8732_s2 + $0xb8] ss:$40 sps:$4 sm:$0xff]  }
 0x3a8   :  { %3064 = vmatpush1.bf16.msra.mxu0 %v6424_v28  ;;  %3135 = vmatpush1.bf16.msra.mxu1 %v6529_v36  ;;  %v4320_v28 = vld [vmem:[%s8732_s2 + $0xc4] ss:$40 sps:$4 sm:$0xff]   ;;  %v2669_v36 = vpop.f32.mrf.mxu0  ;;  %v9328_v60 = vld [vmem:[#allocation33_spill] sm:$0xff] }
 0x3a9   :  { %3065 = vmatprep.subr.bf16.mxu0 %v9193_v48  ;;  %3136 = vmatprep.subr.bf16.mxu1 %v6491_v61  ;;  %9319 = vst [vmem:[#allocation6_spill] sm:$0xff] %v7198_v29  ;;  %v804_v30 = vpop.permute.xlu0 %803  ;;  %v7213_v11 = vadd.f32 %v2669_v36, %v7079_v13  ;;  %v4322_v13 = vld [vmem:[%s8732_s2 + $0x10c] ss:$40 sps:$4 sm:$0xff]   ;;  %v7237_v16 = vpop.permute.xlu1 %787  ;;  %v9330_v36 = vld [vmem:[#allocation50_spill] sm:$0xff] }
 0x3aa   :  { %1361 = vrot.lane.b32.xlu0 %v6797_v31, %s4372_s22  ;;  %4169 = vmatprep.mubr.msk.bf16.mxu1 %vm2314_vm12, %v4320_v28  ;;  %v2673_v12 = vpop.f32.mrf.mxu0  ;;  %v9329_v28 = vld [vmem:[#allocation46_spill] sm:$0xff] }
 0x3ab   :  { %1471 = vrot.lane.b32.xlu1 %v1261_v17, %s4379_s8  ;;  %2964 = vmatmul.mubr.bf16.gmra.mxu0 %v4321_v42  ;;  %9320 = vst [vmem:[#allocation92_spill] sm:$0xff] %v7213_v11  ;;  %v7220_v24 = vadd.f32 %v2673_v12, %v7084_v52  ;;  %v1258_v42 = vsel %vm180_vm1, %v9189_v14, %v7170_v34  ;;  %v9334_v14 = vld [vmem:[#allocation42_spill] sm:$0xff] }
 0x3ac   :  { %3066 = vmatpush1.bf16.msra.mxu0 %v6456_v40  ;;  %3137 = vmatpush1.bf16.msra.mxu1 %v6555_v55  ;;  %v2675_v17 = vpop.f32.mrf.mxu0  ;;  %v4323_v40 = vld [vmem:[%s8732_s2 + $0xc0] ss:$40 sps:$4 sm:$0xff]  }
 0x3ad   :  { %3138 = vmatprep.subr.bf16.mxu1 %v6512_v23  ;;  %3067 = vmatprep.subr.bf16.mxu0 %v9135_v46  ;;  %9321 = vst [vmem:[#allocation4_spill] sm:$0xff] %v7220_v24  ;;  %v7233_v55 = vadd.f32 %v2675_v17, %v7091_v6  ;;  %v790_v35 = vpop.permute.xlu0 %789 }
 0x3ae   :  { %961 = vrot.lane.b32.xlu0 %v6777_v0, %s4380_s9  ;;  %2973 = vmatprep.mubr.bf16.mxu0 %v4322_v13  ;;  %v2677_v52 = vpop.f32.mrf.mxu0  ;;  %v4328_v13 = vld [vmem:[%s8732_s2 + $0xc] ss:$40 sps:$4 sm:$0xff]  }
 0x3af   :  { %3037 = vmatmul.mubr.bf16.gmra.mxu1 %v4323_v40  ;;  %959 = vrot.lane.b32.xlu1 %v9137_v57, %s4380_s9  ;;  %9322 = vst [vmem:[#allocation94_spill] sm:$0xff] %v7233_v55  ;;  %v7242_v49 = vadd.f32 %v2677_v52, %v7096_v1  ;;  %v4325_v1 = vld [vmem:[%s8732_s2 + $0x108] ss:$40 sps:$4 sm:$0xff]   ;;  %v9332_v40 = vld [vmem:[#allocation29_spill] sm:$0xff] }
 0x3b0   :  { %3068 = vmatpush1.bf16.msra.mxu0 %v9129_v38  ;;  %3139 = vmatpush1.bf16.msra.mxu1 %v6578_v4  ;;  %v1259_v38 = vsel %vm180_vm1, %v9185_v26, %v7149_v56  ;;  %v4324_v4 = vld [vmem:[%s8732_s2 + $0x114] ss:$40 sps:$4 sm:$0xff]   ;;  %v2679_v6 = vpop.f32.mrf.mxu0 }
 0x3b1   :  { %3140 = vmatprep.subr.bf16.mxu1 %v6565_v2  ;;  %3069 = vmatprep.subr.bf16.mxu0 %v9137_v57  ;;  %9323 = vst [vmem:[#allocation22_spill] sm:$0xff] %v7242_v49  ;;  %v7258_v33 = vadd.f32 %v2679_v6, %v7103_v58  ;;  %v4326_v58 = vld [vmem:[%s8732_s2 + $0x4] ss:$40 sps:$4 sm:$0xff]   ;;  %v9336_v6 = vld [vmem:[#allocation44_spill] sm:$0xff] }
 0x3b2   :  { %1457 = vrot.lane.b32.xlu0 %v7149_v56, %s4379_s8  ;;  %4170 = vmatprep.mubr.msk.bf16.mxu1 %vm2314_vm12, %v4324_v4  ;;  %v2683_v26 = vpop.f32.mrf.mxu0  ;;  %v4330_v49 = vld [vmem:[%s8732_s2 + $0x54] ss:$40 sps:$4 sm:$0xff]  }
 0x3b3   :  { %1455 = vrot.lane.b32.xlu1 %v1259_v38, %s4379_s8  ;;  %2974 = vmatmul.mubr.bf16.gmra.mxu0 %v4325_v1  ;;  %9324 = vst [vmem:[#allocation54_spill] sm:$0xff] %v7258_v33  ;;  %v7265_v56 = vadd.f32 %v2683_v26, %v7109_v25  ;;  %v7305_v38 = vpop.f32.mrf.mxu1  ;;  %v825_v1 = vsel %vm819_vm7, %v7237_v16, %v790_v35 }
 0x3b4   :  { %3070 = vmatpush1.bf16.msra.mxu0 %v9128_v27  ;;  %3141 = vmatpush1.bf16.msra.mxu1 %v6603_v7  ;;  %v2685_v62 = vpop.f32.mrf.mxu0  ;;  %v7272_v27 = vpop.permute.xlu1 %1339 }
 0x3b5   :  { %3142 = vmatprep.subr.bf16.mxu1 %v6596_v37  ;;  %3071 = vmatprep.subr.bf16.mxu0 %v9139_v53  ;;  %9325 = vst [vmem:[#allocation58_spill] sm:$0xff] %v7265_v56  ;;  %v739_v7 = vpop.permute.xlu0 %738  ;;  %v7280_v25 = vadd.f32 %v2685_v62, %v7119_v59  ;;  %v831_v59 = vsel %vm819_vm7, %v7206_v22, %v804_v30 }
 0x3b6   :  { %945 = vrot.lane.b32.xlu0 %v9139_v53, %s4380_s9  ;;  %3089 = vmatprep.mubr.bf16.mxu0 %v4326_v58  ;;  %v2687_v50 = vpop.f32.mrf.mxu0  ;;  %v9338_v58 = vld [vmem:[#allocation55_spill] sm:$0xff] }
 0x3b7   :  { %3047 = vmatmul.mubr.bf16.gmra.mxu1 %v4327_v3  ;;  %1359 = vrot.lane.b32.xlu1 %v6777_v0, %s4372_s22  ;;  %9326 = vst [vmem:[#allocation20_spill] sm:$0xff] %v7280_v25  ;;  %v7290_v12 = vadd.f32 %v2687_v50, %v7125_v45  ;;  %v9335_v45 = vld [vmem:[#allocation21_spill] sm:$0xff]  ;;  %v830_v62 = vsel %vm819_vm7, %v9338_v58, %v7206_v22  ;;  %v7322_v3 = vpop.f32.mrf.mxu1  ;;  %v9341_v50 = vld [vmem:[#allocation11_spill] sm:$0xff]  ;;  %v9345_v58 = vld [vmem:[#allocation32_spill] sm:$0xff] }
 0x3b8   :  { %3072 = vmatpush1.bf16.msra.mxu0 %v9327_v9  ;;  %3143 = vmatpush1.bf16.msra.mxu1 %v9328_v60  ;;  %v2689_v17 = vpop.f32.mrf.mxu0  ;;  %v7307_v4 = vpop.permute.xlu1 %1318  ;;  %v9339_v9 = vld [vmem:[#allocation40_spill] sm:$0xff]  ;;  %v9340_v60 = vld [vmem:[#allocation41_spill] sm:$0xff] }
 0x3b9   :  { %3073 = vmatprep.subr.bf16.mxu0 %v9329_v28  ;;  %3144 = vmatprep.subr.bf16.mxu1 %v9330_v36  ;;  %9331 = vst [vmem:[#allocation61_spill] sm:$0xff] %v7290_v12  ;;  %v7301_v52 = vadd.f32 %v2689_v17, %v7140_v5  ;;  %v727_v30 = vpop.permute.xlu0 %726  ;;  %v9337_v5 = vld [vmem:[#allocation45_spill] sm:$0xff]  ;;  %v400_v22 = vsel %vm390_vm3, %v9340_v60, %v9339_v9 }
 0x3ba   :  { %1441 = vrot.lane.b32.xlu0 %v1258_v42, %s4379_s8  ;;  %3162 = vmatprep.mubr.bf16.mxu1 %v4328_v13  ;;  %v405_v26 = vsel %vm390_vm3, %v9337_v5, %v9336_v6  ;;  %v824_v42 = vsel %vm819_vm7, %v9341_v50, %v7237_v16  ;;  %v9342_v13 = vld [vmem:[#allocation36_spill] sm:$0xff]  ;;  %v1257_v17 = vsel %vm180_vm1, %v9193_v48, %v7174_v15  ;;  %v9346_v48 = vld [vmem:[#allocation47_spill] sm:$0xff]  ;;  %vm9363_vm1 = vcmask 818176  }
 0x3bb   :  { %947 = vrot.lane.b32.xlu1 %v9332_v40, %s4380_s9  ;;  %9333 = vst [vmem:[#allocation52_spill] sm:$0xff] %v7301_v52  ;;  %v9349_v50 = vld [vmem:[#allocation39_spill] sm:$0xff]  ;;  %v9359_v52 = vld [vmem:[#allocation2_spill] sm:$0xff] }
 0x3bc   :  { %3074 = vmatpush2.bf16.msra.mxu0 %v9334_v14  ;;  %3145 = vmatpush1.bf16.msra.mxu1 %v9335_v45  ;;  %v7327_v35 = vpop.permute.xlu1 %1304  ;;  %v9343_v14 = vld [vmem:[#allocation37_spill] sm:$0xff]  ;;  %v9344_v45 = vld [vmem:[#allocation10_spill] sm:$0xff] }
 0x3bd   :  { %3075 = vmatprep.subr.bf16.mxu0 %v9336_v6  ;;  %3146 = vmatprep.subr.bf16.mxu1 %v831_v59  ;;  %v7337_v59 = vpop.f32.mrf.mxu1  ;;  %v395_v16 = vsel %vm390_vm3, %v9343_v14, %v9342_v13  ;;  %v755_v6 = vsel %vm740_vm8, %v9344_v45, %v739_v7  ;;  %v9352_v14 = vld [vmem:[#allocation18_spill] sm:$0xff]  ;;  %v9353_v45 = vld [vmem:[#allocation12_spill] sm:$0xff]  ;;  %vm9365_vm3 = vmmov %vm9363_vm1 }
 0x3be   :  { %1357 = vrot.lane.b32.xlu0 %v9332_v40, %s4372_s22 }
 0x3bf   :  { %1443 = vrot.lane.b32.xlu1 %v7170_v34, %s4379_s8  ;;  %v715_v34 = vpop.permute.xlu0 %714 }
 0x3c0   :  { %3076 = vmatpush2.bf16.msra.mxu0 %v405_v26  ;;  %3147 = vmatpush2.bf16.msra.mxu1 %v830_v62  ;;  %v7351_v5 = vpop.permute.xlu1 %1290 }
 0x3c1   :  { %3077 = vmatprep.subr.bf16.mxu0 %v9339_v9  ;;  %3148 = vmatprep.subr.bf16.mxu1 %v825_v1  ;;  %v2732_v1 = vpop.f32.mrf.mxu1  ;;  %v9348_v9 = vld [vmem:[#allocation30_spill] sm:$0xff] }
 0x3c2   :  { %896 = vrot.lane.b32.xlu0 %v6797_v31, %s4381_s12 }
 0x3c3   :  { %894 = vrot.lane.b32.xlu1 %v9135_v46, %s4381_s12  ;;  %v7353_v26 = vpop.permute.xlu0 %1273  ;;  %v2736_v62 = vpop.f32.mrf.mxu1 }
 0x3c4   :  { %3078 = vmatpush2.bf16.msra.mxu0 %v400_v22  ;;  %3149 = vmatpush2.bf16.msra.mxu1 %v824_v42  ;;  %v7366_v60 = vpop.permute.xlu1 %1271  ;;  %v9350_v42 = vld [vmem:[#allocation81_spill] sm:$0xff] }
 0x3c5   :  { %3079 = vmatprep.subr.bf16.mxu0 %v9342_v13  ;;  %3150 = vmatprep.subr.bf16.mxu1 %v739_v7  ;;  %v9347_v7 = vld [vmem:[#allocation28_spill] sm:$0xff]  ;;  %v2738_v13 = vpop.f32.mrf.mxu1 }
 0x3c6   :  { %1429 = vrot.lane.b32.xlu0 %v7174_v15, %s4379_s8  ;;  %v750_v15 = vsel %vm740_vm8, %v9346_v48, %v727_v30 }
 0x3c7   :  { %1427 = vrot.lane.b32.xlu1 %v1257_v17, %s4379_s8  ;;  %v7368_v22 = vpop.permute.xlu0 %1269  ;;  %v9351_v17 = vld [vmem:[#allocation27_spill] sm:$0xff] }
 0x3c8   :  { %3080 = vmatpush2.bf16.msra.mxu0 %v395_v16  ;;  %3151 = vmatpush2.bf16.msra.mxu1 %v755_v6  ;;  %v9354_v6 = vld [vmem:[#allocation83_spill] sm:$0xff]  ;;  %v1025_v48 = vpop.permute.xlu1 %1024 }
 0x3c9   :  { %3081 = vmatprep.subr.bf16.mxu0 %v9345_v58  ;;  %3152 = vmatprep.subr.bf16.mxu1 %v727_v30  ;;  %v745_v30 = vsel %vm740_vm8, %v9349_v50, %v715_v34  ;;  %vm9368_vm8 = vmmov %vm9363_vm1 }
 0x3ca   :  { %880 = vrot.lane.b32.xlu0 %v9137_v57, %s4381_s12 }
 0x3cb   :  { %1352 = vrot.lane.b32.xlu1 %v6797_v31, %s4373_s23  ;;  %v1027_v16 = vpop.permute.xlu0 %1026 }
 0x3cc   :  { %3082 = vmatpush2.bf16.msra.mxu0 %v9347_v7  ;;  %3153 = vmatpush2.bf16.msra.mxu1 %v750_v15  ;;  %v9355_v15 = vld [vmem:[#allocation24_spill] sm:$0xff]  ;;  %v9356_v7 = vld [vmem:[#allocation51_spill] sm:$0xff]  ;;  %v1062_v50 = vsel %vm1056_vm10, %v1025_v48, %v1027_v16 }
 0x3cd   :  { %3083 = vmatprep.subr.bf16.mxu0 %v9348_v9  ;;  %3154 = vmatprep.subr.bf16.mxu1 %v715_v34  ;;  %v2740_v34 = vpop.f32.mrf.mxu1  ;;  %v4329_v16 = vld [vmem:[%s8732_s2] ss:$40 sps:$4 sm:$0xff]  }
 0x3ce   :  { %1413 = vrot.lane.b32.xlu0 %v9135_v46, %s4379_s8 }
 0x3cf   :  { %882 = vrot.lane.b32.xlu1 %v6777_v0, %s4381_s12 }
 0x3d0   :  { %3084 = vmatpush2.bf16.msra.mxu0 %v9350_v42  ;;  %3155 = vmatpush2.bf16.msra.mxu1 %v745_v30  ;;  %v9357_v30 = vld [vmem:[#allocation65_spill] sm:$0xff] }
 0x3d1   :  { %3085 = vmatprep.subr.bf16.mxu0 %v9351_v17  ;;  %3156 = vmatprep.subr.bf16.mxu1 %v9352_v14  ;;  %v9358_v42 = vld [vmem:[#allocation9_spill] sm:$0xff] }
 0x3d2   :  { %1350 = vrot.lane.b32.xlu0 %v6777_v0, %s4373_s23 }
 0x3d3   :  { %1415 = vrot.lane.b32.xlu1 %v6797_v31, %s4379_s8 }
 0x3d4   :  { %3086 = vmatpush2.bf16.msra.mxu0 %v9353_v45  ;;  %3157 = vmatpush2.bf16.msra.mxu1 %v9354_v6  ;;  %v2742_v45 = vpop.f32.mrf.mxu1 }
 0x3d5   :  { %3087 = vmatprep.subr.bf16.mxu0 %v9355_v15  ;;  %3158 = vmatprep.subr.bf16.mxu1 %v9356_v7 }
 0x3d6   :  { %868 = vrot.lane.b32.xlu0 %v9332_v40, %s4381_s12 }
 0x3d7   :  { %866 = vrot.lane.b32.xlu1 %v9139_v53, %s4381_s12 }
 0x3d8   :  { %3088 = vmatpush2.bf16.msra.mxu0 %v9357_v30  ;;  %3159 = vmatpush2.bf16.msra.mxu1 %v9358_v42  ;;  %v2799_v6 = vpop.f32.mrf.mxu0  ;;  %v9360_v30 = vld [vmem:[#allocation53_spill] sm:$0xff] }
 0x3d9   :  { %3160 = vmatprep.subr.bf16.mxu1 %v9359_v52  ;;  %3203 = vmatprep.subr.bf16.mxu0 %v1062_v50  ;;  %v7394_v12 = vadd.f32 %v2799_v6, %v7305_v38  ;;  %v1061_v42 = vsel %vm1056_vm10, %v9360_v30, %v1025_v48  ;;  %v9361_v38 = vld [vmem:[#allocation66_spill] sm:$0xff]  ;;  %v2746_v6 = vpop.f32.mrf.mxu1 }
 0x3da   :  { %1401 = vrot.lane.b32.xlu0 %v6777_v0, %s4379_s8  ;;  %v2801_v25 = vpop.f32.mrf.mxu0 }
 0x3db   :  { %1399 = vrot.lane.b32.xlu1 %v9137_v57, %s4379_s8  ;;  %3090 = vmatmul.mubr.bf16.vlgmr.msra.gmra.mxu0 %v4329_v16  ;;  %v7406_v50 = vadd.f32 %v2801_v25, %v7322_v3  ;;  %v4331_v25 = vld [vmem:[%s8732_s2 + $0x8] ss:$40 sps:$4 sm:$0xff]  }
 0x3dc   :  { %3161 = vmatpush2.bf16.msra.mxu1 %v9361_v38  ;;  %3204 = vmatpush1.bf16.msra.mxu0 %v1061_v42  ;;  %v2803_v56 = vpop.f32.mrf.mxu0 }
 0x3dd   :  { %v7410_v33 = vadd.f32 %v2803_v56, %v7337_v59  ;;  %3099 = vmatprep.mubr.bf16.mxu0 %v4330_v49  ;;  %v2748_v56 = vpop.f32.mrf.mxu1  ;;  %v4332_v49 = vld [vmem:[%s8732_s2 + $0x5c] ss:$40 sps:$4 sm:$0xff]  }
 0x3de   :  { %815 = vrot.lane.b32.xlu0 %v9135_v46, %s4374_s24  ;;  %v2805_v48 = vpop.f32.mrf.mxu0 }
 0x3df   :  { %1348 = vrot.lane.b32.xlu1 %v9332_v40, %s4373_s23  ;;  %3163 = vmatmul.mubr.bf16.vlgmr.msra.gmra.mxu1 %v4331_v25  ;;  %v7422_v3 = vadd.f32 %v2805_v48, %v2732_v1  ;;  %v4333_v1 = vld [vmem:[%s8732_s2 + $0x50] ss:$40 sps:$4 sm:$0xff]   ;;  %v2750_v38 = vpop.f32.mrf.mxu1 }
 0x3e0   :  { %3172 = vmatprep.mubr.bf16.mxu1 %v4332_v49  ;;  %v4335_v49 = vld [vmem:[%s8732_s2 + $0x58] ss:$40 sps:$4 sm:$0xff]  }
 0x3e1   :  { %v2809_v59 = vpop.f32.mrf.mxu0 }
 0x3e2   :  { %v7427_v16 = vadd.f32 %v2809_v59, %v2736_v62  ;;  %1385 = vrot.lane.b32.xlu0 %v9139_v53, %s4379_s8  ;;  %v4334_v62 = vld [vmem:[%s8732_s2 + $0xa4] ss:$40 sps:$4 sm:$0xff]  }
 0x3e3   :  { %v2811_v30 = vpop.f32.mrf.mxu0  ;;  %817 = vrot.lane.b32.xlu1 %v6797_v31, %s4374_s24  ;;  %3100 = vmatmul.mubr.bf16.gmra.mxu0 %v4333_v1 }
 0x3e4   :  { %v7433_v42 = vadd.f32 %v2811_v30, %v2738_v13  ;;  %3109 = vmatprep.mubr.bf16.mxu0 %v4334_v62  ;;  %v2752_v30 = vpop.f32.mrf.mxu1 }
 0x3e5   :  { %v2813_v48 = vpop.f32.mrf.mxu0 }
 0x3e6   :  { %v7441_v25 = vadd.f32 %v2813_v48, %v2740_v34  ;;  %1343 = vrot.lane.b32.xlu0 %v6797_v31, %s4371_s21  ;;  %v4336_v34 = vld [vmem:[%s8732_s2 + $0xac] ss:$40 sps:$4 sm:$0xff]  }
 0x3e7   :  { %v2815_v59 = vpop.f32.mrf.mxu0  ;;  %1387 = vrot.lane.b32.xlu1 %v9332_v40, %s4379_s8  ;;  %3173 = vmatmul.mubr.bf16.gmra.mxu1 %v4335_v49  ;;  %v2756_v49 = vpop.f32.mrf.mxu1 }
 0x3e8   :  { %v7447_v13 = vadd.f32 %v2815_v59, %v2742_v45  ;;  %3182 = vmatprep.mubr.bf16.mxu1 %v4336_v34  ;;  %v4337_v59 = vld [vmem:[%s8732_s2 + $0xa0] ss:$40 sps:$4 sm:$0xff]  }
 0x3e9   :  { %v2819_v1 = vpop.f32.mrf.mxu0 }
 0x3ea   :  { %v7455_v48 = vadd.f32 %v2819_v1, %v2746_v6  ;;  %1212 = vrot.lane.b32.xlu0 %v6797_v31, %s4382_s13  ;;  %v4338_v6 = vld [vmem:[%s8732_s2 + $0xf4] ss:$40 sps:$4 sm:$0xff]  }
 0x3eb   :  { %v2821_v62 = vpop.f32.mrf.mxu0  ;;  %1210 = vrot.lane.b32.xlu1 %v9135_v46, %s4382_s13  ;;  %3110 = vmatmul.mubr.bf16.gmra.mxu0 %v4337_v59  ;;  %v4339_v59 = vld [vmem:[%s8732_s2 + $0xa8] ss:$40 sps:$4 sm:$0xff]  }
 0x3ec   :  { %v7461_v45 = vadd.f32 %v2821_v62, %v2748_v56  ;;  %3119 = vmatprep.mubr.bf16.mxu0 %v4338_v6  ;;  %v1345_v56 = vsel %vm460_vm2, %v9329_v28, %v7272_v27  ;;  %v2758_v6 = vpop.f32.mrf.mxu1 }
 0x3ed   :  { %v2823_v55 = vpop.f32.mrf.mxu0 }
 0x3ee   :  { %v7469_v1 = vadd.f32 %v2823_v55, %v2750_v38  ;;  %1597 = vrot.lane.b32.xlu0 %v7272_v27, %s4379_s8  ;;  %v4340_v38 = vld [vmem:[%s8732_s2 + $0xfc] ss:$40 sps:$4 sm:$0xff]  }
 0x3ef   :  { %v2825_v34 = vpop.f32.mrf.mxu0  ;;  %1595 = vrot.lane.b32.xlu1 %v1345_v56, %s4379_s8  ;;  %3183 = vmatmul.mubr.bf16.gmra.mxu1 %v4339_v59  ;;  %v2760_v56 = vpop.f32.mrf.mxu1  ;;  %v9362_v59 = vld [vmem:[#allocation67_spill] sm:$0xff] }
 0x3f0   :  { %v7477_v62 = vadd.f32 %v2825_v34, %v2752_v30  ;;  %3192 = vmatprep.mubr.bf16.mxu1 %v4340_v38  ;;  %v4341_v30 = vld [vmem:[%s8732_s2 + $0xf0] ss:$40 sps:$4 sm:$0xff]  }
 0x3f1   :  { %v2829_v55 = vpop.f32.mrf.mxu0 }
 0x3f2   :  { %v7485_v24 = vadd.f32 %v2829_v55, %v2756_v49  ;;  %1196 = vrot.lane.b32.xlu0 %v9137_v57, %s4382_s13  ;;  %v4342_v49 = vld [vmem:[%s8732_s2 + $0x14] ss:$40 sps:$4 sm:$0xff]   ;;  %v1338_v55 = vsel %vm9363_vm1, %v9362_v59, %v7307_v4  ;;  %vm9374_vm1 = vmmov %vm9370_vm5 }
 0x3f3   :  { %v2831_v27 = vpop.f32.mrf.mxu0  ;;  %1341 = vrot.lane.b32.xlu1 %v6777_v0, %s4371_s21  ;;  %3120 = vmatmul.mubr.bf16.gmra.mxu0 %v4341_v30  ;;  %v7521_v30 = vpop.f32.mrf.mxu1 }
 0x3f4   :  { %v7491_v28 = vadd.f32 %v2831_v27, %v2758_v6  ;;  %3235 = vmatprep.mubr.bf16.mxu0 %v4342_v49  ;;  %v4343_v6 = vld [vmem:[%s8732_s2 + $0xf8] ss:$40 sps:$4 sm:$0xff]   ;;  %v4344_v27 = vld [vmem:[%s8732_s2 + $0x1c] ss:$40 sps:$4 sm:$0xff]  }
 0x3f5   :  { %v2833_v34 = vpop.f32.mrf.mxu0 }
 0x3f6   :  { %v7502_v38 = vadd.f32 %v2833_v34, %v2760_v56  ;;  %1581 = vrot.lane.b32.xlu0 %v1338_v55, %s4379_s8  ;;  %v9364_v56 = vld [vmem:[#allocation38_spill] sm:$0xff] }
 0x3f7   :  { %1198 = vrot.lane.b32.xlu1 %v6777_v0, %s4382_s13  ;;  %3193 = vmatmul.mubr.bf16.gmra.mxu1 %v4343_v6  ;;  %v1332_v34 = vsel %vm9365_vm3, %v9364_v56, %v7327_v35  ;;  %vm9376_vm3 = vmmov %vm9374_vm1 }
 0x3f8   :  { %3308 = vmatprep.mubr.bf16.mxu1 %v4344_v27  ;;  %v9367_v27 = vld [vmem:[#allocation35_spill] sm:$0xff] }
 0x3fa   :  { %1370 = vrot.lane.b32.xlu0 %v6797_v31, %s4377_s27 }
 0x3fb   :  { %1583 = vrot.lane.b32.xlu1 %v7307_v4, %s4379_s8 }
 0x3fe   :  { %1184 = vrot.lane.b32.xlu0 %v9332_v40, %s4382_s13 }
 0x3ff   :  { %1182 = vrot.lane.b32.xlu1 %v9139_v53, %s4382_s13 }
 0x402   :  { %1569 = vrot.lane.b32.xlu0 %v7327_v35, %s4379_s8  ;;  %v1326_v35 = vsel %vm9368_vm8, %v9367_v27, %v7351_v5  ;;  %vm9380_vm8 = vmmov %vm9374_vm1 }
 0x403   :  { %1567 = vrot.lane.b32.xlu1 %v1332_v34, %s4379_s8 }
 0x404   :  { %v2872_v49 = vpop.f32.mrf.mxu1 }
 0x405   :  { %v7530_v4 = vadd.f32 %v2872_v49, %v7394_v12 }
 0x406   :  { %1131 = vrot.lane.b32.xlu0 %v9135_v46, %s9366_s15  ;;  %v2874_v59 = vpop.f32.mrf.mxu1 }
 0x407   :  { %1368 = vrot.lane.b32.xlu1 %v6777_v0, %s4377_s27  ;;  %v7537_v55 = vadd.f32 %v2874_v59, %v7406_v50 }
 0x408   :  { %v2876_v6 = vpop.f32.mrf.mxu1 }
 0x409   :  { %v7543_v56 = vadd.f32 %v2876_v6, %v7410_v33 }
 0x40a   :  { %1553 = vrot.lane.b32.xlu0 %v1326_v35, %s4379_s8  ;;  %v2878_v12 = vpop.f32.mrf.mxu1 }
 0x40b   :  { %1133 = vrot.lane.b32.xlu1 %v6797_v31, %s9366_s15  ;;  %v7549_v34 = vadd.f32 %v2878_v12, %v7422_v3  ;;  %v9369_v12 = vld [vmem:[#allocation86_spill] sm:$0xff] }
 0x40c   :  { %v2882_v49 = vpop.f32.mrf.mxu1 }
 0x40d   :  { %v7552_v50 = vadd.f32 %v2882_v49, %v7427_v16 }
 0x40e   :  { %1366 = vrot.lane.b32.xlu0 %v9332_v40, %s4377_s27  ;;  %v2884_v59 = vpop.f32.mrf.mxu1 }
 0x40f   :  { %1555 = vrot.lane.b32.xlu1 %v7351_v5, %s4379_s8  ;;  %v7559_v33 = vadd.f32 %v2884_v59, %v7433_v42 }
 0x410   :  { %v1486_v6 = vpop.permute.xlu0 %1485  ;;  %v2886_v27 = vpop.f32.mrf.mxu1 }
 0x411   :  { %v1484_v35 = vpop.permute.xlu1 %1483  ;;  %v7562_v3 = vadd.f32 %v2886_v27, %v7441_v25 }
 0x412   :  { %1119 = vrot.lane.b32.xlu0 %v6777_v0, %s9366_s15  ;;  %v1801_v16 = vsel %vm1753_vm11, %v1484_v35, %v1486_v6  ;;  %v1800_v49 = vsel %vm1753_vm11, %v9369_v12, %v1484_v35  ;;  %v2888_v11 = vpop.f32.mrf.mxu1  ;;  %v1277_v6 = vsel %vm320_vm4, %v9345_v58, %v7353_v26 }
 0x413   :  { %1117 = vrot.lane.b32.xlu1 %v9137_v57, %s9366_s15  ;;  %3276 = vmatprep.subr.bf16.mxu1 %v1801_v16  ;;  %v7572_v5 = vadd.f32 %v2888_v11, %v7447_v13 }
 0x414   :  { %3277 = vmatpush1.bf16.msra.mxu1 %v1800_v49  ;;  %v974_v42 = vpop.permute.xlu0 %973 }
 0x415   :  { %v7574_v25 = vpop.permute.xlu1 %1264  ;;  %v2892_v59 = vpop.f32.mrf.mxu1 }
 0x416   :  { %1541 = vrot.lane.b32.xlu0 %v7353_v26, %s4379_s8  ;;  %v7582_v27 = vadd.f32 %v2892_v59, %v7455_v48  ;;  %v9371_v26 = vld [vmem:[#allocation16_spill] sm:$0xff] }
 0x417   :  { %1539 = vrot.lane.b32.xlu1 %v1277_v6, %s4379_s8  ;;  %v2894_v35 = vpop.f32.mrf.mxu1  ;;  %v994_v58 = vsel %vm9372_vm13, %v9371_v26, %v974_v42 }
 0x418   :  { %v1470_v11 = vpop.permute.xlu0 %1469  ;;  %v7586_v13 = vadd.f32 %v2894_v35, %v7461_v45 }
 0x419   :  { %v976_v16 = vpop.permute.xlu1 %975  ;;  %v2896_v12 = vpop.f32.mrf.mxu1 }
 0x41a   :  { %1105 = vrot.lane.b32.xlu0 %v9332_v40, %s9366_s15  ;;  %v995_v49 = vsel %vm9370_vm5, %v974_v42, %v976_v16  ;;  %v7592_v29 = vadd.f32 %v2896_v12, %v7469_v1  ;;  %v1276_v1 = vsel %vm320_vm4, %v9348_v9, %v7366_v60  ;;  %v9373_v42 = vld [vmem:[#allocation69_spill] sm:$0xff]  ;;  %v2835_v12 = vpop.f32.mrf.mxu0  ;;  %vm9381_vm5 = vcmask 793600  }
 0x41b   :  { %1103 = vrot.lane.b32.xlu1 %v9139_v53, %s9366_s15  ;;  %3205 = vmatprep.subr.bf16.mxu0 %v995_v49  ;;  %v2898_v48 = vpop.f32.mrf.mxu1  ;;  %v2836_v9 = vadd.f32 %v2835_v12, %v7521_v30 }
 0x41c   :  { %3206 = vmatpush1.bf16.msra.mxu0 %v994_v58  ;;  %v1362_v45 = vpop.permute.xlu0 %1361  ;;  %v7599_v59 = vadd.f32 %v2898_v48, %v7477_v62  ;;  %v1794_v62 = vsel %vm1753_vm11, %v9373_v42, %v1470_v11  ;;  %v9375_v48 = vld [vmem:[#allocation14_spill] sm:$0xff] }
 0x41d   :  { %v1472_v6 = vpop.permute.xlu1 %1471  ;;  %v2902_v40 = vpop.f32.mrf.mxu1 }
 0x41e   :  { %1527 = vrot.lane.b32.xlu0 %v7366_v60, %s4379_s8  ;;  %v1795_v53 = vsel %vm1753_vm11, %v1470_v11, %v1472_v6  ;;  %v7608_v35 = vadd.f32 %v2902_v40, %v7485_v24 }
 0x41f   :  { %1525 = vrot.lane.b32.xlu1 %v1276_v1, %s4379_s8  ;;  %3278 = vmatprep.subr.bf16.mxu1 %v1795_v53  ;;  %v2904_v16 = vpop.f32.mrf.mxu1  ;;  %v9377_v53 = vld [vmem:[#allocation68_spill] sm:$0xff] }
 0x420   :  { %3279 = vmatpush1.bf16.msra.mxu1 %v1794_v62  ;;  %v962_v49 = vpop.permute.xlu0 %961  ;;  %v7614_v26 = vadd.f32 %v2904_v16, %v7491_v28 }
 0x421   :  { %v960_v60 = vpop.permute.xlu1 %959  ;;  %v2906_v58 = vpop.f32.mrf.mxu1 }
 0x422   :  { %1054 = vrot.lane.b32.xlu0 %v6797_v31, %s4378_s7  ;;  %v989_v24 = vsel %vm9374_vm1, %v960_v60, %v962_v49  ;;  %v988_v6 = vsel %vm9376_vm3, %v9375_v48, %v960_v60  ;;  %v7623_v11 = vadd.f32 %v2906_v58, %v7502_v38  ;;  %v1275_v31 = vsel %vm320_vm4, %v9351_v17, %v7368_v22  ;;  %vm9378_vm4 = vmmov %vm9374_vm1  ;;  %v9379_v49 = vld [vmem:[#allocation13_spill] sm:$0xff] }
 0x423   :  { %1052 = vrot.lane.b32.xlu1 %v9135_v46, %s4378_s7  ;;  %3207 = vmatprep.subr.bf16.mxu0 %v989_v24  ;;  %v2908_v28 = vpop.f32.mrf.mxu1  ;;  %v1365_v60 = vsel %vm9381_vm5, %v6366_v21, %v1362_v45 }
 0x424   :  { %3208 = vmatpush1.bf16.msra.mxu0 %v988_v6  ;;  %v1458_v30 = vpop.permute.xlu0 %1457  ;;  %v7627_v40 = vadd.f32 %v2908_v28, %v2836_v9 }
 0x425   :  { %v1456_v1 = vpop.permute.xlu1 %1455 }
 0x426   :  { %1513 = vrot.lane.b32.xlu0 %v7368_v22, %s4379_s8  ;;  %v1789_v38 = vsel %vm1753_vm11, %v1456_v1, %v1458_v30  ;;  %v1788_v42 = vsel %vm1753_vm11, %v9377_v53, %v1456_v1  ;;  %v1268_v22 = vsel %vm250_vm0, %v9355_v15, %v7574_v25  ;;  %v9382_v15 = vld [vmem:[#allocation71_spill] sm:$0xff]  ;;  %vm9383_vm0 = vmmov %vm9381_vm5  ;;  %v9386_v53 = vld [vmem:[#allocation72_spill] sm:$0xff] }
 0x427   :  { %1511 = vrot.lane.b32.xlu1 %v1275_v31, %s4379_s8  ;;  %3280 = vmatprep.subr.bf16.mxu1 %v1789_v38  ;;  %v9384_v30 = vld [vmem:[#allocation63_spill] sm:$0xff]  ;;  %vm9385_vm13 = vmmov %vm9383_vm0 }
 0x428   :  { %3281 = vmatpush1.bf16.msra.mxu1 %v1788_v42  ;;  %v946_v46 = vpop.permute.xlu0 %945 }
 0x429   :  { %v1360_v62 = vpop.permute.xlu1 %1359 }
 0x42a   :  { %1040 = vrot.lane.b32.xlu0 %v6777_v0, %s4378_s7  ;;  %v982_v0 = vsel %vm9380_vm8, %v9379_v49, %v946_v46  ;;  %v1364_v6 = vsel %vm9383_vm0, %v6419_v18, %v1360_v62 }
 0x42b   :  { %1038 = vrot.lane.b32.xlu1 %v9137_v57, %s4378_s7 }
 0x42c   :  { %v1442_v16 = vpop.permute.xlu0 %1441 }
 0x42d   :  { %v948_v12 = vpop.permute.xlu1 %947 }
 0x42e   :  { %1499 = vrot.lane.b32.xlu0 %v7574_v25, %s4379_s8  ;;  %v983_v17 = vsel %vm9378_vm4, %v946_v46, %v948_v12  ;;  %v1782_v25 = vsel %vm1753_vm11, %v9382_v15, %v1442_v16 }
 0x42f   :  { %1497 = vrot.lane.b32.xlu1 %v1268_v22, %s4379_s8  ;;  %3209 = vmatprep.subr.bf16.mxu0 %v983_v17  ;;  %v9387_v22 = vld [vmem:[#allocation8_spill] sm:$0xff] }
 0x430   :  { %3210 = vmatpush1.bf16.msra.mxu0 %v982_v0  ;;  %v1358_v9 = vpop.permute.xlu0 %1357 }
 0x431   :  { %v1444_v57 = vpop.permute.xlu1 %1443  ;;  %v1363_v31 = vsel %vm9385_vm13, %v6449_v32, %v1358_v9 }
 0x432   :  { %1709 = vrot.lane.b32.xlu0 %v1362_v45, %s4379_s8  ;;  %v1783_v58 = vsel %vm1753_vm11, %v1442_v16, %v1444_v57  ;;  %v9388_v57 = vld [vmem:[#allocation57_spill] sm:$0xff] }
 0x433   :  { %1707 = vrot.lane.b32.xlu1 %v1365_v60, %s4379_s8  ;;  %3282 = vmatprep.subr.bf16.mxu1 %v1783_v58 }
 0x434   :  { %3283 = vmatpush1.bf16.msra.mxu1 %v1782_v25  ;;  %v897_v24 = vpop.permute.xlu0 %896 }
 0x435   :  { %v895_v48 = vpop.permute.xlu1 %894 }
 0x436   :  { %1695 = vrot.lane.b32.xlu0 %v1360_v62, %s4379_s8  ;;  %v916_v28 = vsel %vm898_vm14, %v895_v48, %v897_v24  ;;  %v915_v21 = vsel %vm898_vm14, %v9384_v30, %v895_v48  ;;  %v9389_v24 = vld [vmem:[#allocation43_spill] sm:$0xff]  ;;  %v9390_v30 = vld [vmem:[#allocation56_spill] sm:$0xff] }
 0x437   :  { %1693 = vrot.lane.b32.xlu1 %v1364_v6, %s4379_s8  ;;  %3211 = vmatprep.subr.bf16.mxu0 %v916_v28 }
 0x438   :  { %3212 = vmatpush1.bf16.msra.mxu0 %v915_v21  ;;  %v1430_v45 = vpop.permute.xlu0 %1429 }
 0x439   :  { %v1428_v1 = vpop.permute.xlu1 %1427 }
 0x43a   :  { %1681 = vrot.lane.b32.xlu0 %v1358_v9, %s4379_s8  ;;  %v1777_v38 = vsel %vm1753_vm11, %v1428_v1, %v1430_v45  ;;  %v1776_v18 = vsel %vm1753_vm11, %v9386_v53, %v1428_v1 }
 0x43b   :  { %1679 = vrot.lane.b32.xlu1 %v1363_v31, %s4379_s8  ;;  %3284 = vmatprep.subr.bf16.mxu1 %v1777_v38 }
 0x43c   :  { %3285 = vmatpush1.bf16.msra.mxu1 %v1776_v18  ;;  %v881_v42 = vpop.permute.xlu0 %880 }
 0x43d   :  { %v1353_v46 = vpop.permute.xlu1 %1352  ;;  %v909_v17 = vsel %vm898_vm14, %v9387_v22, %v881_v42 }
 0x43e   :  { %v1356_v62 = vsel %vm530_vm6, %v6491_v61, %v1353_v46  ;;  %1667 = vrot.lane.b32.xlu0 %v1353_v46, %s4379_s8 }
 0x43f   :  { %1665 = vrot.lane.b32.xlu1 %v1356_v62, %s4379_s8 }
 0x440   :  { %v1414_v16 = vpop.permute.xlu0 %1413 }
 0x441   :  { %v883_v32 = vpop.permute.xlu1 %882  ;;  %v1770_v60 = vsel %vm1753_vm11, %v9388_v57, %v1414_v16  ;;  %v9393_v57 = vld [vmem:[#allocation31_spill] sm:$0xff] }
 0x442   :  { %v910_v12 = vsel %vm898_vm14, %v881_v42, %v883_v32  ;;  %v9391_v42 = vld [vmem:[#allocation34_spill] sm:$0xff] }
 0x443   :  { %3213 = vmatprep.subr.bf16.mxu0 %v910_v12  ;;  %v9392_v12 = vld [vmem:[#allocation49_spill] sm:$0xff] }
 0x444   :  { %3214 = vmatpush1.bf16.msra.mxu0 %v909_v17  ;;  %v1351_v49 = vpop.permute.xlu0 %1350 }
 0x445   :  { %v1355_v0 = vsel %vm530_vm6, %v6512_v23, %v1351_v49  ;;  %v1416_v9 = vpop.permute.xlu1 %1415  ;;  %1653 = vrot.lane.b32.xlu0 %v1351_v49, %s4379_s8 }
 0x446   :  { %1651 = vrot.lane.b32.xlu1 %v1355_v0, %s4379_s8  ;;  %v1771_v61 = vsel %vm1753_vm11, %v1414_v16, %v1416_v9 }
 0x447   :  { %3286 = vmatprep.subr.bf16.mxu1 %v1771_v61 }
 0x448   :  { %3287 = vmatpush1.bf16.msra.mxu1 %v1770_v60  ;;  %v869_v58 = vpop.permute.xlu0 %868 }
 0x449   :  { %v867_v15 = vpop.permute.xlu1 %866 }
 0x44a   :  { %v904_v25 = vsel %vm898_vm14, %v867_v15, %v869_v58  ;;  %v903_v48 = vsel %vm898_vm14, %v9389_v24, %v867_v15 }
 0x44b   :  { %3215 = vmatprep.subr.bf16.mxu0 %v904_v25 }
 0x44c   :  { %3216 = vmatpush1.bf16.msra.mxu0 %v903_v48  ;;  %v1402_v23 = vpop.permute.xlu0 %1401 }
 0x44d   :  { %v1400_v6 = vpop.permute.xlu1 %1399 }
 0x44e   :  { %v1765_v28 = vsel %vm1753_vm11, %v1400_v6, %v1402_v23  ;;  %v1764_v21 = vsel %vm1753_vm11, %v9390_v30, %v1400_v6  ;;  %v9395_v30 = vld [vmem:[#allocation74_spill] sm:$0xff] }
 0x44f   :  { %3288 = vmatprep.subr.bf16.mxu1 %v1765_v28 }
 0x450   :  { %3289 = vmatpush1.bf16.msra.mxu1 %v1764_v21  ;;  %v816_v45 = vpop.permute.xlu0 %815 }
 0x451   :  { %v1349_v1 = vpop.permute.xlu1 %1348  ;;  %v836_v46 = vsel %vm819_vm7, %v9391_v42, %v816_v45 }
 0x452   :  { %v1354_v31 = vsel %vm530_vm6, %v6565_v2, %v1349_v1  ;;  %1639 = vrot.lane.b32.xlu0 %v1349_v1, %s4379_s8 }
 0x453   :  { %1637 = vrot.lane.b32.xlu1 %v1354_v31, %s4379_s8 }
 0x454   :  { %v1386_v38 = vpop.permute.xlu0 %1385 }
 0x455   :  { %v818_v53 = vpop.permute.xlu1 %817  ;;  %v1758_v22 = vsel %vm1753_vm11, %v9392_v12, %v1386_v38 }
 0x456   :  { %v837_v18 = vsel %vm819_vm7, %v816_v45, %v818_v53 }
 0x457   :  { %3217 = vmatprep.subr.bf16.mxu0 %v837_v18 }
 0x458   :  { %3218 = vmatpush1.bf16.msra.mxu0 %v836_v46  ;;  %v1344_v62 = vpop.permute.xlu0 %1343 }
 0x459   :  { %v1347_v16 = vsel %vm460_vm2, %v6596_v37, %v1344_v62  ;;  %v1388_v32 = vpop.permute.xlu1 %1387  ;;  %1625 = vrot.lane.b32.xlu0 %v1344_v62, %s4379_s8 }
 0x45a   :  { %1623 = vrot.lane.b32.xlu1 %v1347_v16, %s4379_s8  ;;  %v1759_v2 = vsel %vm1753_vm11, %v1386_v38, %v1388_v32 }
 0x45b   :  { %3290 = vmatprep.subr.bf16.mxu1 %v1759_v2  ;;  %v2945_v17 = vpop.f32.mrf.mxu0 }
 0x45c   :  { %3291 = vmatpush1.bf16.msra.mxu1 %v1758_v22  ;;  %v1213_v49 = vpop.permute.xlu0 %1212  ;;  %v2946_v0 = vadd.f32 %v2945_v17, %v7530_v4 }
 0x45d   :  { %v1211_v9 = vpop.permute.xlu1 %1210  ;;  %v2947_v61 = vpop.f32.mrf.mxu0 }
 0x45e   :  { %v1231_v37 = vsel %vm1214_vm15, %v9393_v57, %v1211_v9  ;;  %v2948_v60 = vadd.f32 %v2947_v61, %v7537_v55  ;;  %v1232_v58 = vsel %vm1214_vm15, %v1211_v9, %v1213_v49  ;;  %v9399_v57 = vld [vmem:[#allocation25_spill] sm:$0xff] }
 0x45f   :  { %v3018_v15 = vpop.f32.mrf.mxu1  ;;  %3219 = vmatprep.subr.bf16.mxu0 %v1232_v58  ;;  %v2949_v25 = vpop.f32.mrf.mxu0 }
 0x460   :  { %v7711_v24 = vadd.f32 %v3018_v15, %v2946_v0  ;;  %3220 = vmatpush2.bf16.msra.mxu0 %v1231_v37  ;;  %v1598_v48 = vpop.permute.xlu0 %1597  ;;  %v2950_v23 = vadd.f32 %v2949_v25, %v7543_v56 }
 0x461   :  { %v3020_v6 = vpop.f32.mrf.mxu1  ;;  %v1596_v4 = vpop.permute.xlu1 %1595 }
 0x462   :  { %9394 = vst [vmem:[#allocation73_spill] sm:$0xff] %v7711_v24  ;;  %v7714_v28 = vadd.f32 %v3020_v6, %v2948_v60  ;;  %v1848_v21 = vsel %vm1753_vm11, %v9395_v30, %v1596_v4  ;;  %v2951_v45 = vpop.f32.mrf.mxu0  ;;  %v1849_v55 = vsel %vm1753_vm11, %v1596_v4, %v1598_v48 }
 0x463   :  { %v2952_v1 = vadd.f32 %v2951_v45, %v7549_v34  ;;  %v3022_v31 = vpop.f32.mrf.mxu1  ;;  %3292 = vmatprep.subr.bf16.mxu1 %v1849_v55 }
 0x464   :  { %v7720_v38 = vadd.f32 %v3022_v31, %v2950_v23  ;;  %3293 = vmatpush2.bf16.msra.mxu1 %v1848_v21  ;;  %v1197_v53 = vpop.permute.xlu0 %1196  ;;  %v2955_v18 = vpop.f32.mrf.mxu0  ;;  %v9402_v21 = vld [vmem:[#allocation59_spill] sm:$0xff] }
 0x465   :  { %v2956_v56 = vadd.f32 %v2955_v18, %v7552_v50  ;;  %v3024_v42 = vpop.f32.mrf.mxu1  ;;  %v1342_v46 = vpop.permute.xlu1 %1341  ;;  %v1225_v37 = vsel %vm1214_vm15, %v9399_v57, %v1197_v53 }
 0x466   :  { %9396 = vst [vmem:[#allocation78_spill] sm:$0xff] %v7720_v38  ;;  %v7723_v62 = vadd.f32 %v3024_v42, %v2952_v1  ;;  %v1346_v16 = vsel %vm460_vm2, %v9330_v36, %v1342_v46  ;;  %v2957_v32 = vpop.f32.mrf.mxu0  ;;  %1611 = vrot.lane.b32.xlu0 %v1342_v46, %s4379_s8  ;;  %v9405_v46 = vld [vmem:[#allocation15_spill] sm:$0xff]  ;;  %vm9413_vm2 = vcmask 539648  }
 0x467   :  { %v2958_v34 = vadd.f32 %v2957_v32, %v7559_v33  ;;  %v3028_v2 = vpop.f32.mrf.mxu1  ;;  %1609 = vrot.lane.b32.xlu1 %v1346_v16, %s4379_s8  ;;  %vm9415_vm6 = vmmov %vm9413_vm2 }
 0x468   :  { %v7730_v12 = vadd.f32 %v3028_v2, %v2956_v56  ;;  %v1582_v22 = vpop.permute.xlu0 %1581  ;;  %v2959_v17 = vpop.f32.mrf.mxu0  ;;  %vm9418_vm7 = vmmov %vm9413_vm2 }
 0x469   :  { %v2960_v50 = vadd.f32 %v2959_v17, %v7562_v3  ;;  %v3030_v49 = vpop.f32.mrf.mxu1  ;;  %v1199_v0 = vpop.permute.xlu1 %1198  ;;  %v1842_v45 = vsel %vm1753_vm11, %v9402_v21, %v1582_v22  ;;  %vm9419_vm14 = vmmov %vm9413_vm2 }
 0x46a   :  { %9397 = vst [vmem:[#allocation77_spill] sm:$0xff] %v7730_v12  ;;  %v7733_v9 = vadd.f32 %v3030_v49, %v2958_v34  ;;  %v2961_v61 = vpop.f32.mrf.mxu0  ;;  %v1226_v36 = vsel %vm1214_vm15, %v1197_v53, %v1199_v0 }
 0x46b   :  { %v2962_v33 = vadd.f32 %v2961_v61, %v7572_v5  ;;  %v3032_v60 = vpop.f32.mrf.mxu1  ;;  %3221 = vmatprep.subr.bf16.mxu0 %v1226_v36  ;;  %v9408_v36 = vld [vmem:[#allocation82_spill] sm:$0xff] }
 0x46c   :  { %9398 = vst [vmem:[#allocation5_spill] sm:$0xff] %v7733_v9  ;;  %v7739_v58 = vadd.f32 %v3032_v60, %v2960_v50  ;;  %3222 = vmatpush2.bf16.msra.mxu0 %v1225_v37  ;;  %v1371_v15 = vpop.permute.xlu0 %1370  ;;  %v2965_v25 = vpop.f32.mrf.mxu0 }
 0x46d   :  { %v1374_v3 = vsel %vm670_vm9, %v9352_v14, %v1371_v15  ;;  %v2966_v48 = vadd.f32 %v2965_v25, %v7582_v27  ;;  %v3034_v23 = vpop.f32.mrf.mxu1  ;;  %v1584_v6 = vpop.permute.xlu1 %1583  ;;  %1751 = vrot.lane.b32.xlu0 %v1371_v15, %s4379_s8 }
 0x46e   :  { %9400 = vst [vmem:[#allocation19_spill] sm:$0xff] %v7739_v58  ;;  %v7745_v4 = vadd.f32 %v3034_v23, %v2962_v33  ;;  %1749 = vrot.lane.b32.xlu1 %v1374_v3, %s4379_s8  ;;  %v2967_v5 = vpop.f32.mrf.mxu0  ;;  %v1843_v30 = vsel %vm1753_vm11, %v1582_v22, %v1584_v6 }
 0x46f   :  { %v2968_v55 = vadd.f32 %v2967_v5, %v7586_v13  ;;  %v3038_v1 = vpop.f32.mrf.mxu1  ;;  %3294 = vmatprep.subr.bf16.mxu1 %v1843_v30 }
 0x470   :  { %9401 = vst [vmem:[#allocation17_spill] sm:$0xff] %v7745_v4  ;;  %v7752_v14 = vadd.f32 %v3038_v1, %v2966_v48  ;;  %3295 = vmatpush2.bf16.msra.mxu1 %v1842_v45  ;;  %v1185_v27 = vpop.permute.xlu0 %1184  ;;  %v2969_v31 = vpop.f32.mrf.mxu0 }
 0x471   :  { %v2970_v53 = vadd.f32 %v2969_v31, %v7592_v29  ;;  %v3040_v18 = vpop.f32.mrf.mxu1  ;;  %v1183_v56 = vpop.permute.xlu1 %1182 }
 0x472   :  { %9403 = vst [vmem:[#allocation3_spill] sm:$0xff] %v7752_v14  ;;  %v7755_v42 = vadd.f32 %v3040_v18, %v2968_v55  ;;  %v1219_v16 = vsel %vm1214_vm15, %v9405_v46, %v1183_v56  ;;  %v2971_v32 = vpop.f32.mrf.mxu0  ;;  %v1220_v2 = vsel %vm1214_vm15, %v1183_v56, %v1185_v27  ;;  %vm9423_vm15 = vmmov %vm9413_vm2 }
 0x473   :  { %v2972_v34 = vadd.f32 %v2971_v32, %v7599_v59  ;;  %v3042_v13 = vpop.f32.mrf.mxu1  ;;  %3223 = vmatprep.subr.bf16.mxu0 %v1220_v2  ;;  %v9417_v2 = vld [vmem:[#allocation88_spill] sm:$0xff] }
 0x474   :  { %9404 = vst [vmem:[#allocation33_spill] sm:$0xff] %v7755_v42  ;;  %v7761_v22 = vadd.f32 %v3042_v13, %v2970_v53  ;;  %v1570_v17 = vpop.permute.xlu0 %1569  ;;  %v2975_v50 = vpop.f32.mrf.mxu0  ;;  %3224 = vmatpush2.bf16.msra.mxu0 %v1219_v16  ;;  %v9414_v53 = vld [vmem:[#allocation62_spill] sm:$0xff]  ;;  %v9416_v16 = vld [vmem:[#allocation84_spill] sm:$0xff] }
 0x475   :  { %v2976_v29 = vadd.f32 %v2975_v50, %v7608_v35  ;;  %v3044_v49 = vpop.f32.mrf.mxu1  ;;  %v1568_v0 = vpop.permute.xlu1 %1567 }
 0x476   :  { %9406 = vst [vmem:[#allocation46_spill] sm:$0xff] %v7761_v22  ;;  %v7764_v61 = vadd.f32 %v3044_v49, %v2972_v34  ;;  %v1836_v57 = vsel %vm1753_vm11, %v9408_v36, %v1568_v0  ;;  %v2977_v37 = vpop.f32.mrf.mxu0  ;;  %v1837_v60 = vsel %vm1753_vm11, %v1568_v0, %v1570_v17  ;;  %v9420_v49 = vld [vmem:[#allocation85_spill] sm:$0xff] }
 0x477   :  { %v2978_v59 = vadd.f32 %v2977_v37, %v7614_v26  ;;  %v3048_v33 = vpop.f32.mrf.mxu1  ;;  %3296 = vmatprep.subr.bf16.mxu1 %v1837_v60 }
 0x478   :  { %9407 = vst [vmem:[#allocation50_spill] sm:$0xff] %v7764_v61  ;;  %v7770_v15 = vadd.f32 %v3048_v33, %v2976_v29  ;;  %v1132_v25 = vpop.permute.xlu0 %1131  ;;  %v2979_v3 = vpop.f32.mrf.mxu0  ;;  %3297 = vmatpush2.bf16.msra.mxu1 %v1836_v57 }
 0x479   :  { %v2980_v35 = vadd.f32 %v2979_v3, %v7623_v11  ;;  %v3050_v48 = vpop.f32.mrf.mxu1  ;;  %v1369_v23 = vpop.permute.xlu1 %1368 }
 0x47a   :  { %9409 = vst [vmem:[#allocation29_spill] sm:$0xff] %v7770_v15  ;;  %v7773_v6 = vadd.f32 %v3050_v48, %v2978_v59  ;;  %v1373_v5 = vsel %vm670_vm9, %v9356_v7, %v1369_v23  ;;  %v2981_v30 = vpop.f32.mrf.mxu0  ;;  %1737 = vrot.lane.b32.xlu0 %v1369_v23, %s4379_s8  ;;  %v1152_v7 = vsel %vm9415_vm6, %v9414_v53, %v1132_v25  ;;  %v9421_v59 = vld [vmem:[#allocation26_spill] sm:$0xff] }
 0x47b   :  { %v2982_v26 = vadd.f32 %v2981_v30, %v7627_v40  ;;  %v3052_v21 = vpop.f32.mrf.mxu1  ;;  %1735 = vrot.lane.b32.xlu1 %v1373_v5, %s4379_s8  ;;  %v9424_v30 = vld [vmem:[#allocation70_spill] sm:$0xff] }
 0x47c   :  { %9410 = vst [vmem:[#allocation42_spill] sm:$0xff] %v7773_v6  ;;  %v7780_v45 = vadd.f32 %v3052_v21, %v2980_v35  ;;  %v1554_v55 = vpop.permute.xlu0 %1553 }
 0x47d   :  { %v3054_v1 = vpop.f32.mrf.mxu1  ;;  %v1134_v11 = vpop.permute.xlu1 %1133  ;;  %v1830_v32 = vsel %vm1753_vm11, %v9416_v16, %v1554_v55 }
 0x47e   :  { %9411 = vst [vmem:[#allocation21_spill] sm:$0xff] %v7780_v45  ;;  %v7782_v27 = vadd.f32 %v3054_v1, %v2982_v26  ;;  %v1153_v31 = vsel %vm9413_vm2, %v1132_v25, %v1134_v11 }
 0x47f   :  { %3225 = vmatprep.subr.bf16.mxu0 %v1153_v31 }
 0x480   :  { %9412 = vst [vmem:[#allocation44_spill] sm:$0xff] %v7782_v27  ;;  %3226 = vmatpush2.bf16.msra.mxu0 %v1152_v7  ;;  %v1367_v18 = vpop.permute.xlu0 %1366  ;;  %v9425_v7 = vld [vmem:[#allocation23_spill] sm:$0xff] }
 0x481   :  { %v1372_v40 = vsel %vm670_vm9, %v9359_v52, %v1367_v18  ;;  %v1556_v56 = vpop.permute.xlu1 %1555  ;;  %1723 = vrot.lane.b32.xlu0 %v1367_v18, %s4379_s8  ;;  %vm9422_vm9 = vmmov %vm9413_vm2 }
 0x482   :  { %1721 = vrot.lane.b32.xlu1 %v1372_v40, %s4379_s8  ;;  %v1831_v46 = vsel %vm1753_vm11, %v1554_v55, %v1556_v56 }
 0x483   :  { %3298 = vmatprep.subr.bf16.mxu1 %v1831_v46 }
 0x484   :  { %3299 = vmatpush2.bf16.msra.mxu1 %v1830_v32  ;;  %v1120_v34 = vpop.permute.xlu0 %1119  ;;  %v4345_v32 = vld [vmem:[%s8732_s2 + $0x10] ss:$40 sps:$4 sm:$0xff]  }
 0x485   :  { %v1118_v13 = vpop.permute.xlu1 %1117 }
 0x486   :  { %v1146_v17 = vsel %vm9418_vm7, %v9417_v2, %v1118_v13  ;;  %v1147_v50 = vsel %vm9419_vm14, %v1118_v13, %v1120_v34  ;;  %v4346_v13 = vld [vmem:[%s8732_s2 + $0x64] ss:$40 sps:$4 sm:$0xff]  }
 0x487   :  { %3227 = vmatprep.subr.bf16.mxu0 %v1147_v50 }
 0x488   :  { %3228 = vmatpush2.bf16.msra.mxu0 %v1146_v17  ;;  %v1542_v52 = vpop.permute.xlu0 %1541  ;;  %v9426_v17 = vld [vmem:[#allocation60_spill] sm:$0xff] }
 0x489   :  { %v1540_v29 = vpop.permute.xlu1 %1539 }
 0x48a   :  { %v1824_v0 = vsel %vm1753_vm11, %v9420_v49, %v1540_v29  ;;  %v1825_v36 = vsel %vm1753_vm11, %v1540_v29, %v1542_v52  ;;  %v4347_v52 = vld [vmem:[%s8732_s2 + $0x18] ss:$40 sps:$4 sm:$0xff]  }
 0x48b   :  { %3300 = vmatprep.subr.bf16.mxu1 %v1825_v36  ;;  %v9427_v36 = vld [vmem:[#allocation93_spill] sm:$0xff] }
 0x48c   :  { %3301 = vmatpush2.bf16.msra.mxu1 %v1824_v0  ;;  %v1106_v57 = vpop.permute.xlu0 %1105  ;;  %v4348_v0 = vld [vmem:[%s8732_s2 + $0x6c] ss:$40 sps:$4 sm:$0xff]  }
 0x48d   :  { %v1104_v37 = vpop.permute.xlu1 %1103 }
 0x48e   :  { %v1140_v33 = vsel %vm9422_vm9, %v9421_v59, %v1104_v37  ;;  %v1141_v60 = vsel %vm9423_vm15, %v1104_v37, %v1106_v57 }
 0x48f   :  { %3229 = vmatprep.subr.bf16.mxu0 %v1141_v60  ;;  %v4349_v60 = vld [vmem:[%s8732_s2 + $0x60] ss:$40 sps:$4 sm:$0xff]  }
 0x490   :  { %3230 = vmatpush2.bf16.msra.mxu0 %v1140_v33  ;;  %v1528_v25 = vpop.permute.xlu0 %1527 }
 0x491   :  { %v1526_v3 = vpop.permute.xlu1 %1525 }
 0x492   :  { %v1818_v35 = vsel %vm1753_vm11, %v7045_v8, %v1526_v3  ;;  %v1819_v48 = vsel %vm1753_vm11, %v1526_v3, %v1528_v25  ;;  %v9428_v25 = vld [vmem:[#allocation95_spill] sm:$0xff] }
 0x493   :  { %3302 = vmatprep.subr.bf16.mxu1 %v1819_v48  ;;  %v4350_v48 = vld [vmem:[%s8732_s2 + $0xb4] ss:$40 sps:$4 sm:$0xff]  }
 0x494   :  { %3303 = vmatpush2.bf16.msra.mxu1 %v1818_v35  ;;  %v1055_v23 = vpop.permute.xlu0 %1054 }
 0x495   :  { %v1053_v5 = vpop.permute.xlu1 %1052 }
 0x496   :  { %v1073_v26 = vsel %vm1056_vm10, %v9424_v30, %v1053_v5  ;;  %v1074_v21 = vsel %vm1056_vm10, %v1053_v5, %v1055_v23  ;;  %v4351_v5 = vld [vmem:[%s8732_s2 + $0x68] ss:$40 sps:$4 sm:$0xff]  }
 0x497   :  { %3231 = vmatprep.subr.bf16.mxu0 %v1074_v21  ;;  %v9429_v21 = vld [vmem:[#allocation64_spill] sm:$0xff] }
 0x498   :  { %3232 = vmatpush2.bf16.msra.mxu0 %v1073_v26  ;;  %v1514_v55 = vpop.permute.xlu0 %1513  ;;  %v4352_v26 = vld [vmem:[%s8732_s2 + $0xbc] ss:$40 sps:$4 sm:$0xff]  }
 0x499   :  { %v1512_v1 = vpop.permute.xlu1 %1511 }
 0x49a   :  { %v1812_v11 = vsel %vm1753_vm11, %v7070_v41, %v1512_v1  ;;  %v1813_v8 = vsel %vm1753_vm11, %v1512_v1, %v1514_v55 }
 0x49b   :  { %3304 = vmatprep.subr.bf16.mxu1 %v1813_v8  ;;  %v4354_v8 = vld [vmem:[%s8732_s2 + $0x104] ss:$40 sps:$4 sm:$0xff]  }
 0x49c   :  { %3305 = vmatpush2.bf16.msra.mxu1 %v1812_v11  ;;  %v1041_v31 = vpop.permute.xlu0 %1040  ;;  %v4353_v11 = vld [vmem:[%s8732_s2 + $0xb0] ss:$40 sps:$4 sm:$0xff]  }
 0x49d   :  { %v1039_v53 = vpop.permute.xlu1 %1038 }
 0x49e   :  { %v1067_v18 = vsel %vm1056_vm10, %v9425_v7, %v1039_v53  ;;  %v1068_v40 = vsel %vm1056_vm10, %v1039_v53, %v1041_v31  ;;  %v4355_v7 = vld [vmem:[%s8732_s2 + $0xb8] ss:$40 sps:$4 sm:$0xff]   ;;  %vm3506_vm10 = vcmask 695296  }
 0x49f   :  { %3233 = vmatprep.subr.bf16.mxu0 %v1068_v40 }
 0x4a0   :  { %3234 = vmatpush2.bf16.msra.mxu0 %v1067_v18  ;;  %v1500_v56 = vpop.permute.xlu0 %1499  ;;  %v9430_v18 = vld [vmem:[#allocation48_spill] sm:$0xff] }
 0x4a1   :  { %v1498_v46 = vpop.permute.xlu1 %1497 }
 0x4a2   :  { %v1806_v16 = vsel %vm1753_vm11, %v7094_v51, %v1498_v46  ;;  %v1807_v41 = vsel %vm1753_vm11, %v1498_v46, %v1500_v56  ;;  %v4356_v46 = vld [vmem:[%s8732_s2 + $0x10c] ss:$40 sps:$4 sm:$0xff]  }
 0x4a3   :  { %3236 = vmatmul.mubr.bf16.vlgmr.msra.gmra.mxu0 %v4345_v32  ;;  %3306 = vmatprep.subr.bf16.mxu1 %v1807_v41  ;;  %v4358_v41 = vld [vmem:[%s8732_s2 + $0x24] ss:$40 sps:$4 sm:$0xff]   ;;  %v4359_v32 = vld [vmem:[%s8732_s2 + $0x108] ss:$40 sps:$4 sm:$0xff]  }
 0x4a4   :  { %3307 = vmatpush2.bf16.msra.mxu1 %v1806_v16  ;;  %v1710_v34 = vpop.permute.xlu0 %1709  ;;  %3245 = vmatprep.mubr.bf16.mxu0 %v4346_v13  ;;  %v4357_v16 = vld [vmem:[%s8732_s2 + $0x100] ss:$40 sps:$4 sm:$0xff]  }
 0x4a5   :  { %v1708_v2 = vpop.permute.xlu1 %1707 }
 0x4a6   :  { %v1896_v50 = vsel %vm1753_vm11, %v9426_v17, %v1708_v2  ;;  %v1897_v51 = vsel %vm1753_vm11, %v1708_v2, %v1710_v34  ;;  %v4360_v34 = vld [vmem:[%s8732_s2 + $0xc4] ss:$40 sps:$4 sm:$0xff]  }
 0x4a7   :  { %3309 = vmatmul.mubr.bf16.vlgmr.msra.gmra.mxu1 %v4347_v52  ;;  %3349 = vmatprep.subr.bf16.mxu0 %v1897_v51  ;;  %v9431_v17 = vld [vmem:[#allocation75_spill] sm:$0xff] }
 0x4a8   :  { %4175 = vmatprep.subr.bf16.mxu1 %v1897_v51  ;;  %3350 = vmatpush1.bf16.msra.mxu0 %v1896_v50  ;;  %v1696_v29 = vpop.permute.xlu0 %1695 }
 0x4a9   :  { %4186 = vmatpush1.bf16.msra.mxu1 %v1896_v50  ;;  %v1694_v49 = vpop.permute.xlu1 %1693  ;;  %3318 = vmatprep.mubr.bf16.mxu1 %v4348_v0 }
 0x4aa   :  { %v1890_v57 = vsel %vm1753_vm11, %v9427_v36, %v1694_v49  ;;  %v1891_v37 = vsel %vm1753_vm11, %v1694_v49, %v1696_v29  ;;  %v9432_v49 = vld [vmem:[#allocation76_spill] sm:$0xff] }
 0x4ab   :  { %3351 = vmatprep.subr.bf16.mxu0 %v1891_v37  ;;  %4176 = vmatprep.subr.bf16.mxu1 %v1891_v37 }
 0x4ac   :  { %3352 = vmatpush1.bf16.msra.mxu0 %v1890_v57  ;;  %v1682_v59 = vpop.permute.xlu0 %1681 }
 0x4ad   :  { %4187 = vmatpush1.bf16.msra.mxu1 %v1890_v57  ;;  %v1680_v33 = vpop.permute.xlu1 %1679  ;;  %3246 = vmatmul.mubr.bf16.gmra.mxu0 %v4349_v60 }
 0x4ae   :  { %v1884_v3 = vsel %vm1753_vm11, %v9428_v25, %v1680_v33  ;;  %v1885_v35 = vsel %vm1753_vm11, %v1680_v33, %v1682_v59  ;;  %3255 = vmatprep.mubr.bf16.mxu0 %v4350_v48 }
 0x4af   :  { %3353 = vmatprep.subr.bf16.mxu0 %v1885_v35  ;;  %4177 = vmatprep.subr.bf16.mxu1 %v1885_v35 }
 0x4b0   :  { %3354 = vmatpush1.bf16.msra.mxu0 %v1884_v3  ;;  %v1668_v23 = vpop.permute.xlu0 %1667  ;;  %3319 = vmatmul.mubr.bf16.gmra.mxu1 %v4351_v5 }
 0x4b1   :  { %4188 = vmatpush1.bf16.msra.mxu1 %v1884_v3  ;;  %v1666_v30 = vpop.permute.xlu1 %1665  ;;  %3328 = vmatprep.mubr.bf16.mxu1 %v4352_v26 }
 0x4b2   :  { %v1878_v55 = vsel %vm1753_vm11, %v9429_v21, %v1666_v30  ;;  %v1879_v1 = vsel %vm1753_vm11, %v1666_v30, %v1668_v23 }
 0x4b3   :  { %3355 = vmatprep.subr.bf16.mxu0 %v1879_v1  ;;  %4178 = vmatprep.subr.bf16.mxu1 %v1879_v1  ;;  %v4361_v1 = vld [vmem:[%s8732_s2 + $0x20] ss:$40 sps:$4 sm:$0xff]  }
 0x4b4   :  { %3356 = vmatpush1.bf16.msra.mxu0 %v1878_v55 }
 0x4b5   :  { %4189 = vmatpush1.bf16.msra.mxu1 %v1878_v55  ;;  %3256 = vmatmul.mubr.bf16.gmra.mxu0 %v4353_v11  ;;  %v4362_v11 = vld [vmem:[%s8732_s2 + $0xc0] ss:$40 sps:$4 sm:$0xff]  }
 0x4b6   :  { %3265 = vmatprep.mubr.bf16.mxu0 %v4354_v8  ;;  %v4364_v8 = vld [vmem:[%s8732_s2 + $0x114] ss:$40 sps:$4 sm:$0xff]  }
 0x4b7   :  { %v1654_v31 = vpop.permute.xlu0 %1653 }
 0x4b8   :  { %v1652_v53 = vpop.permute.xlu1 %1651  ;;  %3329 = vmatmul.mubr.bf16.gmra.mxu1 %v4355_v7  ;;  %v7921_v7 = vpop.f32.mrf.mxu0 }
 0x4b9   :  { %v1872_v40 = vsel %vm1753_vm11, %v9430_v18, %v1652_v53  ;;  %v1873_v56 = vsel %vm1753_vm11, %v1652_v53, %v1654_v31  ;;  %3338 = vmatprep.mubr.bf16.mxu1 %v4356_v46  ;;  %v4365_v31 = vld [vmem:[%s8732_s2 + $0x70] ss:$40 sps:$4 sm:$0xff]   ;;  %v7923_v18 = vpop.f32.mrf.mxu1 }
 0x4ba   :  { %3357 = vmatprep.subr.bf16.mxu0 %v1873_v56  ;;  %4179 = vmatprep.subr.bf16.mxu1 %v1873_v56  ;;  %v4366_v53 = vld [vmem:[%s8732_s2 + $0x110] ss:$40 sps:$4 sm:$0xff]  }
 0x4bb   :  { %3358 = vmatpush1.bf16.msra.mxu0 %v1872_v40  ;;  %4190 = vmatpush1.bf16.msra.mxu1 %v1872_v40  ;;  %v7925_v40 = vpop.f32.mrf.mxu0  ;;  %v7927_v56 = vpop.f32.mrf.mxu1 }
 0x4bd   :  { %3266 = vmatmul.mubr.bf16.gmra.mxu0 %v4357_v16  ;;  %v7929_v46 = vpop.f32.mrf.mxu0  ;;  %v7931_v16 = vpop.f32.mrf.mxu1 }
 0x4be   :  { %4171 = vmatprep.mubr.msk.bf16.mxu0 %vm2314_vm12, %v4358_v41 }
 0x4bf   :  { %v7933_v41 = vpop.f32.mrf.mxu0 }
 0x4c0   :  { %3339 = vmatmul.mubr.bf16.gmra.mxu1 %v4359_v32  ;;  %v7935_v32 = vpop.f32.mrf.mxu1 }
 0x4c1   :  { %4173 = vmatprep.mubr.msk.bf16.mxu1 %vm2314_vm12, %v4360_v34  ;;  %v7937_v34 = vpop.f32.mrf.mxu0 }
 0x4c4   :  { %v1640_v13 = vpop.permute.xlu0 %1639 }
 0x4c5   :  { %v1638_v2 = vpop.permute.xlu1 %1637 }
 0x4c6   :  { %v1866_v50 = vsel %vm1753_vm11, %v9431_v17, %v1638_v2  ;;  %v1867_v51 = vsel %vm1753_vm11, %v1638_v2, %v1640_v13  ;;  %v7939_v13 = vpop.f32.mrf.mxu1  ;;  %v7941_v2 = vpop.f32.mrf.mxu0 }
 0x4c7   :  { %3359 = vmatprep.subr.bf16.mxu0 %v1867_v51  ;;  %4180 = vmatprep.subr.bf16.mxu1 %v1867_v51 }
 0x4c8   :  { %3360 = vmatpush1.bf16.msra.mxu0 %v1866_v50  ;;  %4191 = vmatpush1.bf16.msra.mxu1 %v1866_v50  ;;  %v7943_v17 = vpop.f32.mrf.mxu1  ;;  %v7945_v50 = vpop.f32.mrf.mxu0 }
 0x4ca   :  { %v7947_v51 = vpop.f32.mrf.mxu1 }
 0x4cb   :  { %v1626_v52 = vpop.permute.xlu0 %1625 }
 0x4cc   :  { %v1624_v29 = vpop.permute.xlu1 %1623 }
 0x4cd   :  { %v1860_v0 = vsel %vm1753_vm11, %v9432_v49, %v1624_v29  ;;  %v1861_v36 = vsel %vm1753_vm11, %v1624_v29, %v1626_v52  ;;  %v7949_v52 = vpop.f32.mrf.mxu0  ;;  %v7951_v29 = vpop.f32.mrf.mxu1 }
 0x4ce   :  { %3361 = vmatprep.subr.bf16.mxu0 %v1861_v36  ;;  %4181 = vmatprep.subr.bf16.mxu1 %v1861_v36 }
 0x4cf   :  { %3362 = vmatpush1.bf16.msra.mxu0 %v1860_v0  ;;  %4192 = vmatpush1.bf16.msra.mxu1 %v1860_v0  ;;  %v7953_v49 = vpop.f32.mrf.mxu0  ;;  %v7955_v0 = vpop.f32.mrf.mxu1 }
 0x4d1   :  { %v7957_v36 = vpop.f32.mrf.mxu0 }
 0x4d8   :  { %v1612_v57 = vpop.permute.xlu0 %1611 }
 0x4d9   :  { %v1610_v37 = vpop.permute.xlu1 %1609 }
 0x4da   :  { %v1854_v59 = vsel %vm1753_vm11, %v7034_v54, %v1610_v37  ;;  %v1855_v33 = vsel %vm1753_vm11, %v1610_v37, %v1612_v57  ;;  %v9433_v54 = vld [vmem:[#allocation80_spill] sm:$0xff]  ;;  %v7959_v57 = vpop.f32.mrf.mxu1  ;;  %v7961_v37 = vpop.f32.mrf.mxu0 }
 0x4db   :  { %3363 = vmatprep.subr.bf16.mxu0 %v1855_v33  ;;  %4182 = vmatprep.subr.bf16.mxu1 %v1855_v33  ;;  %9434 = vst [vmem:[#allocation45_spill] sm:$0xff] %v7961_v37 }
 0x4dc   :  { %3364 = vmatpush1.bf16.msra.mxu0 %v1854_v59  ;;  %4193 = vmatpush1.bf16.msra.mxu1 %v1854_v59  ;;  %v7963_v59 = vpop.f32.mrf.mxu1  ;;  %v7965_v33 = vpop.f32.mrf.mxu0 }
 0x4dd   :  { %9435 = vst [vmem:[#allocation55_spill] sm:$0xff] %v7963_v59  ;;  %9436 = vst [vmem:[#allocation40_spill] sm:$0xff] %v7965_v33 }
 0x4df   :  { %v1752_v60 = vpop.permute.xlu0 %1751 }
 0x4e0   :  { %v1750_v25 = vpop.permute.xlu1 %1749 }
 0x4e1   :  { %v1914_v3 = vsel %vm1753_vm11, %v7059_v19, %v1750_v25  ;;  %v1915_v35 = vsel %vm1753_vm11, %v1750_v25, %v1752_v60  ;;  %v7967_v60 = vpop.f32.mrf.mxu1  ;;  %v7969_v25 = vpop.f32.mrf.mxu0 }
 0x4e2   :  { %3375 = vmatprep.subr.bf16.mxu0 %v1915_v35  ;;  %4183 = vmatprep.subr.bf16.mxu1 %v1915_v35  ;;  %9437 = vst [vmem:[#allocation41_spill] sm:$0xff] %v7967_v60  ;;  %9438 = vst [vmem:[#allocation11_spill] sm:$0xff] %v7969_v25  ;;  %v9472_v60 = vld [vmem:[#allocation54_spill] sm:$0xff] }
 0x4e3   :  { %3376 = vmatpush2.bf16.msra.mxu0 %v1914_v3  ;;  %4194 = vmatpush2.bf16.msra.mxu1 %v1914_v3  ;;  %v7971_v3 = vpop.f32.mrf.mxu1  ;;  %v7973_v35 = vpop.f32.mrf.mxu0 }
 0x4e4   :  { %9439 = vst [vmem:[#allocation36_spill] sm:$0xff] %v7971_v3  ;;  %9440 = vst [vmem:[#allocation37_spill] sm:$0xff] %v7973_v35  ;;  %v9468_v35 = vld [vmem:[#allocation92_spill] sm:$0xff]  ;;  %v9471_v3 = vld [vmem:[#allocation22_spill] sm:$0xff] }
 0x4ec   :  { %v1738_v48 = vpop.permute.xlu0 %1737 }
 0x4ed   :  { %v1736_v23 = vpop.permute.xlu1 %1735 }
 0x4ee   :  { %v1908_v5 = vsel %vm1753_vm11, %v9433_v54, %v1736_v23  ;;  %v1909_v30 = vsel %vm1753_vm11, %v1736_v23, %v1738_v48  ;;  %v7975_v48 = vpop.f32.mrf.mxu1  ;;  %v7977_v23 = vpop.f32.mrf.mxu0 }
 0x4ef   :  { %3377 = vmatprep.subr.bf16.mxu0 %v1909_v30  ;;  %4184 = vmatprep.subr.bf16.mxu1 %v1909_v30  ;;  %9441 = vst [vmem:[#allocation10_spill] sm:$0xff] %v7975_v48  ;;  %9442 = vst [vmem:[#allocation32_spill] sm:$0xff] %v7977_v23 }
 0x4f0   :  { %3378 = vmatpush2.bf16.msra.mxu0 %v1908_v5  ;;  %4195 = vmatpush2.bf16.msra.mxu1 %v1908_v5  ;;  %v7979_v54 = vpop.f32.mrf.mxu1  ;;  %v7981_v5 = vpop.f32.mrf.mxu0 }
 0x4f1   :  { %9443 = vst [vmem:[#allocation47_spill] sm:$0xff] %v7979_v54  ;;  %9444 = vst [vmem:[#allocation28_spill] sm:$0xff] %v7981_v5 }
 0x4f2   :  { %v7983_v30 = vpop.f32.mrf.mxu1 }
 0x4f3   :  { %v1724_v26 = vpop.permute.xlu0 %1723  ;;  %9445 = vst [vmem:[#allocation30_spill] sm:$0xff] %v7983_v30 }
 0x4f4   :  { %v1722_v21 = vpop.permute.xlu1 %1721 }
 0x4f5   :  { %v1902_v19 = vsel %vm1753_vm11, %v7106_v20, %v1722_v21  ;;  %v1903_v55 = vsel %vm1753_vm11, %v1722_v21, %v1724_v26  ;;  %v4363_v20 = vld [vmem:[%s8732_s2 + $0x74] ss:$40 sps:$4 sm:$0xff]  }
 0x4f6   :  { %3379 = vmatprep.subr.bf16.mxu0 %v1903_v55  ;;  %4185 = vmatprep.subr.bf16.mxu1 %v1903_v55 }
 0x4f7   :  { %3380 = vmatpush2.bf16.msra.mxu0 %v1902_v19  ;;  %4196 = vmatpush2.bf16.msra.mxu1 %v1902_v19 }
 0x4fa   :  { %3382 = vmatmul.mubr.bf16.vlgmr.msra.gmra.mxu0 %v4361_v1  ;;  %3402 = vmatmul.mubr.bf16.vlgmr.msra.gmra.mxu1 %v4362_v11 }
 0x4fb   :  { %4172 = vmatprep.mubr.msk.bf16.mxu0 %vm2314_vm12, %v4363_v20  ;;  %4174 = vmatprep.mubr.msk.bf16.mxu1 %vm2314_vm12, %v4364_v8 }
 0x502   :  { %3392 = vmatmul.mubr.bf16.gmra.mxu0 %v4365_v31  ;;  %3412 = vmatmul.mubr.bf16.gmra.mxu1 %v4366_v53 }
 0x563   :  { %v7985_v26 = vpop.f32.mrf.mxu0 }
 0x565   :  { %v7989_v19 = vpop.f32.mrf.mxu0 }
 0x566   :  { %9447 = vst [vmem:[#allocation81_spill] sm:$0xff] %v7989_v19  ;;  %v9470_v19 = vld [vmem:[#allocation94_spill] sm:$0xff] }
 0x567   :  { %v7987_v21 = vpop.f32.mrf.mxu1  ;;  %v7993_v1 = vpop.f32.mrf.mxu0 }
 0x568   :  { %9446 = vst [vmem:[#allocation39_spill] sm:$0xff] %v7987_v21  ;;  %9449 = vst [vmem:[#allocation18_spill] sm:$0xff] %v7993_v1  ;;  %v9469_v21 = vld [vmem:[#allocation4_spill] sm:$0xff] }
 0x569   :  { %v7991_v55 = vpop.f32.mrf.mxu1  ;;  %v7997_v20 = vpop.f32.mrf.mxu0 }
 0x56a   :  { %9448 = vst [vmem:[#allocation27_spill] sm:$0xff] %v7991_v55  ;;  %9451 = vst [vmem:[#allocation83_spill] sm:$0xff] %v7997_v20  ;;  %v3424_v55 = vlaneseq }
 0x56b   :  { %v7995_v11 = vpop.f32.mrf.mxu1 }
 0x56c   :  { %9450 = vst [vmem:[#allocation12_spill] sm:$0xff] %v7995_v11  ;;  %v8017_v20 = vshrl.u32 %v3424_v55, 7 }
 0x56d   :  { %v7999_v8 = vpop.f32.mrf.mxu1  ;;  %v8001_v31 = vpop.f32.mrf.mxu0 }
 0x56e   :  { %9452 = vst [vmem:[#allocation24_spill] sm:$0xff] %v7999_v8  ;;  %9453 = vst [vmem:[#allocation51_spill] sm:$0xff] %v8001_v31  ;;  %v3438_v48 = vsub.s32 3, %v8017_v20 }
 0x56f   :  { %v8005_v27 = vpop.f32.mrf.mxu0 }
 0x570   :  { %v8003_v53 = vpop.f32.mrf.mxu1  ;;  %9455 = vst [vmem:[#allocation9_spill] sm:$0xff] %v8005_v27  ;;  %v3430_v27 = vsub.s32 1, %v8017_v20 }
 0x571   :  { %9454 = vst [vmem:[#allocation65_spill] sm:$0xff] %v8003_v53  ;;  %v8009_v5 = vpop.f32.mrf.mxu0  ;;  %v3426_v53 = vsub.s32 0, %v8017_v20 }
 0x572   :  { %v8007_v30 = vpop.f32.mrf.mxu1  ;;  %9457 = vst [vmem:[#allocation53_spill] sm:$0xff] %v8009_v5 }
 0x573   :  { %9456 = vst [vmem:[#allocation2_spill] sm:$0xff] %v8007_v30  ;;  %v8013_v1 = vpop.f32.mrf.mxu0  ;;  %v8028_v30 = vld [vmem:[%s8733_s1] sm:$0x3f] }
 0x574   :  { %v8011_v54 = vpop.f32.mrf.mxu1  ;;  %9459 = vst [vmem:[#allocation67_spill] sm:$0xff] %v8013_v1  ;;  %v8035_v55 = vrot.slane %v8028_v30, %v3426_v53 }
 0x575   :  { %9458 = vst [vmem:[#allocation66_spill] sm:$0xff] %v8011_v54  ;;  %v8019_v8 = vpop.f32.mrf.mxu0 }
 0x576   :  { %v8015_v11 = vpop.f32.mrf.mxu1  ;;  %9461 = vst [vmem:[#allocation35_spill] sm:$0xff] %v8019_v8  ;;  %v3454_v23 = vmul.f32 %v8035_v55, %v7128_v10  ;;  %v3460_v53 = vmul.f32 %v8035_v55, %v7152_v44  ;;  %v3478_v44 = vmul.f32 %v8035_v55, %v9469_v21  ;;  %v3484_v25 = vmul.f32 %v8035_v55, %v9471_v3 }
 0x577   :  { %9460 = vst [vmem:[#allocation38_spill] sm:$0xff] %v8015_v11  ;;  %v8030_v54 = vpop.f32.mrf.mxu0  ;;  %v8038_v11 = vrot.slane %v8028_v30, %v3430_v27  ;;  %v8080_v21 = vrot.slane %v8028_v30, %v3438_v48 }
 0x578   :  { %v8021_v31 = vpop.f32.mrf.mxu1  ;;  %9463 = vst [vmem:[#allocation16_spill] sm:$0xff] %v8030_v54 }
 0x579   :  { %9462 = vst [vmem:[#allocation86_spill] sm:$0xff] %v8021_v31  ;;  %v3434_v31 = vsub.s32 2, %v8017_v20  ;;  %v8041_v8 = vpop.f32.mrf.mxu0  ;;  %v3455_v54 = vmul.f32 %v8038_v11, %v7143_v43  ;;  %v3461_v27 = vmul.f32 %v8038_v11, %v7166_v47  ;;  %v3467_v10 = vmul.f32 %v8038_v11, %v7193_v63 }
 0x57a   :  { %v8032_v1 = vpop.f32.mrf.mxu1  ;;  %9465 = vst [vmem:[#allocation14_spill] sm:$0xff] %v8041_v8  ;;  %v9467_v8 = vld [vmem:[#allocation6_spill] sm:$0xff]  ;;  %v3479_v47 = vmul.f32 %v8038_v11, %v9470_v19 }
 0x57b   :  { %9464 = vst [vmem:[#allocation69_spill] sm:$0xff] %v8032_v1  ;;  %v8050_v1 = vrot.slane %v8028_v30, %v3434_v31  ;;  %v3472_v43 = vmul.f32 %v8035_v55, %v9467_v8  ;;  %v3473_v31 = vmul.f32 %v8038_v11, %v9468_v35  ;;  %v8073_v33 = vpop.f32.mrf.mxu0  ;;  %v3502_v8 = vadd.f32 %v3455_v54, %v3454_v23 }
 0x57c   :  { %v8043_v5 = vpop.f32.mrf.mxu1  ;;  %9473 = vst [vmem:[#allocation13_spill] sm:$0xff] %v8073_v33  ;;  %v3511_v59 = vadd.f32 %v3461_v27, %v3460_v53  ;;  %v3535_v54 = vadd.f32 %v3479_v47, %v3478_v44  ;;  %v9475_v53 = vld [vmem:[#allocation58_spill] sm:$0xff] }
 0x57d   :  { %9466 = vst [vmem:[#allocation68_spill] sm:$0xff] %v8043_v5  ;;  %v3466_v5 = vmul.f32 %v8035_v55, %v7179_v39  ;;  %v3485_v39 = vmul.f32 %v8038_v11, %v9472_v60  ;;  %v3456_v35 = vmul.f32 %v8050_v1, %v7711_v24  ;;  %v3462_v19 = vmul.f32 %v8050_v1, %v7720_v38  ;;  %v8094_v38 = vpop.f32.mrf.mxu0 }
 0x57e   :  { %v8075_v63 = vpop.f32.mrf.mxu1  ;;  %v3468_v3 = vmul.f32 %v8050_v1, %v7730_v12  ;;  %v3527_v60 = vadd.f32 %v3473_v31, %v3472_v43  ;;  %v3474_v33 = vmul.f32 %v8050_v1, %v7739_v58  ;;  %v3480_v23 = vmul.f32 %v8050_v1, %v7752_v14  ;;  %v9478_v58 = vld [vmem:[#allocation52_spill] sm:$0xff] }
 0x57f   :  { %9474 = vst [vmem:[#allocation71_spill] sm:$0xff] %v8075_v63  ;;  %v3519_v37 = vadd.f32 %v3467_v10, %v3466_v5  ;;  %v3543_v24 = vadd.f32 %v3485_v39, %v3484_v25  ;;  %v3490_v48 = vmul.f32 %v8035_v55, %v9475_v53  ;;  %v3486_v27 = vmul.f32 %v8050_v1, %v7761_v22  ;;  %v9476_v10 = vld [vmem:[#allocation20_spill] sm:$0xff]  ;;  %v9477_v5 = vld [vmem:[#allocation61_spill] sm:$0xff] }
 0x580   :  { %v8096_v63 = vpop.f32.mrf.mxu1  ;;  %v3491_v43 = vmul.f32 %v8038_v11, %v9476_v10  ;;  %v3496_v31 = vmul.f32 %v8035_v55, %v9477_v5  ;;  %v3497_v44 = vmul.f32 %v8038_v11, %v9478_v58  ;;  %v3503_v47 = vadd.f32 %v3502_v8, %v3456_v35 }
 0x581   :  { %v3457_v39 = vmul.f32 %v8080_v21, %v7714_v28  ;;  %v3512_v25 = vadd.f32 %v3511_v59, %v3462_v19  ;;  %v3463_v22 = vmul.f32 %v8080_v21, %v7723_v62  ;;  %v3520_v53 = vadd.f32 %v3519_v37, %v3468_v3  ;;  %v8118_v19 = vpop.f32.mrf.mxu0 }
 0x582   :  { %v3469_v14 = vmul.f32 %v8080_v21, %v7733_v9  ;;  %v3528_v12 = vadd.f32 %v3527_v60, %v3474_v33  ;;  %v3475_v10 = vmul.f32 %v8080_v21, %v7745_v4  ;;  %v3536_v5 = vadd.f32 %v3535_v54, %v3480_v23  ;;  %v8120_v37 = vpop.f32.mrf.mxu1 }
 0x583   :  { %v3481_v58 = vmul.f32 %v8080_v21, %v7755_v42  ;;  %v3544_v35 = vadd.f32 %v3543_v24, %v3486_v27  ;;  %v3487_v8 = vmul.f32 %v8080_v21, %v7764_v61  ;;  %v3492_v59 = vmul.f32 %v8050_v1, %v7770_v15 }
 0x584   :  { %v3551_v3 = vadd.f32 %v3491_v43, %v3490_v48  ;;  %v8122_v33 = vadd.f32 %v3497_v44, %v3496_v31  ;;  %v8124_v60 = vadd.f32 %v3503_v47, %v3457_v39  ;;  %v8126_v23 = vadd.f32 %v3512_v25, %v3463_v22  ;;  %v8142_v48 = vpop.f32.mrf.mxu0  ;;  %v8144_v43 = vpop.f32.mrf.mxu1  ;;  %v9486_v47 = vld [vmem:[#allocation39_spill] sm:$0xff]  ;;  %v9489_v25 = vld [vmem:[#allocation32_spill] sm:$0xff] }
 0x585   :  { %v8128_v54 = vadd.f32 %v3520_v53, %v3469_v14  ;;  %v8130_v24 = vadd.f32 %v3528_v12, %v3475_v10  ;;  %v8132_v27 = vadd.f32 %v3536_v5, %v3481_v58  ;;  %v8134_v61 = vadd.f32 %v3544_v35, %v3487_v8  ;;  %v9490_v35 = vld [vmem:[#allocation47_spill] sm:$0xff] }
 0x586   :  { %v8136_v15 = vadd.f32 %v3551_v3, %v3492_v59  ;;  %v8140_v4 = vmul.f32 %v8080_v21, %v7773_v6  ;;  %v8148_v14 = vmul.f32 %v8050_v1, %v7780_v45  ;;  %v3165_v12 = vadd.f32 %v7923_v18, %v7921_v7  ;;  %v9491_v59 = vld [vmem:[#allocation18_spill] sm:$0xff] }
 0x587   :  { %v3167_v58 = vadd.f32 %v7927_v56, %v7925_v40  ;;  %v3442_v22 = vsub.s32 4, %v8017_v20  ;;  %v3169_v53 = vadd.f32 %v7931_v16, %v7929_v46  ;;  %v3171_v10 = vadd.f32 %v7935_v32, %v7933_v41  ;;  %v9479_v16 = vld [vmem:[#allocation45_spill] sm:$0xff]  ;;  %v9480_v41 = vld [vmem:[#allocation55_spill] sm:$0xff] }
 0x588   :  { %v3175_v5 = vadd.f32 %v7939_v13, %v7937_v34  ;;  %v3446_v31 = vsub.s32 5, %v8017_v20  ;;  %v3177_v44 = vadd.f32 %v7943_v17, %v7941_v2  ;;  %v3179_v7 = vadd.f32 %v7947_v51, %v7945_v50  ;;  %v9481_v34 = vld [vmem:[#allocation40_spill] sm:$0xff]  ;;  %v9482_v13 = vld [vmem:[#allocation41_spill] sm:$0xff]  ;;  %v3273_v17 = vpop.f32.mrf.mxu0  ;;  %v8177_v20 = vpop.f32.mrf.mxu1  ;;  %v9483_v50 = vld [vmem:[#allocation11_spill] sm:$0xff] }
 0x589   :  { %v3181_v18 = vadd.f32 %v7951_v29, %v7949_v52  ;;  %v3238_v40 = vadd.f32 %v7985_v26, %v3165_v12  ;;  %v3185_v56 = vadd.f32 %v7955_v0, %v7953_v49  ;;  %v3187_v46 = vadd.f32 %v7959_v57, %v7957_v36  ;;  %v9484_v51 = vld [vmem:[#allocation36_spill] sm:$0xff]  ;;  %v9485_v29 = vld [vmem:[#allocation81_spill] sm:$0xff]  ;;  %v9488_v36 = vld [vmem:[#allocation10_spill] sm:$0xff] }
 0x58a   :  { %v3189_v32 = vadd.f32 %v9480_v41, %v9479_v16  ;;  %v3191_v2 = vadd.f32 %v9482_v13, %v9481_v34  ;;  %v3195_v52 = vadd.f32 %v9484_v51, %v9483_v50  ;;  %v3240_v26 = vadd.f32 %v9485_v29, %v3167_v58  ;;  %v9487_v0 = vld [vmem:[#allocation37_spill] sm:$0xff]  ;;  %v9492_v34 = vld [vmem:[#allocation27_spill] sm:$0xff]  ;;  %v9495_v29 = vld [vmem:[#allocation28_spill] sm:$0xff] }
 0x58b   :  { %v3311_v39 = vadd.f32 %v9486_v47, %v3238_v40  ;;  %v8184_v49 = vrot.slane %v8028_v30, %v3442_v22  ;;  %v3197_v57 = vadd.f32 %v9488_v36, %v9487_v0  ;;  %v3199_v8 = vadd.f32 %v9490_v35, %v9489_v25  ;;  %v9493_v13 = vld [vmem:[#allocation51_spill] sm:$0xff]  ;;  %v9494_v50 = vld [vmem:[#allocation9_spill] sm:$0xff]  ;;  %v9496_v47 = vld [vmem:[#allocation30_spill] sm:$0xff] }
 0x58c   :  { %v3242_v3 = vadd.f32 %v9491_v59, %v3169_v53  ;;  %v8192_v41 = vrot.slane %v8028_v30, %v3446_v31  ;;  %v3313_v58 = vadd.f32 %v9492_v34, %v3240_v26  ;;  %v3248_v40 = vadd.f32 %v9493_v13, %v3175_v5  ;;  %v9497_v36 = vld [vmem:[#allocation83_spill] sm:$0xff]  ;;  %v9498_v35 = vld [vmem:[#allocation53_spill] sm:$0xff]  ;;  %v9500_v31 = vld [vmem:[#allocation12_spill] sm:$0xff] }
 0x58d   :  { %v3250_v22 = vadd.f32 %v9494_v50, %v3177_v44  ;;  %v3201_v0 = vadd.f32 %v9496_v47, %v9495_v29  ;;  %v3244_v25 = vadd.f32 %v9497_v36, %v3171_v10  ;;  %v3252_v53 = vadd.f32 %v9498_v35, %v3179_v7  ;;  %v9499_v59 = vld [vmem:[#allocation67_spill] sm:$0xff]  ;;  %v9503_v13 = vld [vmem:[#allocation16_spill] sm:$0xff]  ;;  %v9504_v10 = vld [vmem:[#allocation14_spill] sm:$0xff] }
 0x58e   :  { %v3254_v45 = vadd.f32 %v9499_v59, %v3181_v18  ;;  %v3315_v42 = vadd.f32 %v9500_v31, %v3242_v3  ;;  %v9501_v26 = vld [vmem:[#allocation35_spill] sm:$0xff]  ;;  %v3260_v50 = vadd.f32 %v9503_v13, %v3187_v46  ;;  %v3262_v29 = vadd.f32 %v9504_v10, %v3189_v32  ;;  %v9505_v18 = vld [vmem:[#allocation65_spill] sm:$0xff]  ;;  %v9506_v35 = vld [vmem:[#allocation2_spill] sm:$0xff] }
 0x58f   :  { %v3258_v34 = vadd.f32 %v9501_v26, %v3185_v56  ;;  %v3321_v36 = vadd.f32 %v9505_v18, %v3248_v40  ;;  %v3323_v3 = vadd.f32 %v9506_v35, %v3250_v22  ;;  %v9508_v31 = vld [vmem:[#allocation38_spill] sm:$0xff]  ;;  %v9509_v26 = vld [vmem:[#allocation13_spill] sm:$0xff]  ;;  %v3268_v40 = vadd.f32 %v8094_v38, %v3195_v52 }
 0x590   :  { %v3264_v46 = vadd.f32 %v9509_v26, %v3191_v2  ;;  %v9510_v10 = vld [vmem:[#allocation86_spill] sm:$0xff] }
 0x591   :  { %v3331_v9 = vadd.f32 %v9510_v10, %v3258_v34  ;;  %v3274_v34 = vadd.f32 %v3273_v17, %v3201_v0 }
 0x5ba   :  { %v3383_v12 = vpop.f32.mrf.mxu0  ;;  %v3403_v16 = vpop.f32.mrf.mxu1 }
 0x5bb   :  { %v8197_v51 = vadd.f32 %v3383_v12, %v3311_v39  ;;  %v9502_v39 = vld [vmem:[#allocation24_spill] sm:$0xff]  ;;  %v8239_v26 = vadd.f32 %v3403_v16, %v3331_v9 }
 0x5bc   :  { %v3385_v6 = vpop.f32.mrf.mxu0  ;;  %v3405_v30 = vpop.f32.mrf.mxu1  ;;  %v3317_v12 = vadd.f32 %v9502_v39, %v3244_v25  ;;  %v3327_v25 = vadd.f32 %v9508_v31, %v3254_v45  ;;  %v3270_v45 = vadd.f32 %v8118_v19, %v3197_v57  ;;  %v3341_v57 = vadd.f32 %v8096_v63, %v3268_v40 }
 0x5bd   :  { %v3458_v5 = vmul.f32 %v8184_v49, %v8197_v51  ;;  %v8208_v44 = vadd.f32 %v3385_v6, %v3313_v58  ;;  %v9507_v6 = vld [vmem:[#allocation66_spill] sm:$0xff]  ;;  %9515 = vst [vmem:[#allocation72_spill] sm:$0xff] %v8239_v26 }
 0x5be   :  { %v3387_v7 = vpop.f32.mrf.mxu0  ;;  %v3407_v47 = vpop.f32.mrf.mxu1  ;;  %v3325_v58 = vadd.f32 %v9507_v6, %v3252_v53  ;;  %v9512_v53 = vld [vmem:[#allocation68_spill] sm:$0xff] }
 0x5bf   :  { %v3459_v56 = vmul.f32 %v8192_v41, %v8208_v44  ;;  %v8217_v59 = vadd.f32 %v3387_v7, %v3315_v42  ;;  %v3505_v13 = vadd.f32 %v8124_v60, %v3458_v5  ;;  %v9511_v42 = vld [vmem:[#allocation69_spill] sm:$0xff]  ;;  %v3335_v35 = vadd.f32 %v9512_v53, %v3262_v29  ;;  %v9514_v5 = vld [vmem:[#allocation71_spill] sm:$0xff] }
 0x5c0   :  { %v3389_v39 = vpop.f32.mrf.mxu0  ;;  %v3409_v32 = vpop.f32.mrf.mxu1  ;;  %v3333_v7 = vadd.f32 %v9511_v42, %v3260_v50  ;;  %v3272_v60 = vadd.f32 %v8142_v48, %v3199_v8  ;;  %v3343_v8 = vadd.f32 %v8120_v37, %v3270_v45  ;;  %v3482_v37 = vmul.f32 %v8184_v49, %v8239_v26 }
 0x5c1   :  { %v3464_v22 = vmul.f32 %v8184_v49, %v8217_v59  ;;  %v8227_v18 = vadd.f32 %v3389_v39, %v3317_v12  ;;  %v3507_v31 = vsel %vm3506_vm10, %v3459_v56, 0.0  ;;  %v3337_v12 = vadd.f32 %v9514_v5, %v3264_v46 }
 0x5c2   :  { %v3393_v2 = vpop.f32.mrf.mxu0  ;;  %v3413_v6 = vpop.f32.mrf.mxu1  ;;  %v3508_v39 = vadd.f32 %v3507_v31, %v3505_v13  ;;  %v8243_v56 = vadd.f32 %v3405_v30, %v3333_v7  ;;  %v8250_v0 = vadd.f32 %v3407_v47, %v3335_v35  ;;  %v3345_v63 = vadd.f32 %v8144_v43, %v3272_v60  ;;  %v9525_v31 = vld [vmem:[#allocation44_spill] sm:$0xff] }
 0x5c3   :  { %v3465_v38 = vmul.f32 %v8192_v41, %v8227_v18  ;;  %v8236_v52 = vadd.f32 %v3393_v2, %v3321_v36  ;;  %v3514_v19 = vadd.f32 %v8126_v23, %v3464_v22  ;;  %v8252_v9 = vadd.f32 %v3409_v32, %v3337_v12 }
 0x5c4   :  { %v3395_v50 = vpop.f32.mrf.mxu0  ;;  %v3415_v29 = vpop.f32.mrf.mxu1  ;;  %9516 = vst [vmem:[#allocation8_spill] sm:$0xff] %v8243_v56  ;;  %9518 = vst [vmem:[#allocation43_spill] sm:$0xff] %v8250_v0  ;;  %3509 = vadd.xlane.f32.xlu1 %v3508_v39  ;;  %v3347_v30 = vadd.f32 %v8177_v20, %v3274_v34  ;;  %v8263_v47 = vadd.f32 %v3413_v6, %v3341_v57  ;;  %v3483_v43 = vmul.f32 %v8192_v41, %v8243_v56 }
 0x5c5   :  { %9513 = vst [vmem:[#allocation63_spill] sm:$0xff] %v8236_v52  ;;  %v3470_v48 = vmul.f32 %v8184_v49, %v8236_v52  ;;  %v8247_v17 = vadd.f32 %v3395_v50, %v3323_v3  ;;  %9519 = vst [vmem:[#allocation56_spill] sm:$0xff] %v8252_v9  ;;  %v3515_v23 = vsel %vm3506_vm10, %v3465_v38, 0.0  ;;  %v8268_v22 = vadd.f32 %v3415_v29, %v3343_v8 }
 0x5c6   :  { %v3397_v16 = vpop.f32.mrf.mxu0  ;;  %v3417_v36 = vpop.f32.mrf.mxu1  ;;  %9520 = vst [vmem:[#allocation34_spill] sm:$0xff] %v8263_v47  ;;  %v3516_v10 = vadd.f32 %v3515_v23, %v3514_v19  ;;  %v3488_v42 = vmul.f32 %v8184_v49, %v8250_v0  ;;  %v3489_v7 = vmul.f32 %v8192_v41, %v8252_v9  ;;  %v3560_v6 = vadd.f32 %v8122_v33, %v8148_v14 }
 0x5c7   :  { %9517 = vst [vmem:[#allocation57_spill] sm:$0xff] %v8247_v17  ;;  %v3471_v46 = vmul.f32 %v8192_v41, %v8247_v17  ;;  %v8259_v3 = vadd.f32 %v3397_v16, %v3325_v58  ;;  %v3522_v40 = vadd.f32 %v8128_v54, %v3470_v48  ;;  %9521 = vst [vmem:[#allocation49_spill] sm:$0xff] %v8268_v22  ;;  %v3539_v12 = vsel %vm3506_vm10, %v3483_v43, 0.0 }
 0x5c8   :  { %v3399_v32 = vpop.f32.mrf.mxu0  ;;  %v3419_v13 = vpop.f32.mrf.mxu1  ;;  %v8278_v53 = vadd.f32 %v3417_v36, %v3345_v63  ;;  %3517 = vadd.xlane.f32.xlu0 %v3516_v10  ;;  %v3499_v60 = vmul.f32 %v8080_v21, %v9525_v31  ;;  %v3494_v34 = vmul.f32 %v8184_v49, %v8263_v47  ;;  %v3538_v38 = vadd.f32 %v8132_v27, %v3482_v37  ;;  %v9527_v37 = vld [vmem:[#allocation79_spill] sm:$0xff] }
 0x5c9   :  { %v3476_v20 = vmul.f32 %v8184_v49, %v8259_v3  ;;  %v8272_v58 = vadd.f32 %v3399_v32, %v3327_v25  ;;  %v3523_v54 = vsel %vm3506_vm10, %v3471_v46, 0.0  ;;  %v8283_v45 = vadd.f32 %v3419_v13, %v3347_v30  ;;  %v9526_v30 = vld [vmem:[#allocation87_spill] sm:$0xff]  ;;  %v9528_v13 = vld [vmem:[#allocation73_spill] sm:$0xff] }
 0x5ca   :  { %9523 = vst [vmem:[#allocation74_spill] sm:$0xff] %v8278_v53  ;;  %v3524_v2 = vadd.f32 %v3523_v54, %v3522_v40  ;;  %v3495_v5 = vmul.f32 %v8192_v41, %v8268_v22  ;;  %v3500_v33 = vmul.f32 %v8184_v49, %v8278_v53  ;;  %v3546_v29 = vadd.f32 %v8134_v61, %v3488_v42 }
 0x5cb   :  { %9522 = vst [vmem:[#allocation31_spill] sm:$0xff] %v8272_v58  ;;  %v3477_v35 = vmul.f32 %v8192_v41, %v8272_v58  ;;  %9524 = vst [vmem:[#allocation25_spill] sm:$0xff] %v8283_v45  ;;  %v3530_v25 = vadd.f32 %v8130_v24, %v3476_v20  ;;  %v3553_v24 = vadd.f32 %v8136_v15, %v8140_v4  ;;  %v3547_v39 = vsel %vm3506_vm10, %v3489_v7, 0.0 }
 0x5cc   :  { %3525 = vadd.xlane.f32.xlu0 %v3524_v2  ;;  %v3501_v27 = vmul.f32 %v8192_v41, %v8283_v45  ;;  %v3561_v19 = vadd.f32 %v3560_v6, %v3499_v60  ;;  %v3540_v57 = vadd.f32 %v3539_v12, %v3538_v38  ;;  %v3555_v8 = vsel %vm3506_vm10, %v3495_v5, 0.0  ;;  %v9529_v5 = vld [vmem:[#allocation89_spill] sm:$0xff] }
 0x5cd   :  { %v3531_v50 = vsel %vm3506_vm10, %v3477_v35, 0.0  ;;  %v3554_v48 = vadd.f32 %v3553_v24, %v3494_v34  ;;  %v3548_v4 = vadd.f32 %v3547_v39, %v3546_v29 }
 0x5ce   :  { %v3532_v14 = vadd.f32 %v3531_v50, %v3530_v25  ;;  %v3562_v15 = vadd.f32 %v3561_v19, %v3500_v33  ;;  %v3563_v16 = vsel %vm3506_vm10, %v3501_v27, 0.0  ;;  %v9531_v19 = vld [vmem:[#allocation78_spill] sm:$0xff] }
 0x5cf   :  { %v3556_v36 = vadd.f32 %v3555_v8, %v3554_v48 }
 0x5d0   :  { %3533 = vadd.xlane.f32.xlu1 %v3532_v14  ;;  %3541 = vadd.xlane.f32.xlu0 %v3540_v57  ;;  %v3564_v61 = vadd.f32 %v3563_v16, %v3562_v15  ;;  %v9530_v14 = vld [vmem:[#allocation90_spill] sm:$0xff] }
 0x5d4   :  { %3549 = vadd.xlane.f32.xlu1 %v3548_v4  ;;  %3557 = vadd.xlane.f32.xlu0 %v3556_v36 }
 0x5d8   :  { %3565 = vadd.xlane.f32.xlu1 %v3564_v61 }
 0x64d   :  { %v3510_v23 = vpop.xlane.xlu1 %3509 }
 0x64e   :  { %v8307_v63 = vmul.f32 0.0016, %v3510_v23 }
 0x650   :  { %v3575_v46 = vsub.f32 %v9526_v30, %v8307_v63  ;;  %v3576_v32 = vsub.f32 %v9527_v37, %v8307_v63  ;;  %v3577_v10 = vsub.f32 %v9528_v13, %v8307_v63  ;;  %v3578_v40 = vsub.f32 %v7714_v28, %v8307_v63 }
 0x651   :  { %v3518_v43 = vpop.xlane.xlu0 %3517  ;;  %v3579_v20 = vsub.f32 %v8197_v51, %v8307_v63  ;;  %v3580_v42 = vsub.f32 %v8208_v44, %v8307_v63 }
 0x652   :  { %v8321_v7 = vmul.f32 0.0016, %v3518_v43  ;;  %v3623_v54 = vmul.f32 %v3575_v46, %v8035_v55  ;;  %v3624_v35 = vmul.f32 %v3576_v32, %v8038_v11  ;;  %v3625_v2 = vmul.f32 %v3577_v10, %v8050_v1 }
 0x653   :  { %v3626_v25 = vmul.f32 %v3578_v40, %v8080_v21  ;;  %v3628_v6 = vmul.f32 %v3580_v42, %v8192_v41  ;;  %v3627_v60 = vmul.f32 %v3579_v20, %v8184_v49 }
 0x654   :  { %v3671_v34 = vmul.f32 %v3623_v54, %v3623_v54  ;;  %v3672_v38 = vmul.f32 %v3624_v35, %v3624_v35  ;;  %v3581_v12 = vsub.f32 %v9529_v5, %v8321_v7  ;;  %v3673_v24 = vmul.f32 %v3625_v2, %v3625_v2 }
 0x655   :  { %v3526_v50 = vpop.xlane.xlu0 %3525  ;;  %v3674_v33 = vmul.f32 %v3626_v25, %v3626_v25  ;;  %v3582_v29 = vsub.f32 %v9530_v14, %v8321_v7  ;;  %v3676_v27 = vmul.f32 %v3628_v6, %v3628_v6  ;;  %v3583_v57 = vsub.f32 %v9531_v19, %v8321_v7 }
 0x656   :  { %v3719_v39 = vadd.f32 %v3672_v38, %v3671_v34  ;;  %v3584_v48 = vsub.f32 %v7723_v62, %v8321_v7  ;;  %v8337_v8 = vmul.f32 0.0016, %v3526_v50  ;;  %v3585_v15 = vsub.f32 %v8217_v59, %v8321_v7 }
 0x657   :  { %v3586_v16 = vsub.f32 %v8227_v18, %v8321_v7  ;;  %v3629_v36 = vmul.f32 %v3581_v12, %v8035_v55  ;;  %v3675_v61 = vmul.f32 %v3627_v60, %v3627_v60  ;;  %v3630_v46 = vmul.f32 %v3582_v29, %v8038_v11  ;;  %v9532_v12 = vld [vmem:[#allocation7_spill] sm:$0xff] }
 0x658   :  { %v3720_v23 = vadd.f32 %v3719_v39, %v3673_v24  ;;  %v3631_v32 = vmul.f32 %v3583_v57, %v8050_v1  ;;  %v3632_v40 = vmul.f32 %v3584_v48, %v8080_v21  ;;  %v3633_v43 = vmul.f32 %v3585_v15, %v8184_v49  ;;  %v9533_v57 = vld [vmem:[#allocation91_spill] sm:$0xff] }
 0x659   :  { %v3534_v4 = vpop.xlane.xlu1 %3533  ;;  %v3542_v10 = vpop.xlane.xlu0 %3541  ;;  %v3634_v20 = vmul.f32 %v3586_v16, %v8192_v41  ;;  %v3677_v42 = vmul.f32 %v3629_v36, %v3629_v36  ;;  %v3723_v2 = vsel %vm3506_vm10, %v3676_v27, 0.0  ;;  %v3678_v25 = vmul.f32 %v3630_v46, %v3630_v46  ;;  %v9535_v16 = vld [vmem:[#allocation5_spill] sm:$0xff] }
 0x65a   :  { %v8349_v54 = vmul.f32 0.0016, %v3534_v4  ;;  %v3721_v35 = vadd.f32 %v3720_v23, %v3674_v33  ;;  %v8352_v6 = vmul.f32 0.0016, %v3542_v10  ;;  %v3679_v34 = vmul.f32 %v3631_v32, %v3631_v32  ;;  %v9534_v33 = vld [vmem:[#allocation77_spill] sm:$0xff] }
 0x65b   :  { %v3682_v38 = vmul.f32 %v3634_v20, %v3634_v20  ;;  %v3587_v50 = vsub.f32 %v9532_v12, %v8337_v8  ;;  %v3680_v29 = vmul.f32 %v3632_v40, %v3632_v40  ;;  %v3727_v39 = vadd.f32 %v3678_v25, %v3677_v42 }
 0x65c   :  { %v3722_v24 = vadd.f32 %v3721_v35, %v3675_v61  ;;  %v3588_v48 = vsub.f32 %v9533_v57, %v8337_v8  ;;  %v3681_v15 = vmul.f32 %v3633_v43, %v3633_v43  ;;  %v3589_v27 = vsub.f32 %v9534_v33, %v8337_v8 }
 0x65d   :  { %v3550_v60 = vpop.xlane.xlu1 %3549  ;;  %v3558_v4 = vpop.xlane.xlu0 %3557  ;;  %v3590_v36 = vsub.f32 %v9535_v16, %v8337_v8  ;;  %v3591_v23 = vsub.f32 %v8236_v52, %v8337_v8  ;;  %v3728_v61 = vadd.f32 %v3727_v39, %v3679_v34  ;;  %v3592_v10 = vsub.f32 %v8247_v17, %v8337_v8 }
 0x65e   :  { %v8364_v46 = vmul.f32 0.0016, %v3550_v60  ;;  %v3724_v32 = vadd.f32 %v3723_v2, %v3722_v24  ;;  %v3731_v20 = vsel %vm3506_vm10, %v3682_v38, 0.0  ;;  %v3635_v43 = vmul.f32 %v3587_v50, %v8035_v55 }
 0x65f   :  { %v3636_v42 = vmul.f32 %v3588_v48, %v8038_v11  ;;  %v3637_v35 = vmul.f32 %v3589_v27, %v8050_v1  ;;  %v8372_v25 = vmul.f32 0.0016, %v3558_v4  ;;  %v3729_v52 = vadd.f32 %v3728_v61, %v3680_v29  ;;  %v9536_v48 = vld [vmem:[#allocation4_spill] sm:$0xff] }
 0x660   :  { %3725 = vadd.xlane.f32.xlu0 %v3724_v32  ;;  %v3638_v60 = vmul.f32 %v3590_v36, %v8080_v21  ;;  %v3640_v2 = vmul.f32 %v3592_v10, %v8192_v41  ;;  %v3639_v24 = vmul.f32 %v3591_v23, %v8184_v49  ;;  %v3683_v39 = vmul.f32 %v3635_v43, %v3635_v43  ;;  %v9537_v32 = vld [vmem:[#allocation94_spill] sm:$0xff]  ;;  %v9538_v36 = vld [vmem:[#allocation3_spill] sm:$0xff]  ;;  %v9539_v10 = vld [vmem:[#allocation33_spill] sm:$0xff] }
 0x661   :  { %v3566_v40 = vpop.xlane.xlu1 %3565  ;;  %v3684_v38 = vmul.f32 %v3636_v42, %v3636_v42  ;;  %v3730_v17 = vadd.f32 %v3729_v52, %v3681_v15  ;;  %v3685_v50 = vmul.f32 %v3637_v35, %v3637_v35  ;;  %v3599_v27 = vsub.f32 %v9536_v48, %v8352_v6 }
 0x662   :  { %v8376_v34 = vmul.f32 0.0016, %v3566_v40  ;;  %v3688_v16 = vmul.f32 %v3640_v2, %v3640_v2  ;;  %v3600_v29 = vsub.f32 %v9537_v32, %v8352_v6  ;;  %v3601_v61 = vsub.f32 %v9538_v36, %v8352_v6  ;;  %v9543_v32 = vld [vmem:[#allocation17_spill] sm:$0xff] }
 0x663   :  { %v3735_v4 = vadd.f32 %v3684_v38, %v3683_v39  ;;  %v3602_v40 = vsub.f32 %v9539_v10, %v8352_v6  ;;  %v3732_v33 = vadd.f32 %v3731_v20, %v3730_v17  ;;  %v3686_v23 = vmul.f32 %v3638_v60, %v3638_v60  ;;  %v9540_v20 = vld [vmem:[#allocation6_spill] sm:$0xff] }
 0x664   :  { %v3603_v52 = vsub.f32 %v8239_v26, %v8352_v6  ;;  %v3604_v15 = vsub.f32 %v8243_v56, %v8352_v6  ;;  %v3647_v42 = vmul.f32 %v3599_v27, %v8035_v55  ;;  %v3648_v35 = vmul.f32 %v3600_v29, %v8038_v11 }
 0x665   :  { %v3736_v43 = vadd.f32 %v3735_v4, %v3685_v50  ;;  %v3649_v2 = vmul.f32 %v3601_v61, %v8050_v1  ;;  %3733 = vadd.xlane.f32.xlu1 %v3732_v33  ;;  %v3687_v39 = vmul.f32 %v3639_v24, %v3639_v24  ;;  %v3650_v38 = vmul.f32 %v3602_v40, %v8080_v21  ;;  %v9541_v61 = vld [vmem:[#allocation92_spill] sm:$0xff]  ;;  %v9542_v40 = vld [vmem:[#allocation19_spill] sm:$0xff] }
 0x666   :  { %v3652_v17 = vmul.f32 %v3604_v15, %v8192_v41  ;;  %v3593_v60 = vsub.f32 %v9540_v20, %v8349_v54  ;;  %v3739_v10 = vsel %vm3506_vm10, %v3688_v16, 0.0  ;;  %v3695_v56 = vmul.f32 %v3647_v42, %v3647_v42 }
 0x667   :  { %v3737_v26 = vadd.f32 %v3736_v43, %v3686_v23  ;;  %v3696_v50 = vmul.f32 %v3648_v35, %v3648_v35  ;;  %v3651_v27 = vmul.f32 %v3603_v52, %v8184_v49  ;;  %v3697_v4 = vmul.f32 %v3649_v2, %v3649_v2 }
 0x668   :  { %v3700_v29 = vmul.f32 %v3652_v17, %v3652_v17  ;;  %v3594_v33 = vsub.f32 %v9541_v61, %v8349_v54  ;;  %v3595_v15 = vsub.f32 %v9542_v40, %v8349_v54  ;;  %v3596_v48 = vsub.f32 %v9543_v32, %v8349_v54 }
 0x669   :  { %v3738_v24 = vadd.f32 %v3737_v26, %v3687_v39  ;;  %v3751_v36 = vadd.f32 %v3696_v50, %v3695_v56  ;;  %v3698_v23 = vmul.f32 %v3650_v38, %v3650_v38  ;;  %v3597_v16 = vsub.f32 %v8259_v3, %v8349_v54 }
 0x66a   :  { %v3598_v52 = vsub.f32 %v8272_v58, %v8349_v54  ;;  %v3641_v43 = vmul.f32 %v3593_v60, %v8035_v55  ;;  %v3642_v26 = vmul.f32 %v3594_v33, %v8038_v11  ;;  %v3643_v56 = vmul.f32 %v3595_v15, %v8050_v1  ;;  %v9544_v58 = vld [vmem:[#allocation58_spill] sm:$0xff]  ;;  %v9545_v33 = vld [vmem:[#allocation20_spill] sm:$0xff]  ;;  %v9546_v15 = vld [vmem:[#allocation29_spill] sm:$0xff] }
 0x66b   :  { %v3740_v42 = vadd.f32 %v3739_v10, %v3738_v24  ;;  %v3752_v35 = vadd.f32 %v3751_v36, %v3697_v4  ;;  %v3699_v2 = vmul.f32 %v3651_v27, %v3651_v27  ;;  %v3644_v39 = vmul.f32 %v3596_v48, %v8080_v21 }
 0x66c   :  { %v3646_v17 = vmul.f32 %v3598_v52, %v8192_v41  ;;  %v3689_v38 = vmul.f32 %v3641_v43, %v3641_v43  ;;  %v3755_v57 = vsel %vm3506_vm10, %v3700_v29, 0.0  ;;  %v3690_v12 = vmul.f32 %v3642_v26, %v3642_v26 }
 0x66d   :  { %3741 = vadd.xlane.f32.xlu0 %v3740_v42  ;;  %v3753_v50 = vadd.f32 %v3752_v35, %v3698_v23  ;;  %v3611_v60 = vsub.f32 %v9544_v58, %v8372_v25  ;;  %v3645_v36 = vmul.f32 %v3597_v16, %v8184_v49  ;;  %v3691_v10 = vmul.f32 %v3643_v56, %v3643_v56  ;;  %v9547_v23 = vld [vmem:[#allocation42_spill] sm:$0xff] }
 0x66e   :  { %v3694_v4 = vmul.f32 %v3646_v17, %v3646_v17  ;;  %v3612_v27 = vsub.f32 %v9545_v33, %v8372_v25  ;;  %v3743_v48 = vadd.f32 %v3690_v12, %v3689_v38  ;;  %v3613_v52 = vsub.f32 %v9546_v15, %v8372_v25 }
 0x66f   :  { %v3754_v24 = vadd.f32 %v3753_v50, %v3699_v2  ;;  %v3614_v43 = vsub.f32 %v9547_v23, %v8372_v25  ;;  %v3692_v29 = vmul.f32 %v3644_v39, %v3644_v39  ;;  %v3615_v42 = vsub.f32 %v8263_v47, %v8372_v25 }
 0x670   :  { %v3616_v16 = vsub.f32 %v8268_v22, %v8372_v25  ;;  %v3659_v35 = vmul.f32 %v3611_v60, %v8035_v55  ;;  %v3744_v56 = vadd.f32 %v3743_v48, %v3691_v10  ;;  %v3660_v2 = vmul.f32 %v3612_v27, %v8038_v11  ;;  %v9548_v22 = vld [vmem:[#allocation22_spill] sm:$0xff] }
 0x671   :  { %v3756_v26 = vadd.f32 %v3755_v57, %v3754_v24  ;;  %v3661_v12 = vmul.f32 %v3613_v52, %v8050_v1  ;;  %v3693_v17 = vmul.f32 %v3645_v36, %v3645_v36  ;;  %v3662_v38 = vmul.f32 %v3614_v43, %v8080_v21  ;;  %v9549_v24 = vld [vmem:[#allocation54_spill] sm:$0xff] }
 0x672   :  { %v3664_v50 = vmul.f32 %v3616_v16, %v8192_v41  ;;  %v3707_v39 = vmul.f32 %v3659_v35, %v3659_v35  ;;  %v3745_v23 = vadd.f32 %v3744_v56, %v3692_v29  ;;  %v3747_v47 = vsel %vm3506_vm10, %v3694_v4, 0.0  ;;  %v9550_v43 = vld [vmem:[#allocation46_spill] sm:$0xff] }
 0x673   :  { %3757 = vadd.xlane.f32.xlu0 %v3756_v26  ;;  %v3708_v15 = vmul.f32 %v3660_v2, %v3660_v2  ;;  %v3605_v60 = vsub.f32 %v9548_v22, %v8364_v46  ;;  %v3663_v57 = vmul.f32 %v3615_v42, %v8184_v49  ;;  %v3709_v10 = vmul.f32 %v3661_v12, %v3661_v12  ;;  %v9551_v29 = vld [vmem:[#allocation50_spill] sm:$0xff] }
 0x674   :  { %v3712_v27 = vmul.f32 %v3664_v50, %v3664_v50  ;;  %v3606_v36 = vsub.f32 %v9549_v24, %v8364_v46  ;;  %v3746_v48 = vadd.f32 %v3745_v23, %v3693_v17  ;;  %v3607_v16 = vsub.f32 %v9550_v43, %v8364_v46 }
 0x675   :  { %v3767_v52 = vadd.f32 %v3708_v15, %v3707_v39  ;;  %v3608_v35 = vsub.f32 %v9551_v29, %v8364_v46  ;;  %v3710_v4 = vmul.f32 %v3662_v38, %v3662_v38  ;;  %v3609_v26 = vsub.f32 %v8250_v0, %v8364_v46  ;;  %v9552_v0 = vld [vmem:[#allocation61_spill] sm:$0xff] }
 0x676   :  { %v3610_v42 = vsub.f32 %v8252_v9, %v8364_v46  ;;  %v3653_v56 = vmul.f32 %v3605_v60, %v8035_v55  ;;  %v3748_v2 = vadd.f32 %v3747_v47, %v3746_v48  ;;  %v3654_v23 = vmul.f32 %v3606_v36, %v8038_v11  ;;  %v9553_v36 = vld [vmem:[#allocation52_spill] sm:$0xff] }
 0x677   :  { %v3768_v12 = vadd.f32 %v3767_v52, %v3709_v10  ;;  %v3655_v15 = vmul.f32 %v3607_v16, %v8050_v1  ;;  %v3711_v17 = vmul.f32 %v3663_v57, %v3663_v57  ;;  %v3656_v50 = vmul.f32 %v3608_v35, %v8080_v21  ;;  %v9554_v16 = vld [vmem:[#allocation21_spill] sm:$0xff] }
 0x678   :  { %v3701_v39 = vmul.f32 %v3653_v56, %v3653_v56  ;;  %3749 = vadd.xlane.f32.xlu1 %v3748_v2  ;;  %v3771_v33 = vsel %vm3506_vm10, %v3712_v27, 0.0  ;;  %v3702_v58 = vmul.f32 %v3654_v23, %v3654_v23  ;;  %v3617_v9 = vsub.f32 %v9552_v0, %v8376_v34 }
 0x679   :  { %v3769_v38 = vadd.f32 %v3768_v12, %v3710_v4  ;;  %v3657_v60 = vmul.f32 %v3609_v26, %v8184_v49  ;;  %v3658_v47 = vmul.f32 %v3610_v42, %v8192_v41  ;;  %v3703_v10 = vmul.f32 %v3655_v15, %v3655_v15 }
 0x67a   :  { %v3618_v48 = vsub.f32 %v9553_v36, %v8376_v34  ;;  %v3759_v52 = vadd.f32 %v3702_v58, %v3701_v39  ;;  %v3619_v35 = vsub.f32 %v9554_v16, %v8376_v34  ;;  %v3620_v27 = vsub.f32 %v9525_v31, %v8376_v34 }
 0x67b   :  { %v3770_v57 = vadd.f32 %v3769_v38, %v3711_v17  ;;  %v3704_v4 = vmul.f32 %v3656_v50, %v3656_v50  ;;  %v3621_v56 = vsub.f32 %v8278_v53, %v8376_v34  ;;  %v3622_v26 = vsub.f32 %v8283_v45, %v8376_v34 }
 0x67c   :  { %v3665_v42 = vmul.f32 %v3617_v9, %v8035_v55  ;;  %v3760_v12 = vadd.f32 %v3759_v52, %v3703_v10  ;;  %v3666_v23 = vmul.f32 %v3618_v48, %v8038_v11  ;;  %v3667_v58 = vmul.f32 %v3619_v35, %v8050_v1 }
 0x67d   :  { %v3772_v2 = vadd.f32 %v3771_v33, %v3770_v57  ;;  %v3706_v15 = vmul.f32 %v3658_v47, %v3658_v47  ;;  %v3705_v39 = vmul.f32 %v3657_v60, %v3657_v60  ;;  %v3668_v50 = vmul.f32 %v3620_v27, %v8080_v21 }
 0x67e   :  { %v3713_v17 = vmul.f32 %v3665_v42, %v3665_v42  ;;  %v3761_v38 = vadd.f32 %v3760_v12, %v3704_v4  ;;  %v3714_v31 = vmul.f32 %v3666_v23, %v3666_v23  ;;  %v3670_v53 = vmul.f32 %v3622_v26, %v8192_v41  ;;  %v3791_v26 = vld [vmem:[%s8734_s3] sm:$0xff]  ;;  %v3792_v12 = vld [vmem:[%s8734_s3 + $0x8] sm:$0xff] }
 0x67f   :  { %3773 = vadd.xlane.f32.xlu0 %v3772_v2  ;;  %v3669_v45 = vmul.f32 %v3621_v56, %v8184_v49  ;;  %v3715_v55 = vmul.f32 %v3667_v58, %v3667_v58  ;;  %v3763_v33 = vsel %vm3506_vm10, %v3706_v15, 0.0  ;;  %v3716_v10 = vmul.f32 %v3668_v50, %v3668_v50  ;;  %v3823_v50 = vld [vmem:[%s8735_s4] sm:$0xff] }
 0x680   :  { %v3762_v16 = vadd.f32 %v3761_v38, %v3705_v39  ;;  %v3775_v9 = vadd.f32 %v3714_v31, %v3713_v17  ;;  %v3718_v47 = vmul.f32 %v3670_v53, %v3670_v53  ;;  %v4384_v41 = vmov 0  }
 0x681   :  { %v3717_v48 = vmul.f32 %v3669_v45, %v3669_v45  ;;  %4215 = vset.pattern.permute.xlu0 %v4384_v41  ;;  %4216 = vset.pattern.permute.xlu1 %v4384_v41 }
 0x682   :  { %v3764_v11 = vadd.f32 %v3763_v33, %v3762_v16  ;;  %v3776_v1 = vadd.f32 %v3775_v9, %v3715_v55  ;;  %v3779_v21 = vsel %vm3506_vm10, %v3718_v47, 0.0  ;;  %v3824_v55 = vld [vmem:[%s8735_s4 + $0x8] sm:$0xff] }
 0x684   :  { %3765 = vadd.xlane.f32.xlu1 %v3764_v11  ;;  %v3777_v60 = vadd.f32 %v3776_v1, %v3716_v10 }
 0x686   :  { %v3778_v57 = vadd.f32 %v3777_v60, %v3717_v48 }
 0x688   :  { %v3780_v52 = vadd.f32 %v3779_v21, %v3778_v57 }
 0x68a   :  { %3781 = vadd.xlane.f32.xlu1 %v3780_v52 }
 0x6e9   :  { %v3726_v49 = vpop.xlane.xlu0 %3725 }
 0x6ea   :  { %v3783_v35 = vmul.f32 0.0016, %v3726_v49  ;;  %v3794_v49 = vld [vmem:[%s8734_s3 + $0x18] sm:$0xff] }
 0x6ec   :  { %v3799_v31 = vadd.f32 0.001, %v3783_v35 }
 0x6ee   :  { %4277 = vrsqrt.f32 %v3799_v31  ;;  %v3734_v27 = vpop.xlane.xlu1 %3733 }
 0x6ef   :  { %v3784_v16 = vmul.f32 0.0016, %v3734_v27 }
 0x6f1   :  { %v3800_v4 = vadd.f32 0.001, %v3784_v16 }
 0x6f3   :  { %4279 = vrsqrt.f32 %v3800_v4 }
 0x6f6   :  { %v3742_v53 = vpop.xlane.xlu0 %3741 }
 0x6f7   :  { %v3785_v56 = vmul.f32 0.0016, %v3742_v53 }
 0x6f9   :  { %v3801_v45 = vadd.f32 0.001, %v3785_v56  ;;  %v3826_v56 = vld [vmem:[%s8735_s4 + $0x18] sm:$0xff] }
 0x6fb   :  { %v4278_v42 = vpop.eup %4277  ;;  %4281 = vrsqrt.f32 %v3801_v45  ;;  %v3825_v45 = vld [vmem:[%s8735_s4 + $0x10] sm:$0xff] }
 0x6fc   :  { %v3815_v2 = vmul.f32 %v4278_v42, %v3791_v26  ;;  %v3758_v58 = vpop.xlane.xlu0 %3757 }
 0x6fd   :  { %v3787_v33 = vmul.f32 0.0016, %v3758_v58 }
 0x6fe   :  { %3849 = vperm.xlu0 %4215, %v3815_v2   ;;  %v3831_v39 = vmul.f32 %v3815_v2, %v8307_v63  ;;  %v3793_v63 = vld [vmem:[%s8734_s3 + $0x10] sm:$0xff] }
 0x6ff   :  { %v3803_v48 = vadd.f32 0.001, %v3787_v33 }
 0x700   :  { %v4280_v23 = vpop.eup %4279  ;;  %v3839_v10 = vsub.f32 %v3823_v50, %v3831_v39  ;;  %v3827_v50 = vld [vmem:[%s8735_s4 + $0x20] sm:$0xff] }
 0x701   :  { %v3750_v15 = vpop.xlane.xlu1 %3749  ;;  %v3816_v17 = vmul.f32 %v4280_v23, %v3792_v12 }
 0x702   :  { %v3786_v38 = vmul.f32 0.0016, %v3750_v15  ;;  %v3796_v15 = vld [vmem:[%s8734_s3 + $0x28] sm:$0xff] }
 0x703   :  { %3854 = vperm.xlu1 %4216, %v3816_v17   ;;  %v3832_v9 = vmul.f32 %v3816_v17, %v8321_v7 }
 0x704   :  { %v3802_v11 = vadd.f32 0.001, %v3786_v38  ;;  %v3828_v38 = vld [vmem:[%s8735_s4 + $0x28] sm:$0xff] }
 0x705   :  { %v3840_v1 = vsub.f32 %v3824_v55, %v3832_v9  ;;  %v3798_v9 = vld [vmem:[%s8734_s3 + $0x38] sm:$0xff] }
 0x706   :  { %4283 = vrsqrt.f32 %v3802_v11 }
 0x707   :  { %3937 = vperm.xlu1 %4216, %v3839_v10   ;;  %3942 = vperm.xlu0 %4215, %v3840_v1   ;;  %4285 = vrsqrt.f32 %v3803_v48 }
 0x708   :  { %v4282_v47 = vpop.eup %4281  ;;  %v3774_v57 = vpop.xlane.xlu0 %3773 }
 0x709   :  { %v3817_v60 = vmul.f32 %v4282_v47, %v3793_v63  ;;  %v3789_v7 = vmul.f32 0.0016, %v3774_v57 }
 0x70b   :  { %3859 = vperm.xlu1 %4216, %v3817_v60   ;;  %v3805_v31 = vadd.f32 0.001, %v3789_v7  ;;  %v3833_v53 = vmul.f32 %v3817_v60, %v8337_v8  ;;  %v3795_v8 = vld [vmem:[%s8734_s3 + $0x20] sm:$0xff] }
 0x70d   :  { %v3766_v21 = vpop.xlane.xlu1 %3765  ;;  %v3841_v12 = vsub.f32 %v3825_v45, %v3833_v53 }
 0x70e   :  { %v3788_v52 = vmul.f32 0.0016, %v3766_v21  ;;  %v3829_v21 = vld [vmem:[%s8735_s4 + $0x30] sm:$0xff] }
 0x710   :  { %v3804_v41 = vadd.f32 0.001, %v3788_v52 }
 0x712   :  { %4287 = vrsqrt.f32 %v3804_v41 }
 0x713   :  { %v4284_v35 = vpop.eup %4283  ;;  %v3782_v27 = vpop.xlane.xlu1 %3781  ;;  %4289 = vrsqrt.f32 %v3805_v31 }
 0x714   :  { %v3790_v16 = vmul.f32 0.0016, %v3782_v27  ;;  %v3818_v4 = vmul.f32 %v4284_v35, %v3794_v49  ;;  %v4286_v23 = vpop.eup %4285 }
 0x715   :  { %v3819_v58 = vmul.f32 %v4286_v23, %v3795_v8 }
 0x716   :  { %v3806_v26 = vadd.f32 0.001, %v3790_v16  ;;  %3864 = vperm.xlu1 %4216, %v3818_v4   ;;  %v3834_v42 = vmul.f32 %v3818_v4, %v8349_v54 }
 0x717   :  { %v3835_v54 = vmul.f32 %v3819_v58, %v8352_v6  ;;  %v3797_v6 = vld [vmem:[%s8734_s3 + $0x30] sm:$0xff] }
 0x718   :  { %4291 = vrsqrt.f32 %v3806_v26  ;;  %v3842_v2 = vsub.f32 %v3826_v56, %v3834_v42 }
 0x719   :  { %v3843_v10 = vsub.f32 %v3827_v50, %v3835_v54 }
 0x71a   :  { %3952 = vperm.xlu0 %4215, %v3842_v2   ;;  %3947 = vperm.xlu1 %4216, %v3841_v12  }
 0x71e   :  { %3869 = vperm.xlu1 %4216, %v3819_v58  }
 0x71f   :  { %v4288_v17 = vpop.eup %4287 }
 0x720   :  { %v3820_v39 = vmul.f32 %v4288_v17, %v3796_v15  ;;  %v4290_v33 = vpop.eup %4289 }
 0x721   :  { %v3821_v48 = vmul.f32 %v4290_v33, %v3797_v6 }
 0x722   :  { %v3836_v55 = vmul.f32 %v3820_v39, %v8364_v46  ;;  %3874 = vperm.xlu1 %4216, %v3820_v39   ;;  %v3830_v46 = vld [vmem:[%s8735_s4 + $0x38] sm:$0xff] }
 0x723   :  { %v3837_v57 = vmul.f32 %v3821_v48, %v8372_v25 }
 0x724   :  { %v3844_v11 = vsub.f32 %v3828_v38, %v3836_v55 }
 0x725   :  { %v4292_v1 = vpop.eup %4291  ;;  %v3845_v52 = vsub.f32 %v3829_v21, %v3837_v57  ;;  %v9557_v21 = vld [vmem:[#allocation91_spill] sm:$0xff] }
 0x726   :  { %3962 = vperm.xlu0 %4215, %v3844_v11   ;;  %v3822_v63 = vmul.f32 %v4292_v1, %v3798_v9  ;;  %3957 = vperm.xlu1 %4216, %v3843_v10  }
 0x728   :  { %v3838_v47 = vmul.f32 %v3822_v63, %v8376_v34 }
 0x72a   :  { %v3846_v60 = vsub.f32 %v3830_v46, %v3838_v47  ;;  %3879 = vperm.xlu1 %4216, %v3821_v48   ;;  %v9555_v47 = vld [vmem:[#allocation31_spill] sm:$0xff] }
 0x72c   :  { %3972 = vperm.xlu0 %4215, %v3846_v60   ;;  %v9556_v60 = vld [vmem:[#allocation7_spill] sm:$0xff] }
 0x72e   :  { %3884 = vperm.xlu1 %4216, %v3822_v63  }
 0x732   :  { %3967 = vperm.xlu1 %4216, %v3845_v52  }
 0x779   :  { %v3850_v7 = vpop.permute.xlu0 %3849 }
 0x77a   :  { %v3887_v49 = vmul.f32 %v3850_v7, %v9526_v30  ;;  %v3888_v35 = vmul.f32 %v3850_v7, %v9527_v37  ;;  %v3889_v34 = vmul.f32 %v3850_v7, %v9528_v13  ;;  %v3890_v31 = vmul.f32 %v3850_v7, %v7714_v28 }
 0x77b   :  { %v3891_v53 = vmul.f32 %v3850_v7, %v8197_v51  ;;  %v3892_v56 = vmul.f32 %v3850_v7, %v8208_v44  ;;  %v9558_v7 = vld [vmem:[#allocation77_spill] sm:$0xff] }
 0x77e   :  { %v3855_v41 = vpop.permute.xlu1 %3854 }
 0x77f   :  { %v3893_v27 = vmul.f32 %v3855_v41, %v9529_v5  ;;  %v3894_v25 = vmul.f32 %v3855_v41, %v9530_v14  ;;  %v3895_v16 = vmul.f32 %v3855_v41, %v9531_v19  ;;  %v3896_v4 = vmul.f32 %v3855_v41, %v7723_v62 }
 0x780   :  { %v3897_v30 = vmul.f32 %v3855_v41, %v8217_v59  ;;  %v3898_v37 = vmul.f32 %v3855_v41, %v8227_v18 }
 0x782   :  { %v3943_v45 = vpop.permute.xlu0 %3942  ;;  %v3938_v13 = vpop.permute.xlu1 %3937 }
 0x783   :  { %v3981_v26 = vadd.f32 %v3943_v45, %v3893_v27  ;;  %v3982_v28 = vadd.f32 %v3943_v45, %v3894_v25  ;;  %v3983_v42 = vadd.f32 %v3943_v45, %v3895_v16  ;;  %v3984_v5 = vadd.f32 %v3943_v45, %v3896_v4 }
 0x784   :  { %v3985_v2 = vadd.f32 %v3943_v45, %v3897_v30  ;;  %v3986_v14 = vadd.f32 %v3943_v45, %v3898_v37  ;;  %v3975_v12 = vadd.f32 %v3938_v13, %v3887_v49  ;;  %v3976_v19 = vadd.f32 %v3938_v13, %v3888_v35  ;;  %v9559_v49 = vld [vmem:[#allocation5_spill] sm:$0xff] }
 0x785   :  { %v4029_v23 = vmax.f32 %v3981_v26, 0.0  ;;  %v4030_v62 = vmax.f32 %v3982_v28, 0.0  ;;  %v4031_v8 = vmax.f32 %v3983_v42, 0.0  ;;  %v4032_v51 = vmax.f32 %v3984_v5, 0.0 }
 0x786   :  { %v4033_v58 = vmax.f32 %v3985_v2, 0.0  ;;  %v4034_v44 = vmax.f32 %v3986_v14, 0.0  ;;  %v3977_v15 = vadd.f32 %v3938_v13, %v3889_v34  ;;  %v3978_v59 = vadd.f32 %v3938_v13, %v3890_v31  ;;  %v3860_v33 = vpop.permute.xlu1 %3859  ;;  %v9560_v34 = vld [vmem:[#allocation63_spill] sm:$0xff]  ;;  %v9561_v31 = vld [vmem:[#allocation57_spill] sm:$0xff] }
 0x787   :  { %4077 = vst [vmem:[%s8736_s5 + $0x30] sm:$0xff] %v4029_v23  ;;  %4078 = vst [vmem:[%s8736_s5 + $0x38] sm:$0xff] %v4030_v62  ;;  %v3979_v18 = vadd.f32 %v3938_v13, %v3891_v53  ;;  %v3980_v17 = vadd.f32 %v3938_v13, %v3892_v56  ;;  %v4023_v39 = vmax.f32 %v3975_v12, 0.0  ;;  %v4024_v54 = vmax.f32 %v3976_v19, 0.0 }
 0x788   :  { %4079 = vst [vmem:[%s8736_s5 + $0x40] sm:$0xff] %v4031_v8  ;;  %4080 = vst [vmem:[%s8736_s5 + $0x48] sm:$0xff] %v4032_v51  ;;  %v4025_v38 = vmax.f32 %v3977_v15, 0.0  ;;  %v4026_v50 = vmax.f32 %v3978_v59, 0.0  ;;  %v3899_v57 = vmul.f32 %v3860_v33, %v9556_v60  ;;  %v3900_v52 = vmul.f32 %v3860_v33, %v9557_v21 }
 0x789   :  { %4081 = vst [vmem:[%s8736_s5 + $0x50] sm:$0xff] %v4033_v58  ;;  %4082 = vst.msk [vmem:[%s8736_s5 + $0x58] sm:$0xff] %vm3506_vm10, %v4034_v44  ;;  %v4027_v55 = vmax.f32 %v3979_v18, 0.0  ;;  %v4028_v9 = vmax.f32 %v3980_v17, 0.0  ;;  %v3901_v41 = vmul.f32 %v3860_v33, %v9558_v7  ;;  %v3902_v35 = vmul.f32 %v3860_v33, %v9559_v49 }
 0x78a   :  { %4071 = vst [vmem:[%s8736_s5] sm:$0xff] %v4023_v39  ;;  %4072 = vst [vmem:[%s8736_s5 + $0x8] sm:$0xff] %v4024_v54  ;;  %v9562_v54 = vld [vmem:[#allocation43_spill] sm:$0xff] }
 0x78b   :  { %4073 = vst [vmem:[%s8736_s5 + $0x10] sm:$0xff] %v4025_v38  ;;  %4074 = vst [vmem:[%s8736_s5 + $0x18] sm:$0xff] %v4026_v50  ;;  %v9563_v50 = vld [vmem:[#allocation56_spill] sm:$0xff] }
 0x78c   :  { %4075 = vst [vmem:[%s8736_s5 + $0x20] sm:$0xff] %v4027_v55  ;;  %4076 = vst.msk [vmem:[%s8736_s5 + $0x28] sm:$0xff] %vm3506_vm10, %v4028_v9  ;;  %v9564_v9 = vld [vmem:[#allocation4_spill] sm:$0xff] }
 0x791   :  { %v3865_v11 = vpop.permute.xlu1 %3864 }
 0x792   :  { %v3905_v10 = vmul.f32 %v3865_v11, %v9540_v20  ;;  %v3906_v1 = vmul.f32 %v3865_v11, %v9541_v61  ;;  %v3907_v6 = vmul.f32 %v3865_v11, %v9542_v40  ;;  %v3908_v63 = vmul.f32 %v3865_v11, %v9543_v32 }
 0x793   :  { %v3909_v46 = vmul.f32 %v3865_v11, %v8259_v3  ;;  %v3910_v48 = vmul.f32 %v3865_v11, %v9555_v47  ;;  %v3903_v20 = vmul.f32 %v3860_v33, %v9560_v34  ;;  %v3904_v61 = vmul.f32 %v3860_v33, %v9561_v31  ;;  %v9565_v11 = vld [vmem:[#allocation94_spill] sm:$0xff] }
 0x795   :  { %v3953_v27 = vpop.permute.xlu0 %3952  ;;  %v3948_v40 = vpop.permute.xlu1 %3947 }
 0x796   :  { %v3993_v25 = vadd.f32 %v3953_v27, %v3905_v10  ;;  %v3994_v32 = vadd.f32 %v3953_v27, %v3906_v1  ;;  %v3995_v16 = vadd.f32 %v3953_v27, %v3907_v6  ;;  %v3996_v3 = vadd.f32 %v3953_v27, %v3908_v63  ;;  %v9566_v6 = vld [vmem:[#allocation3_spill] sm:$0xff] }
 0x797   :  { %v3997_v4 = vadd.f32 %v3953_v27, %v3909_v46  ;;  %v3998_v53 = vadd.f32 %v3953_v27, %v3910_v48  ;;  %v3987_v56 = vadd.f32 %v3948_v40, %v3899_v57  ;;  %v3988_v30 = vadd.f32 %v3948_v40, %v3900_v52  ;;  %v9567_v46 = vld [vmem:[#allocation33_spill] sm:$0xff] }
 0x798   :  { %v4041_v37 = vmax.f32 %v3993_v25, 0.0  ;;  %v4042_v45 = vmax.f32 %v3994_v32, 0.0  ;;  %v4043_v13 = vmax.f32 %v3995_v16, 0.0  ;;  %v4044_v26 = vmax.f32 %v3996_v3, 0.0 }
 0x799   :  { %v4045_v28 = vmax.f32 %v3997_v4, 0.0  ;;  %v4046_v42 = vmax.f32 %v3998_v53, 0.0  ;;  %v3989_v5 = vadd.f32 %v3948_v40, %v3901_v41  ;;  %v3990_v2 = vadd.f32 %v3948_v40, %v3902_v35  ;;  %v3870_v14 = vpop.permute.xlu1 %3869 }
 0x79a   :  { %4089 = vst [vmem:[%s8736_s5 + $0x90] sm:$0xff] %v4041_v37  ;;  %4090 = vst [vmem:[%s8736_s5 + $0x98] sm:$0xff] %v4042_v45  ;;  %v3991_v12 = vadd.f32 %v3948_v40, %v3903_v20  ;;  %v3992_v19 = vadd.f32 %v3948_v40, %v3904_v61  ;;  %v4035_v23 = vmax.f32 %v3987_v56, 0.0  ;;  %v4036_v62 = vmax.f32 %v3988_v30, 0.0 }
 0x79b   :  { %4091 = vst [vmem:[%s8736_s5 + $0xa0] sm:$0xff] %v4043_v13  ;;  %4092 = vst [vmem:[%s8736_s5 + $0xa8] sm:$0xff] %v4044_v26  ;;  %v4037_v8 = vmax.f32 %v3989_v5, 0.0  ;;  %v4038_v51 = vmax.f32 %v3990_v2, 0.0  ;;  %v3911_v33 = vmul.f32 %v3870_v14, %v9564_v9  ;;  %v3912_v10 = vmul.f32 %v3870_v14, %v9565_v11  ;;  %v9571_v5 = vld [vmem:[#allocation20_spill] sm:$0xff] }
 0x79c   :  { %4093 = vst [vmem:[%s8736_s5 + $0xb0] sm:$0xff] %v4045_v28  ;;  %4094 = vst.msk [vmem:[%s8736_s5 + $0xb8] sm:$0xff] %vm3506_vm10, %v4046_v42  ;;  %v4039_v58 = vmax.f32 %v3991_v12, 0.0  ;;  %v4040_v44 = vmax.f32 %v3992_v19, 0.0  ;;  %v3913_v63 = vmul.f32 %v3870_v14, %v9566_v6  ;;  %v3914_v47 = vmul.f32 %v3870_v14, %v9567_v46  ;;  %v9570_v28 = vld [vmem:[#allocation58_spill] sm:$0xff]  ;;  %v9572_v19 = vld [vmem:[#allocation21_spill] sm:$0xff] }
 0x79d   :  { %4083 = vst [vmem:[%s8736_s5 + $0x60] sm:$0xff] %v4035_v23  ;;  %4084 = vst [vmem:[%s8736_s5 + $0x68] sm:$0xff] %v4036_v62  ;;  %v3875_v15 = vpop.permute.xlu1 %3874  ;;  %v9573_v62 = vld [vmem:[#allocation44_spill] sm:$0xff] }
 0x79e   :  { %4085 = vst [vmem:[%s8736_s5 + $0x70] sm:$0xff] %v4037_v8  ;;  %4086 = vst [vmem:[%s8736_s5 + $0x78] sm:$0xff] %v4038_v51  ;;  %v3917_v59 = vmul.f32 %v3875_v15, %v9548_v22  ;;  %v3918_v18 = vmul.f32 %v3875_v15, %v9549_v24  ;;  %v3919_v17 = vmul.f32 %v3875_v15, %v9550_v43  ;;  %v9568_v22 = vld [vmem:[#allocation72_spill] sm:$0xff] }
 0x79f   :  { %4087 = vst [vmem:[%s8736_s5 + $0x80] sm:$0xff] %v4039_v58  ;;  %4088 = vst.msk [vmem:[%s8736_s5 + $0x88] sm:$0xff] %vm3506_vm10, %v4040_v44  ;;  %v3920_v39 = vmul.f32 %v3875_v15, %v9551_v29  ;;  %v3921_v38 = vmul.f32 %v3875_v15, %v9562_v54  ;;  %v3922_v55 = vmul.f32 %v3875_v15, %v9563_v50  ;;  %v9569_v24 = vld [vmem:[#allocation8_spill] sm:$0xff]  ;;  %v9574_v58 = vld [vmem:[#allocation74_spill] sm:$0xff] }
 0x7a0   :  { %v3915_v48 = vmul.f32 %v3870_v14, %v9568_v22  ;;  %v3916_v60 = vmul.f32 %v3870_v14, %v9569_v24  ;;  %v9575_v15 = vld [vmem:[#allocation25_spill] sm:$0xff] }
 0x7a1   :  { %v3963_v1 = vpop.permute.xlu0 %3962  ;;  %v3958_v43 = vpop.permute.xlu1 %3957 }
 0x7a2   :  { %v4005_v57 = vadd.f32 %v3963_v1, %v3917_v59  ;;  %v4006_v29 = vadd.f32 %v3963_v1, %v3918_v18  ;;  %v4007_v21 = vadd.f32 %v3963_v1, %v3919_v17  ;;  %v4008_v52 = vadd.f32 %v3963_v1, %v3920_v39  ;;  %v9576_v18 = vld [vmem:[#allocation29_spill] sm:$0xff]  ;;  %v9577_v39 = vld [vmem:[#allocation42_spill] sm:$0xff] }
 0x7a3   :  { %v4009_v7 = vadd.f32 %v3963_v1, %v3921_v38  ;;  %v4010_v41 = vadd.f32 %v3963_v1, %v3922_v55  ;;  %v3999_v49 = vadd.f32 %v3958_v43, %v3911_v33  ;;  %v4000_v35 = vadd.f32 %v3958_v43, %v3912_v10  ;;  %v9579_v10 = vld [vmem:[#allocation49_spill] sm:$0xff] }
 0x7a4   :  { %v4053_v34 = vmax.f32 %v4005_v57, 0.0  ;;  %v4054_v20 = vmax.f32 %v4006_v29, 0.0  ;;  %v4055_v31 = vmax.f32 %v4007_v21, 0.0  ;;  %v4056_v61 = vmax.f32 %v4008_v52, 0.0 }
 0x7a5   :  { %v4057_v27 = vmax.f32 %v4009_v7, 0.0  ;;  %v4058_v40 = vmax.f32 %v4010_v41, 0.0  ;;  %v4001_v25 = vadd.f32 %v3958_v43, %v3913_v63  ;;  %v4002_v32 = vadd.f32 %v3958_v43, %v3914_v47  ;;  %v3880_v16 = vpop.permute.xlu1 %3879 }
 0x7a6   :  { %4101 = vst [vmem:[%s8736_s5 + $0xf0] sm:$0xff] %v4053_v34  ;;  %4102 = vst [vmem:[%s8736_s5 + $0xf8] sm:$0xff] %v4054_v20  ;;  %v4003_v3 = vadd.f32 %v3958_v43, %v3915_v48  ;;  %v4004_v4 = vadd.f32 %v3958_v43, %v3916_v60  ;;  %v4047_v53 = vmax.f32 %v3999_v49, 0.0  ;;  %v4048_v56 = vmax.f32 %v4000_v35, 0.0 }
 0x7a7   :  { %4103 = vst [vmem:[%s8736_s5 + $0x100] sm:$0xff] %v4055_v31  ;;  %4104 = vst [vmem:[%s8736_s5 + $0x108] sm:$0xff] %v4056_v61  ;;  %v4049_v30 = vmax.f32 %v4001_v25, 0.0  ;;  %v4050_v37 = vmax.f32 %v4002_v32, 0.0  ;;  %v3923_v42 = vmul.f32 %v3880_v16, %v9570_v28  ;;  %v3924_v2 = vmul.f32 %v3880_v16, %v9571_v5  ;;  %v3973_v51 = vpop.permute.xlu0 %3972 }
 0x7a8   :  { %4105 = vst [vmem:[%s8736_s5 + $0x110] sm:$0xff] %v4057_v27  ;;  %4106 = vst.msk [vmem:[%s8736_s5 + $0x118] sm:$0xff] %vm3506_vm10, %v4058_v40  ;;  %v4051_v45 = vmax.f32 %v4003_v3, 0.0  ;;  %v4052_v13 = vmax.f32 %v4004_v4, 0.0  ;;  %v3925_v17 = vmul.f32 %v3880_v16, %v9576_v18  ;;  %v3926_v54 = vmul.f32 %v3880_v16, %v9577_v39 }
 0x7a9   :  { %4095 = vst [vmem:[%s8736_s5 + $0xc0] sm:$0xff] %v4047_v53  ;;  %4096 = vst [vmem:[%s8736_s5 + $0xc8] sm:$0xff] %v4048_v56  ;;  %v3885_v26 = vpop.permute.xlu1 %3884  ;;  %v3928_v1 = vmul.f32 %v3880_v16, %v9579_v10 }
 0x7aa   :  { %4097 = vst [vmem:[%s8736_s5 + $0xd0] sm:$0xff] %v4049_v30  ;;  %4098 = vst [vmem:[%s8736_s5 + $0xd8] sm:$0xff] %v4050_v37  ;;  %v3929_v14 = vmul.f32 %v3885_v26, %v9552_v0  ;;  %v3930_v12 = vmul.f32 %v3885_v26, %v9553_v36  ;;  %v3931_v23 = vmul.f32 %v3885_v26, %v9572_v19  ;;  %v9578_v36 = vld [vmem:[#allocation34_spill] sm:$0xff] }
 0x7ab   :  { %4099 = vst [vmem:[%s8736_s5 + $0xe0] sm:$0xff] %v4051_v45  ;;  %4100 = vst.msk [vmem:[%s8736_s5 + $0xe8] sm:$0xff] %vm3506_vm10, %v4052_v13  ;;  %v3932_v8 = vmul.f32 %v3885_v26, %v9573_v62  ;;  %v3933_v44 = vmul.f32 %v3885_v26, %v9574_v58  ;;  %v3934_v59 = vmul.f32 %v3885_v26, %v9575_v15 }
 0x7ac   :  { %v4017_v38 = vadd.f32 %v3973_v51, %v3929_v14  ;;  %v4018_v50 = vadd.f32 %v3973_v51, %v3930_v12  ;;  %v4019_v55 = vadd.f32 %v3973_v51, %v3931_v23  ;;  %v3927_v11 = vmul.f32 %v3880_v16, %v9578_v36 }
 0x7ad   :  { %v4020_v9 = vadd.f32 %v3973_v51, %v3932_v8  ;;  %v4021_v0 = vadd.f32 %v3973_v51, %v3933_v44  ;;  %v4022_v33 = vadd.f32 %v3973_v51, %v3934_v59  ;;  %v3968_v6 = vpop.permute.xlu1 %3967 }
 0x7ae   :  { %v4065_v63 = vmax.f32 %v4017_v38, 0.0  ;;  %v4066_v46 = vmax.f32 %v4018_v50, 0.0  ;;  %v4067_v47 = vmax.f32 %v4019_v55, 0.0  ;;  %v4011_v60 = vadd.f32 %v3968_v6, %v3923_v42 }
 0x7af   :  { %v4068_v22 = vmax.f32 %v4020_v9, 0.0  ;;  %v4069_v48 = vmax.f32 %v4021_v0, 0.0  ;;  %v4070_v24 = vmax.f32 %v4022_v33, 0.0  ;;  %v4012_v43 = vadd.f32 %v3968_v6, %v3924_v2 }
 0x7b0   :  { %4113 = vst [vmem:[%s8736_s5 + $0x150] sm:$0xff] %v4065_v63  ;;  %4114 = vst [vmem:[%s8736_s5 + $0x158] sm:$0xff] %v4066_v46  ;;  %v4013_v57 = vadd.f32 %v3968_v6, %v3925_v17  ;;  %v4014_v29 = vadd.f32 %v3968_v6, %v3926_v54  ;;  %v4015_v21 = vadd.f32 %v3968_v6, %v3927_v11  ;;  %v4059_v7 = vmax.f32 %v4011_v60, 0.0 }
 0x7b1   :  { %4115 = vst [vmem:[%s8736_s5 + $0x160] sm:$0xff] %v4067_v47  ;;  %4116 = vst [vmem:[%s8736_s5 + $0x168] sm:$0xff] %v4068_v22  ;;  %v4016_v52 = vadd.f32 %v3968_v6, %v3928_v1  ;;  %v4060_v41 = vmax.f32 %v4012_v43, 0.0 }
 0x7b2   :  { %4117 = vst [vmem:[%s8736_s5 + $0x170] sm:$0xff] %v4069_v48  ;;  %4118 = vst.msk [vmem:[%s8736_s5 + $0x178] sm:$0xff] %vm3506_vm10, %v4070_v24  ;;  %v4061_v49 = vmax.f32 %v4013_v57, 0.0  ;;  %v4062_v35 = vmax.f32 %v4014_v29, 0.0  ;;  %v4063_v34 = vmax.f32 %v4015_v21, 0.0 }
 0x7b3   :  { %v4064_v20 = vmax.f32 %v4016_v52, 0.0  ;;  %4107 = vst [vmem:[%s8736_s5 + $0x120] sm:$0xff] %v4059_v7  ;;  %4108 = vst [vmem:[%s8736_s5 + $0x128] sm:$0xff] %v4060_v41 }
 0x7b4   :  { %4109 = vst [vmem:[%s8736_s5 + $0x130] sm:$0xff] %v4061_v49  ;;  %4110 = vst [vmem:[%s8736_s5 + $0x138] sm:$0xff] %v4062_v35 }
 0x7b5   :  { %4111 = vst [vmem:[%s8736_s5 + $0x140] sm:$0xff] %v4063_v34  ;;  %4112 = vst.msk [vmem:[%s8736_s5 + $0x148] sm:$0xff] %vm3506_vm10, %v4064_v20 }

</bundles_post_ra>
